<compile_context>
chip_gen: v7x
topology: tpu7x:2x2x1
jax: 0.10.0
libtpu: 0.0.40
codegen_flags: <defaults>
</compile_context>

<pallas_src>
import functools

import jax
import jax.numpy as jnp
from jax import lax
from jax.experimental import pallas as pl
from jax.experimental.pallas import tpu as pltpu


# ------------------------------ hardware / tiling ------------------------------

def _vmem_budget_bytes():
    """Generation-aware scoped-VMEM budget (v5e/v6e: ~96 MiB, v7x: ~48 MiB)."""
    cap = 64 << 20
    try:
        info = pltpu.get_tpu_info()
        cap = int(getattr(info, "vmem_capacity_bytes", cap))
    except Exception:
        pass
    return int(min(max(cap - (16 << 20), 32 << 20), 96 << 20))


def _is_v5e():
    try:
        return "v5" in jax.devices()[0].device_kind.lower()
    except Exception:
        return False


def _tile_targets(budget):
    """(query-tile target, projection row-tile target) per generation."""
    if _is_v5e():
        return 256, 256            # v5e: HBM/store-bound; don't chase larger tiles
    if budget >= (80 << 20):
        return 512, 1024           # v6e-class: 128 MiB VMEM, amortize grid overhead
    if budget >= (44 << 20):
        return 256, 512            # v7x-class: 64 MiB VMEM
    return 128, 256


def _pick_tile(n, target):
    """Largest multiple-of-8 divisor of n that is <= target (or n itself)."""
    if n <= target:
        return n
    t = (target // 8) * 8
    while t >= 8:
        if n % t == 0:
            return t
        t -= 8
    return n


def _attention_tq(l, h, heads, raw_bytes, budget, target):
    """Largest query tile whose double-buffered resident set fits the VMEM budget."""
    def footprint(t):
        kv = 2 * 2 * (l * h * 2)                       # K + V, bf16, double-buffered
        per_tile = (t * h * 2                          # Q block (bf16)
                    + heads * t * l * 4                # position-bias block (f32)
                    + t * l * 4                        # adj block (f32)
                    + heads * t * l * raw_bytes        # raw-attention output block
                    + t * h * 4)                       # ctx output block (f32)
        return kv + 2 * per_tile
    cands = sorted(set([l] + [t for t in range(8, min(l, 1024) + 1, 8) if l % t == 0]))
    best = cands[0]
    for t in cands:
        if t <= target and footprint(t) <= int(0.75 * budget):
            best = max(best, t)
    return best


# --------------------------------- kernels ------------------------------------

def _qkv_proj_kernel(x_ref, w_ref, b_ref, q_ref, k_ref, v_ref, *, hidden):
    # One fused (tm, h) @ (h, 3h) bf16 matmul (f32 accumulation); the three h-wide
    # lane slices are Q / K / V in head-major column order.  Scale is pre-folded
    # into the Q columns of w/b.
    x = x_ref[...].astype(jnp.bfloat16)
    y = jnp.dot(x, w_ref[...], preferred_element_type=jnp.float32) + b_ref[...]
    q_ref[...] = y[:, :hidden].astype(q_ref.dtype)
    k_ref[...] = y[:, hidden:2 * hidden].astype(k_ref.dtype)
    v_ref[...] = y[:, 2 * hidden:].astype(v_ref.dtype)


def _mhsa_kernel(q_ref, k_ref, v_ref, bias_ref, adj_ref, ob_ref,
                 raw_ref, ctx_ref, *, num_heads, head_dim):
    # One grid step = (one batch element, one query tile); heads unrolled.
    # q/k/v refs are head-major (.., h) bf16; softmax scale already folded into Q.
    for n in range(num_heads):
        sl = slice(n * head_dim, (n + 1) * head_dim)
        qn = q_ref[0, :, sl]                                    # (tq, dh) bf16
        kn = k_ref[0, :, sl]                                    # (l,  dh) bf16
        scores = lax.dot_general(qn, kn, (((1,), (1,)), ((), ())),
                                 preferred_element_type=jnp.float32)
        raw_ref[0, n] = scores.astype(raw_ref.dtype)            # raw_attention (pre-bias)
        att = scores + bias_ref[n] + adj_ref[0, 0]
        m = jnp.max(att, axis=-1, keepdims=True)
        e = jnp.exp(att - m)                                    # EUP
        inv = pl.reciprocal(jnp.sum(e, axis=-1, keepdims=True), approx=True)
        p = (e * inv).astype(jnp.bfloat16)
        ctx = jnp.dot(p, v_ref[0, :, sl], preferred_element_type=jnp.float32)
        # Direct per-head lane-slice store (+ fused out_bias): no list / concat.
        ctx_ref[0, :, sl] = (ctx + ob_ref[:, sl]).astype(ctx_ref.dtype)


# ------------------------------ pallas wrappers --------------------------------

def qkv_projection(x2d, w_fused, b_fused, *, budget, tm_target):
    M, h = x2d.shape
    tm = _pick_tile(M, tm_target)
    row_in = pl.BlockSpec((tm, h), lambda m: (m, 0))
    row_out = pl.BlockSpec((tm, h), lambda m: (m, 0))
    w_spec = pl.BlockSpec((h, 3 * h), lambda m: (0, 0))
    b_spec = pl.BlockSpec((1, 3 * h), lambda m: (0, 0))
    out = jax.ShapeDtypeStruct((M, h), jnp.bfloat16)
    return pl.pallas_call(
        functools.partial(_qkv_proj_kernel, hidden=h),
        grid=(M // tm,),
        in_specs=[row_in, w_spec, b_spec],
        out_specs=(row_out, row_out, row_out),
        out_shape=(out, out, out),
        compiler_params=pltpu.CompilerParams(
            dimension_semantics=("parallel",),
            vmem_limit_bytes=budget),
    )(x2d, w_fused, b_fused)


def mhsa_attention(q, k, v, posbias, adj, out_bias, *, num_heads, raw_dtype,
                   budget, tq_target):
    b, l, h = q.shape
    dh = h // num_heads
    raw_bytes = jnp.dtype(raw_dtype).itemsize
    tq = _attention_tq(l, h, num_heads, raw_bytes, budget, tq_target)
    lq = l // tq

    # Pick the grid order that avoids re-streaming the larger input:
    #   batch-outer     -> K/V (2*l*h bytes) resident across query tiles
    #   query-tile-outer-> position bias (heads*tq*l bytes) resident across batch
    swap = num_heads * tq > 2 * h
    if swap:
        grid = (lq, b)
        def _ix(g0, g1): return g1, g0          # -> (batch, qtile)
    else:
        grid = (b, lq)
        def _ix(g0, g1): return g0, g1

    def q_map(g0, g1):    i, qb = _ix(g0, g1); return (i, qb, 0)
    def kv_map(g0, g1):   i, qb = _ix(g0, g1); return (i, 0, 0)
    def bias_map(g0, g1): i, qb = _ix(g0, g1); return (0, qb, 0)
    def adj_map(g0, g1):  i, qb = _ix(g0, g1); return (i, 0, qb, 0)
    def ob_map(g0, g1):   return (0, 0)
    def raw_map(g0, g1):  i, qb = _ix(g0, g1); return (i, 0, qb, 0)
    def ctx_map(g0, g1):  i, qb = _ix(g0, g1); return (i, qb, 0)

    kern = functools.partial(_mhsa_kernel, num_heads=num_heads, head_dim=dh)
    raw, ctx = pl.pallas_call(
        kern,
        grid=grid,
        in_specs=[pl.BlockSpec((1, tq, h), q_map),
                  pl.BlockSpec((1, l, h), kv_map),
                  pl.BlockSpec((1, l, h), kv_map),
                  pl.BlockSpec((num_heads, tq, l), bias_map),
                  pl.BlockSpec((1, 1, tq, l), adj_map),
                  pl.BlockSpec((1, h), ob_map)],
        out_specs=(pl.BlockSpec((1, num_heads, tq, l), raw_map),
                   pl.BlockSpec((1, tq, h), ctx_map)),
        out_shape=(jax.ShapeDtypeStruct((b, num_heads, l, l), raw_dtype),
                   jax.ShapeDtypeStruct((b, l, h), jnp.float32)),
        compiler_params=pltpu.CompilerParams(
            dimension_semantics=("parallel", "parallel"),
            vmem_limit_bytes=budget),
    )(q, k, v, posbias, adj, out_bias)
    return raw, ctx


# -------------------------- DynamicPositionBias (XLA) --------------------------

def dynamic_position_bias(l, params):
    # depth=2, no norm, no log distance: Linear(1,dim)+SiLU, Linear(dim,dim)+SiLU,
    # Linear(dim,heads); then gather by relative position.  Tiny (lane width == heads),
    # so it stays in plain XLA rather than a Pallas call.
    pos = jnp.arange(-l + 1, l, dtype=jnp.float32)[:, None]           # (2l-1, 1)
    h0 = jax.nn.silu(pos @ params["dp_w0"] + params["dp_b0"])
    h1 = jax.nn.silu(h0 @ params["dp_w1"] + params["dp_b1"])
    table = h1 @ params["dp_w2"] + params["dp_b2"]                    # (2l-1, heads)
    rel = jnp.arange(l)[:, None] - jnp.arange(l)[None, :] + l - 1     # (l, l)
    return jnp.transpose(table[rel], (2, 0, 1))                       # (heads, l, l)


# ------------------------------- full forward ----------------------------------

def multi_head_self_attention(params, x, adj, *, num_heads, temperature=1.0,
                              raw_dtype=jnp.bfloat16):
    """x: (b, l, h); adj: (b, 1, l, l).
    Returns (out (b, l, h) f32, raw_attention (b, heads, l, l) raw_dtype).
    Pass raw_dtype=jnp.float32 for a full-precision raw-attention output."""
    b, l, h = x.shape
    dh = h // num_heads
    assert h == dh * num_heads
    assert adj.shape == (b, 1, l, l)
    budget = _vmem_budget_bytes()
    tq_target, tm_target = _tile_targets(budget)

    # Re-pack the (h, 3h) in-projection into head-major [Wq|Wk|Wv] (trace time, tiny).
    # torch: x.view(b, l, heads, 3*dh).permute(0, 2, 1, 3).chunk(3, dim=3)
    #   -> column c of the 3h outputs belongs to head c // (3*dh), role (c%(3*dh))//dh,
    #      i.e. reshape(h, num_heads, 3, dh) below matches the torch layout.
    w4 = params["weights"].reshape(h, num_heads, 3, dh)
    ib = params["in_bias"].reshape(num_heads, 3, dh)
    scale = 1.0 / (temperature * (dh ** 0.5))                # folded into Wq / bq
    wq = w4[:, :, 0, :].reshape(h, h) * scale
    wk = w4[:, :, 1, :].reshape(h, h)
    wv = w4[:, :, 2, :].reshape(h, h)
    bq = ib[:, 0, :].reshape(1, h) * scale
    bk = ib[:, 1, :].reshape(1, h)
    bv = ib[:, 2, :].reshape(1, h)
    w_fused = jnp.concatenate([wq, wk, wv], axis=1).astype(jnp.bfloat16)   # (h, 3h)
    b_fused = jnp.concatenate([bq, bk, bv], axis=1).astype(jnp.float32)    # (1, 3h)

    q2, k2, v2 = qkv_projection(x.reshape(b * l, h), w_fused, b_fused,
                                budget=budget, tm_target=tm_target)
    q = q2.reshape(b, l, h)            # copy-free reshapes; head-major bf16
    k = k2.reshape(b, l, h)
    v = v2.reshape(b, l, h)

    posbias = dynamic_position_bias(l, params)               # (heads, l, l) f32
    out_bias = params["out_bias"].reshape(1, h).astype(jnp.float32)

    # TODO(synk): optional boolean key-mask path (mask != None) not implemented.
    raw_attn, out = mhsa_attention(q, k, v, posbias, adj, out_bias,
                                   num_heads=num_heads, raw_dtype=raw_dtype,
                                   budget=budget, tq_target=tq_target)
    # attn_dropout is identity in eval mode; `out_w` is defined by the torch module
    # but never applied in forward(), so it is not applied here either.
    return out, raw_attn


# ------------------------------- parameter init --------------------------------

def init_params(key, h, heads):
    dim = h // 4
    ks = jax.random.split(key, 8)

    def xavier(k, shape):
        fan_in, fan_out = shape
        std = (2.0 / (fan_in + fan_out)) ** 0.5
        return std * jax.random.normal(k, shape, jnp.float32)

    p = {}
    p["weights"] = xavier(ks[0], (h, 3 * h))                # xavier_normal_
    p["out_w"] = xavier(ks[1], (h, h))                      # unused in forward (as in torch)
    p["in_bias"] = jnp.zeros((1, 1, 3 * h), jnp.float32)    # constant_(0.0)
    p["out_bias"] = jnp.zeros((1, 1, h), jnp.float32)       # constant_(0.0)
    # DynamicPositionBias MLP (dim = h // 4, depth = 2); weights stored (in, out).
    p["dp_w0"] = xavier(ks[2], (1, dim))
    p["dp_b0"] = 0.1 * jax.random.normal(ks[3], (dim,), jnp.float32)
    p["dp_w1"] = xavier(ks[4], (dim, dim))
    p["dp_b1"] = 0.1 * jax.random.normal(ks[5], (dim,), jnp.float32)
    p["dp_w2"] = xavier(ks[6], (dim, heads))
    p["dp_b2"] = 0.1 * jax.random.normal(ks[7], (heads,), jnp.float32)
    return p


# ----------------------------------- main ---------------------------------------

if __name__ == "__main__":
    # Small, vreg-friendly demo shapes (one (8,128)-aligned query tile per batch).
    b, l, h, heads = 2, 128, 128, 4

    key = jax.random.PRNGKey(0)
    kx, kadj, kp = jax.random.split(key, 3)
    x = jax.random.normal(kx, (b, l, h), jnp.float32)
    adj = 0.1 * jax.random.normal(kadj, (b, 1, l, l), jnp.float32)
    params = init_params(kp, h, heads)

    fwd = jax.jit(functools.partial(multi_head_self_attention,
                                    num_heads=heads, temperature=1.0))
    out, raw_attn = fwd(params, x, adj)
    jax.block_until_ready((out, raw_attn))

    assert out.shape == (b, l, h)
    assert raw_attn.shape == (b, heads, l, l)
    assert bool(jnp.isfinite(out).all())
    assert bool(jnp.isfinite(raw_attn.astype(jnp.float32)).all())
    print("KERNEL_OK")
</pallas_src>

<mosaic_0001>
module attributes {stable_mosaic.version = 11 : i64} {
  func.func @_qkv_proj_kernel(%arg0: i32, %arg1: memref<256x128xf32, #tpu.memory_space<vmem>>, %arg2: memref<128x384xbf16, #tpu.memory_space<vmem>>, %arg3: memref<1x384xf32, #tpu.memory_space<vmem>>, %arg4: memref<256x128xbf16, #tpu.memory_space<vmem>>, %arg5: memref<256x128xbf16, #tpu.memory_space<vmem>>, %arg6: memref<256x128xbf16, #tpu.memory_space<vmem>>) attributes {dimension_semantics = [#tpu.dimension_semantics<parallel>], iteration_bounds = array<i64: 1>, scalar_prefetch = 0 : i64, scratch_operands = 0 : i64, tpu.core_type = #tpu.core_type<tc>, window_params = [{transform_indices = @transform_0, window_bounds = array<i64: 256, 128>}, {pipeline_mode = #tpu.pipeline_mode<synchronous>, transform_indices = @transform_1, window_bounds = array<i64: 128, 384>}, {pipeline_mode = #tpu.pipeline_mode<synchronous>, transform_indices = @transform_2, window_bounds = array<i64: 1, 384>}, {transform_indices = @transform_3, window_bounds = array<i64: 256, 128>}, {transform_indices = @transform_4, window_bounds = array<i64: 256, 128>}, {transform_indices = @transform_5, window_bounds = array<i64: 256, 128>}]} {
    %c0 = arith.constant 0 : index
    %c0_0 = arith.constant 0 : index
    %0 = vector.load %arg1[%c0, %c0_0] : memref<256x128xf32, #tpu.memory_space<vmem>>, vector<256x128xf32>
    %1 = arith.truncf %0 : vector<256x128xf32> to vector<256x128xbf16>
    %c0_1 = arith.constant 0 : index
    %c0_2 = arith.constant 0 : index
    %2 = vector.load %arg2[%c0_1, %c0_2] : memref<128x384xbf16, #tpu.memory_space<vmem>>, vector<128x384xbf16>
    %cst = arith.constant dense<0.000000e+00> : vector<256x384xf32>
    %3 = tpu.matmul %1, %2, %cst {dimension_numbers = #tpu.dot_dimension_numbers<[1], [0], [0], [1], [0, 0, 1, 1], [], []>} : vector<256x128xbf16>, vector<128x384xbf16>, vector<256x384xf32> -> vector<256x384xf32>
    %c0_3 = arith.constant 0 : index
    %c0_4 = arith.constant 0 : index
    %4 = vector.load %arg3[%c0_3, %c0_4] : memref<1x384xf32, #tpu.memory_space<vmem>>, vector<1x384xf32>
    %5 = vector.broadcast %4 : vector<1x384xf32> to vector<256x384xf32>
    %6 = arith.addf %3, %5 : vector<256x384xf32>
    %7 = vector.extract_strided_slice %6 {offsets = [0, 0], sizes = [256, 128], strides = [1, 1]} : vector<256x384xf32> to vector<256x128xf32>
    %8 = arith.truncf %7 : vector<256x128xf32> to vector<256x128xbf16>
    %c0_5 = arith.constant 0 : index
    %c0_6 = arith.constant 0 : index
    %9 = vector.load %arg4[%c0_5, %c0_6] : memref<256x128xbf16, #tpu.memory_space<vmem>>, vector<256x128xbf16>
    tpu.vector_store %arg4[%c0_5, %c0_6], %8 {strides = array<i32>} : memref<256x128xbf16, #tpu.memory_space<vmem>>, vector<256x128xbf16>,
    %10 = vector.extract_strided_slice %6 {offsets = [0, 128], sizes = [256, 128], strides = [1, 1]} : vector<256x384xf32> to vector<256x128xf32>
    %11 = arith.truncf %10 : vector<256x128xf32> to vector<256x128xbf16>
    %c0_7 = arith.constant 0 : index
    %c0_8 = arith.constant 0 : index
    %12 = vector.load %arg5[%c0_7, %c0_8] : memref<256x128xbf16, #tpu.memory_space<vmem>>, vector<256x128xbf16>
    tpu.vector_store %arg5[%c0_7, %c0_8], %11 {strides = array<i32>} : memref<256x128xbf16, #tpu.memory_space<vmem>>, vector<256x128xbf16>,
    %13 = vector.extract_strided_slice %6 {offsets = [0, 256], sizes = [256, 128], strides = [1, 1]} : vector<256x384xf32> to vector<256x128xf32>
    %14 = arith.truncf %13 : vector<256x128xf32> to vector<256x128xbf16>
    %c0_9 = arith.constant 0 : index
    %c0_10 = arith.constant 0 : index
    %15 = vector.load %arg6[%c0_9, %c0_10] : memref<256x128xbf16, #tpu.memory_space<vmem>>, vector<256x128xbf16>
    tpu.vector_store %arg6[%c0_9, %c0_10], %14 {strides = array<i32>} : memref<256x128xbf16, #tpu.memory_space<vmem>>, vector<256x128xbf16>,
    return
  }
  func.func @transform_0(%arg0: i32) -> (i32, i32) {
    %c0_i32 = arith.constant 0 : i32
    %c0_i32_0 = arith.constant 0 : i32
    return %arg0, %c0_i32 : i32, i32
  }
  func.func @transform_1(%arg0: i32) -> (i32, i32) {
    %c0_i32 = arith.constant 0 : i32
    %c0_i32_0 = arith.constant 0 : i32
    %c0_i32_1 = arith.constant 0 : i32
    return %c0_i32, %c0_i32_0 : i32, i32
  }
  func.func @transform_2(%arg0: i32) -> (i32, i32) {
    %c0_i32 = arith.constant 0 : i32
    %c0_i32_0 = arith.constant 0 : i32
    %c0_i32_1 = arith.constant 0 : i32
    return %c0_i32, %c0_i32_0 : i32, i32
  }
  func.func @transform_3(%arg0: i32) -> (i32, i32) {
    %c0_i32 = arith.constant 0 : i32
    %c0_i32_0 = arith.constant 0 : i32
    return %arg0, %c0_i32 : i32, i32
  }
  func.func @transform_4(%arg0: i32) -> (i32, i32) {
    %c0_i32 = arith.constant 0 : i32
    %c0_i32_0 = arith.constant 0 : i32
    return %arg0, %c0_i32 : i32, i32
  }
  func.func @transform_5(%arg0: i32) -> (i32, i32) {
    %c0_i32 = arith.constant 0 : i32
    %c0_i32_0 = arith.constant 0 : i32
    return %arg0, %c0_i32 : i32, i32
  }
}

module attributes {stable_mosaic.version = 11 : i64} {
  func.func @_mhsa_kernel(%arg0: i32, %arg1: i32, %arg2: memref<1x128x128xbf16, #tpu.memory_space<vmem>>, %arg3: memref<1x128x128xbf16, #tpu.memory_space<vmem>>, %arg4: memref<1x128x128xbf16, #tpu.memory_space<vmem>>, %arg5: memref<4x128x128xf32, #tpu.memory_space<vmem>>, %arg6: memref<1x1x128x128xf32, #tpu.memory_space<vmem>>, %arg7: memref<1x128xf32, #tpu.memory_space<vmem>>, %arg8: memref<1x4x128x128xbf16, #tpu.memory_space<vmem>>, %arg9: memref<1x128x128xf32, #tpu.memory_space<vmem>>) attributes {dimension_semantics = [#tpu.dimension_semantics<parallel>, #tpu.dimension_semantics<parallel>], iteration_bounds = array<i64: 1, 2>, scalar_prefetch = 0 : i64, scratch_operands = 0 : i64, tpu.core_type = #tpu.core_type<tc>, window_params = [{transform_indices = @transform_0, window_bounds = array<i64: 1, 128, 128>}, {transform_indices = @transform_1, window_bounds = array<i64: 1, 128, 128>}, {transform_indices = @transform_2, window_bounds = array<i64: 1, 128, 128>}, {transform_indices = @transform_3, window_bounds = array<i64: 4, 128, 128>}, {transform_indices = @transform_4, window_bounds = array<i64: 1, 1, 128, 128>}, {pipeline_mode = #tpu.pipeline_mode<synchronous>, transform_indices = @transform_5, window_bounds = array<i64: 1, 128>}, {transform_indices = @transform_6, window_bounds = array<i64: 1, 4, 128, 128>}, {transform_indices = @transform_7, window_bounds = array<i64: 1, 128, 128>}]} {
    %c0 = arith.constant 0 : index
    %c0_0 = arith.constant 0 : index
    %c0_1 = arith.constant 0 : index
    %0 = vector.load %arg2[%c0, %c0_0, %c0_1] : memref<1x128x128xbf16, #tpu.memory_space<vmem>>, vector<1x128x32xbf16>
    %1 = vector.shape_cast %0 : vector<1x128x32xbf16> to vector<128x32xbf16>
    %c0_2 = arith.constant 0 : index
    %c0_3 = arith.constant 0 : index
    %c0_4 = arith.constant 0 : index
    %2 = vector.load %arg3[%c0_2, %c0_3, %c0_4] : memref<1x128x128xbf16, #tpu.memory_space<vmem>>, vector<1x128x32xbf16>
    %3 = vector.shape_cast %2 : vector<1x128x32xbf16> to vector<128x32xbf16>
    %cst = arith.constant dense<0.000000e+00> : vector<128x128xf32>
    %4 = tpu.matmul %1, %3, %cst {dimension_numbers = #tpu.dot_dimension_numbers<[1], [1], [0], [0], [0, 0, 1, 0], [], []>} : vector<128x32xbf16>, vector<128x32xbf16>, vector<128x128xf32> -> vector<128x128xf32>
    %5 = arith.truncf %4 : vector<128x128xf32> to vector<128x128xbf16>
    %c0_5 = arith.constant 0 : index
    %c0_6 = arith.constant 0 : index
    %c0_7 = arith.constant 0 : index
    %c0_8 = arith.constant 0 : index
    %6 = vector.load %arg8[%c0_5, %c0_6, %c0_7, %c0_8] : memref<1x4x128x128xbf16, #tpu.memory_space<vmem>>, vector<1x1x128x128xbf16>
    %7 = vector.shape_cast %6 : vector<1x1x128x128xbf16> to vector<128x128xbf16>
    %8 = vector.shape_cast %5 : vector<128x128xbf16> to vector<1x1x128x128xbf16>
    tpu.vector_store %arg8[%c0_5, %c0_6, %c0_7, %c0_8], %8 {strides = array<i32>} : memref<1x4x128x128xbf16, #tpu.memory_space<vmem>>, vector<1x1x128x128xbf16>,
    %c0_9 = arith.constant 0 : index
    %c0_10 = arith.constant 0 : index
    %c0_11 = arith.constant 0 : index
    %9 = vector.load %arg5[%c0_9, %c0_10, %c0_11] : memref<4x128x128xf32, #tpu.memory_space<vmem>>, vector<1x128x128xf32>
    %10 = vector.shape_cast %9 : vector<1x128x128xf32> to vector<128x128xf32>
    %11 = arith.addf %4, %10 : vector<128x128xf32>
    %c0_12 = arith.constant 0 : index
    %c0_13 = arith.constant 0 : index
    %c0_14 = arith.constant 0 : index
    %c0_15 = arith.constant 0 : index
    %12 = vector.load %arg6[%c0_12, %c0_13, %c0_14, %c0_15] : memref<1x1x128x128xf32, #tpu.memory_space<vmem>>, vector<1x1x128x128xf32>
    %13 = vector.shape_cast %12 : vector<1x1x128x128xf32> to vector<128x128xf32>
    %14 = arith.addf %11, %13 : vector<128x128xf32>
    %cst_16 = arith.constant dense<0xFF800000> : vector<128xf32>
    %15 = vector.multi_reduction <maximumf>, %14, %cst_16 [1] : vector<128x128xf32> to vector<128xf32>
    %16 = vector.shape_cast %15 : vector<128xf32> to vector<128x1xf32>
    %17 = vector.broadcast %16 : vector<128x1xf32> to vector<128x128xf32>
    %18 = arith.subf %14, %17 : vector<128x128xf32>
    %19 = math.exp %18 : vector<128x128xf32>
    %cst_17 = arith.constant dense<0.000000e+00> : vector<128xf32>
    %20 = vector.multi_reduction <add>, %19, %cst_17 [1] : vector<128x128xf32> to vector<128xf32>
    %21 = vector.shape_cast %20 : vector<128xf32> to vector<128x1xf32>
    %22 = tpu.reciprocal %21 {approx = true} : vector<128x1xf32> -> vector<128x1xf32>
    %23 = vector.broadcast %22 : vector<128x1xf32> to vector<128x128xf32>
    %24 = arith.mulf %19, %23 : vector<128x128xf32>
    %25 = arith.truncf %24 : vector<128x128xf32> to vector<128x128xbf16>
    %c0_18 = arith.constant 0 : index
    %c0_19 = arith.constant 0 : index
    %c0_20 = arith.constant 0 : index
    %26 = vector.load %arg4[%c0_18, %c0_19, %c0_20] : memref<1x128x128xbf16, #tpu.memory_space<vmem>>, vector<1x128x32xbf16>
    %27 = vector.shape_cast %26 : vector<1x128x32xbf16> to vector<128x32xbf16>
    %cst_21 = arith.constant dense<0.000000e+00> : vector<128x32xf32>
    %28 = tpu.matmul %25, %27, %cst_21 {dimension_numbers = #tpu.dot_dimension_numbers<[1], [0], [0], [1], [0, 0, 1, 1], [], []>} : vector<128x128xbf16>, vector<128x32xbf16>, vector<128x32xf32> -> vector<128x32xf32>
    %c0_22 = arith.constant 0 : index
    %c0_23 = arith.constant 0 : index
    %29 = vector.load %arg7[%c0_22, %c0_23] : memref<1x128xf32, #tpu.memory_space<vmem>>, vector<1x32xf32>
    %30 = vector.broadcast %29 : vector<1x32xf32> to vector<128x32xf32>
    %31 = arith.addf %28, %30 : vector<128x32xf32>
    %c0_24 = arith.constant 0 : index
    %c0_25 = arith.constant 0 : index
    %c0_26 = arith.constant 0 : index
    %32 = vector.load %arg9[%c0_24, %c0_25, %c0_26] : memref<1x128x128xf32, #tpu.memory_space<vmem>>, vector<1x128x32xf32>
    %33 = vector.shape_cast %32 : vector<1x128x32xf32> to vector<128x32xf32>
    %34 = vector.shape_cast %31 : vector<128x32xf32> to vector<1x128x32xf32>
    tpu.vector_store %arg9[%c0_24, %c0_25, %c0_26], %34 {strides = array<i32>} : memref<1x128x128xf32, #tpu.memory_space<vmem>>, vector<1x128x32xf32>,
    %c0_27 = arith.constant 0 : index
    %c0_28 = arith.constant 0 : index
    %c32 = arith.constant 32 : index
    %35 = vector.load %arg2[%c0_27, %c0_28, %c32] : memref<1x128x128xbf16, #tpu.memory_space<vmem>>, vector<1x128x32xbf16>
    %36 = vector.shape_cast %35 : vector<1x128x32xbf16> to vector<128x32xbf16>
    %c0_29 = arith.constant 0 : index
    %c0_30 = arith.constant 0 : index
    %c32_31 = arith.constant 32 : index
    %37 = vector.load %arg3[%c0_29, %c0_30, %c32_31] : memref<1x128x128xbf16, #tpu.memory_space<vmem>>, vector<1x128x32xbf16>
    %38 = vector.shape_cast %37 : vector<1x128x32xbf16> to vector<128x32xbf16>
    %cst_32 = arith.constant dense<0.000000e+00> : vector<128x128xf32>
    %39 = tpu.matmul %36, %38, %cst_32 {dimension_numbers = #tpu.dot_dimension_numbers<[1], [1], [0], [0], [0, 0, 1, 0], [], []>} : vector<128x32xbf16>, vector<128x32xbf16>, vector<128x128xf32> -> vector<128x128xf32>
    %40 = arith.truncf %39 : vector<128x128xf32> to vector<128x128xbf16>
    %c0_33 = arith.constant 0 : index
    %c1 = arith.constant 1 : index
    %c0_34 = arith.constant 0 : index
    %c0_35 = arith.constant 0 : index
    %41 = vector.load %arg8[%c0_33, %c1, %c0_34, %c0_35] : memref<1x4x128x128xbf16, #tpu.memory_space<vmem>>, vector<1x1x128x128xbf16>
    %42 = vector.shape_cast %41 : vector<1x1x128x128xbf16> to vector<128x128xbf16>
    %43 = vector.shape_cast %40 : vector<128x128xbf16> to vector<1x1x128x128xbf16>
    tpu.vector_store %arg8[%c0_33, %c1, %c0_34, %c0_35], %43 {strides = array<i32>} : memref<1x4x128x128xbf16, #tpu.memory_space<vmem>>, vector<1x1x128x128xbf16>,
    %c1_36 = arith.constant 1 : index
    %c0_37 = arith.constant 0 : index
    %c0_38 = arith.constant 0 : index
    %44 = vector.load %arg5[%c1_36, %c0_37, %c0_38] : memref<4x128x128xf32, #tpu.memory_space<vmem>>, vector<1x128x128xf32>
    %45 = vector.shape_cast %44 : vector<1x128x128xf32> to vector<128x128xf32>
    %46 = arith.addf %39, %45 : vector<128x128xf32>
    %c0_39 = arith.constant 0 : index
    %c0_40 = arith.constant 0 : index
    %c0_41 = arith.constant 0 : index
    %c0_42 = arith.constant 0 : index
    %47 = vector.load %arg6[%c0_39, %c0_40, %c0_41, %c0_42] : memref<1x1x128x128xf32, #tpu.memory_space<vmem>>, vector<1x1x128x128xf32>
    %48 = vector.shape_cast %47 : vector<1x1x128x128xf32> to vector<128x128xf32>
    %49 = arith.addf %46, %48 : vector<128x128xf32>
    %cst_43 = arith.constant dense<0xFF800000> : vector<128xf32>
    %50 = vector.multi_reduction <maximumf>, %49, %cst_43 [1] : vector<128x128xf32> to vector<128xf32>
    %51 = vector.shape_cast %50 : vector<128xf32> to vector<128x1xf32>
    %52 = vector.broadcast %51 : vector<128x1xf32> to vector<128x128xf32>
    %53 = arith.subf %49, %52 : vector<128x128xf32>
    %54 = math.exp %53 : vector<128x128xf32>
    %cst_44 = arith.constant dense<0.000000e+00> : vector<128xf32>
    %55 = vector.multi_reduction <add>, %54, %cst_44 [1] : vector<128x128xf32> to vector<128xf32>
    %56 = vector.shape_cast %55 : vector<128xf32> to vector<128x1xf32>
    %57 = tpu.reciprocal %56 {approx = true} : vector<128x1xf32> -> vector<128x1xf32>
    %58 = vector.broadcast %57 : vector<128x1xf32> to vector<128x128xf32>
    %59 = arith.mulf %54, %58 : vector<128x128xf32>
    %60 = arith.truncf %59 : vector<128x128xf32> to vector<128x128xbf16>
    %c0_45 = arith.constant 0 : index
    %c0_46 = arith.constant 0 : index
    %c32_47 = arith.constant 32 : index
    %61 = vector.load %arg4[%c0_45, %c0_46, %c32_47] : memref<1x128x128xbf16, #tpu.memory_space<vmem>>, vector<1x128x32xbf16>
    %62 = vector.shape_cast %61 : vector<1x128x32xbf16> to vector<128x32xbf16>
    %cst_48 = arith.constant dense<0.000000e+00> : vector<128x32xf32>
    %63 = tpu.matmul %60, %62, %cst_48 {dimension_numbers = #tpu.dot_dimension_numbers<[1], [0], [0], [1], [0, 0, 1, 1], [], []>} : vector<128x128xbf16>, vector<128x32xbf16>, vector<128x32xf32> -> vector<128x32xf32>
    %c0_49 = arith.constant 0 : index
    %c32_50 = arith.constant 32 : index
    %64 = vector.load %arg7[%c0_49, %c32_50] : memref<1x128xf32, #tpu.memory_space<vmem>>, vector<1x32xf32>
    %65 = vector.broadcast %64 : vector<1x32xf32> to vector<128x32xf32>
    %66 = arith.addf %63, %65 : vector<128x32xf32>
    %c0_51 = arith.constant 0 : index
    %c0_52 = arith.constant 0 : index
    %c32_53 = arith.constant 32 : index
    %67 = vector.load %arg9[%c0_51, %c0_52, %c32_53] : memref<1x128x128xf32, #tpu.memory_space<vmem>>, vector<1x128x32xf32>
    %68 = vector.shape_cast %67 : vector<1x128x32xf32> to vector<128x32xf32>
    %69 = vector.shape_cast %66 : vector<128x32xf32> to vector<1x128x32xf32>
    tpu.vector_store %arg9[%c0_51, %c0_52, %c32_53], %69 {strides = array<i32>} : memref<1x128x128xf32, #tpu.memory_space<vmem>>, vector<1x128x32xf32>,
    %c0_54 = arith.constant 0 : index
    %c0_55 = arith.constant 0 : index
    %c64 = arith.constant 64 : index
    %70 = vector.load %arg2[%c0_54, %c0_55, %c64] : memref<1x128x128xbf16, #tpu.memory_space<vmem>>, vector<1x128x32xbf16>
    %71 = vector.shape_cast %70 : vector<1x128x32xbf16> to vector<128x32xbf16>
    %c0_56 = arith.constant 0 : index
    %c0_57 = arith.constant 0 : index
    %c64_58 = arith.constant 64 : index
    %72 = vector.load %arg3[%c0_56, %c0_57, %c64_58] : memref<1x128x128xbf16, #tpu.memory_space<vmem>>, vector<1x128x32xbf16>
    %73 = vector.shape_cast %72 : vector<1x128x32xbf16> to vector<128x32xbf16>
    %cst_59 = arith.constant dense<0.000000e+00> : vector<128x128xf32>
    %74 = tpu.matmul %71, %73, %cst_59 {dimension_numbers = #tpu.dot_dimension_numbers<[1], [1], [0], [0], [0, 0, 1, 0], [], []>} : vector<128x32xbf16>, vector<128x32xbf16>, vector<128x128xf32> -> vector<128x128xf32>
    %75 = arith.truncf %74 : vector<128x128xf32> to vector<128x128xbf16>
    %c0_60 = arith.constant 0 : index
    %c2 = arith.constant 2 : index
    %c0_61 = arith.constant 0 : index
    %c0_62 = arith.constant 0 : index
    %76 = vector.load %arg8[%c0_60, %c2, %c0_61, %c0_62] : memref<1x4x128x128xbf16, #tpu.memory_space<vmem>>, vector<1x1x128x128xbf16>
    %77 = vector.shape_cast %76 : vector<1x1x128x128xbf16> to vector<128x128xbf16>
    %78 = vector.shape_cast %75 : vector<128x128xbf16> to vector<1x1x128x128xbf16>
    tpu.vector_store %arg8[%c0_60, %c2, %c0_61, %c0_62], %78 {strides = array<i32>} : memref<1x4x128x128xbf16, #tpu.memory_space<vmem>>, vector<1x1x128x128xbf16>,
    %c2_63 = arith.constant 2 : index
    %c0_64 = arith.constant 0 : index
    %c0_65 = arith.constant 0 : index
    %79 = vector.load %arg5[%c2_63, %c0_64, %c0_65] : memref<4x128x128xf32, #tpu.memory_space<vmem>>, vector<1x128x128xf32>
    %80 = vector.shape_cast %79 : vector<1x128x128xf32> to vector<128x128xf32>
    %81 = arith.addf %74, %80 : vector<128x128xf32>
    %c0_66 = arith.constant 0 : index
    %c0_67 = arith.constant 0 : index
    %c0_68 = arith.constant 0 : index
    %c0_69 = arith.constant 0 : index
    %82 = vector.load %arg6[%c0_66, %c0_67, %c0_68, %c0_69] : memref<1x1x128x128xf32, #tpu.memory_space<vmem>>, vector<1x1x128x128xf32>
    %83 = vector.shape_cast %82 : vector<1x1x128x128xf32> to vector<128x128xf32>
    %84 = arith.addf %81, %83 : vector<128x128xf32>
    %cst_70 = arith.constant dense<0xFF800000> : vector<128xf32>
    %85 = vector.multi_reduction <maximumf>, %84, %cst_70 [1] : vector<128x128xf32> to vector<128xf32>
    %86 = vector.shape_cast %85 : vector<128xf32> to vector<128x1xf32>
    %87 = vector.broadcast %86 : vector<128x1xf32> to vector<128x128xf32>
    %88 = arith.subf %84, %87 : vector<128x128xf32>
    %89 = math.exp %88 : vector<128x128xf32>
    %cst_71 = arith.constant dense<0.000000e+00> : vector<128xf32>
    %90 = vector.multi_reduction <add>, %89, %cst_71 [1] : vector<128x128xf32> to vector<128xf32>
    %91 = vector.shape_cast %90 : vector<128xf32> to vector<128x1xf32>
    %92 = tpu.reciprocal %91 {approx = true} : vector<128x1xf32> -> vector<128x1xf32>
    %93 = vector.broadcast %92 : vector<128x1xf32> to vector<128x128xf32>
    %94 = arith.mulf %89, %93 : vector<128x128xf32>
    %95 = arith.truncf %94 : vector<128x128xf32> to vector<128x128xbf16>
    %c0_72 = arith.constant 0 : index
    %c0_73 = arith.constant 0 : index
    %c64_74 = arith.constant 64 : index
    %96 = vector.load %arg4[%c0_72, %c0_73, %c64_74] : memref<1x128x128xbf16, #tpu.memory_space<vmem>>, vector<1x128x32xbf16>
    %97 = vector.shape_cast %96 : vector<1x128x32xbf16> to vector<128x32xbf16>
    %cst_75 = arith.constant dense<0.000000e+00> : vector<128x32xf32>
    %98 = tpu.matmul %95, %97, %cst_75 {dimension_numbers = #tpu.dot_dimension_numbers<[1], [0], [0], [1], [0, 0, 1, 1], [], []>} : vector<128x128xbf16>, vector<128x32xbf16>, vector<128x32xf32> -> vector<128x32xf32>
    %c0_76 = arith.constant 0 : index
    %c64_77 = arith.constant 64 : index
    %99 = vector.load %arg7[%c0_76, %c64_77] : memref<1x128xf32, #tpu.memory_space<vmem>>, vector<1x32xf32>
    %100 = vector.broadcast %99 : vector<1x32xf32> to vector<128x32xf32>
    %101 = arith.addf %98, %100 : vector<128x32xf32>
    %c0_78 = arith.constant 0 : index
    %c0_79 = arith.constant 0 : index
    %c64_80 = arith.constant 64 : index
    %102 = vector.load %arg9[%c0_78, %c0_79, %c64_80] : memref<1x128x128xf32, #tpu.memory_space<vmem>>, vector<1x128x32xf32>
    %103 = vector.shape_cast %102 : vector<1x128x32xf32> to vector<128x32xf32>
    %104 = vector.shape_cast %101 : vector<128x32xf32> to vector<1x128x32xf32>
    tpu.vector_store %arg9[%c0_78, %c0_79, %c64_80], %104 {strides = array<i32>} : memref<1x128x128xf32, #tpu.memory_space<vmem>>, vector<1x128x32xf32>,
    %c0_81 = arith.constant 0 : index
    %c0_82 = arith.constant 0 : index
    %c96 = arith.constant 96 : index
    %105 = vector.load %arg2[%c0_81, %c0_82, %c96] : memref<1x128x128xbf16, #tpu.memory_space<vmem>>, vector<1x128x32xbf16>
    %106 = vector.shape_cast %105 : vector<1x128x32xbf16> to vector<128x32xbf16>
    %c0_83 = arith.constant 0 : index
    %c0_84 = arith.constant 0 : index
    %c96_85 = arith.constant 96 : index
    %107 = vector.load %arg3[%c0_83, %c0_84, %c96_85] : memref<1x128x128xbf16, #tpu.memory_space<vmem>>, vector<1x128x32xbf16>
    %108 = vector.shape_cast %107 : vector<1x128x32xbf16> to vector<128x32xbf16>
    %cst_86 = arith.constant dense<0.000000e+00> : vector<128x128xf32>
    %109 = tpu.matmul %106, %108, %cst_86 {dimension_numbers = #tpu.dot_dimension_numbers<[1], [1], [0], [0], [0, 0, 1, 0], [], []>} : vector<128x32xbf16>, vector<128x32xbf16>, vector<128x128xf32> -> vector<128x128xf32>
    %110 = arith.truncf %109 : vector<128x128xf32> to vector<128x128xbf16>
    %c0_87 = arith.constant 0 : index
    %c3 = arith.constant 3 : index
    %c0_88 = arith.constant 0 : index
    %c0_89 = arith.constant 0 : index
    %111 = vector.load %arg8[%c0_87, %c3, %c0_88, %c0_89] : memref<1x4x128x128xbf16, #tpu.memory_space<vmem>>, vector<1x1x128x128xbf16>
    %112 = vector.shape_cast %111 : vector<1x1x128x128xbf16> to vector<128x128xbf16>
    %113 = vector.shape_cast %110 : vector<128x128xbf16> to vector<1x1x128x128xbf16>
    tpu.vector_store %arg8[%c0_87, %c3, %c0_88, %c0_89], %113 {strides = array<i32>} : memref<1x4x128x128xbf16, #tpu.memory_space<vmem>>, vector<1x1x128x128xbf16>,
    %c3_90 = arith.constant 3 : index
    %c0_91 = arith.constant 0 : index
    %c0_92 = arith.constant 0 : index
    %114 = vector.load %arg5[%c3_90, %c0_91, %c0_92] : memref<4x128x128xf32, #tpu.memory_space<vmem>>, vector<1x128x128xf32>
    %115 = vector.shape_cast %114 : vector<1x128x128xf32> to vector<128x128xf32>
    %116 = arith.addf %109, %115 : vector<128x128xf32>
    %c0_93 = arith.constant 0 : index
    %c0_94 = arith.constant 0 : index
    %c0_95 = arith.constant 0 : index
    %c0_96 = arith.constant 0 : index
    %117 = vector.load %arg6[%c0_93, %c0_94, %c0_95, %c0_96] : memref<1x1x128x128xf32, #tpu.memory_space<vmem>>, vector<1x1x128x128xf32>
    %118 = vector.shape_cast %117 : vector<1x1x128x128xf32> to vector<128x128xf32>
    %119 = arith.addf %116, %118 : vector<128x128xf32>
    %cst_97 = arith.constant dense<0xFF800000> : vector<128xf32>
    %120 = vector.multi_reduction <maximumf>, %119, %cst_97 [1] : vector<128x128xf32> to vector<128xf32>
    %121 = vector.shape_cast %120 : vector<128xf32> to vector<128x1xf32>
    %122 = vector.broadcast %121 : vector<128x1xf32> to vector<128x128xf32>
    %123 = arith.subf %119, %122 : vector<128x128xf32>
    %124 = math.exp %123 : vector<128x128xf32>
    %cst_98 = arith.constant dense<0.000000e+00> : vector<128xf32>
    %125 = vector.multi_reduction <add>, %124, %cst_98 [1] : vector<128x128xf32> to vector<128xf32>
    %126 = vector.shape_cast %125 : vector<128xf32> to vector<128x1xf32>
    %127 = tpu.reciprocal %126 {approx = true} : vector<128x1xf32> -> vector<128x1xf32>
    %128 = vector.broadcast %127 : vector<128x1xf32> to vector<128x128xf32>
    %129 = arith.mulf %124, %128 : vector<128x128xf32>
    %130 = arith.truncf %129 : vector<128x128xf32> to vector<128x128xbf16>
    %c0_99 = arith.constant 0 : index
    %c0_100 = arith.constant 0 : index
    %c96_101 = arith.constant 96 : index
    %131 = vector.load %arg4[%c0_99, %c0_100, %c96_101] : memref<1x128x128xbf16, #tpu.memory_space<vmem>>, vector<1x128x32xbf16>
    %132 = vector.shape_cast %131 : vector<1x128x32xbf16> to vector<128x32xbf16>
    %cst_102 = arith.constant dense<0.000000e+00> : vector<128x32xf32>
    %133 = tpu.matmul %130, %132, %cst_102 {dimension_numbers = #tpu.dot_dimension_numbers<[1], [0], [0], [1], [0, 0, 1, 1], [], []>} : vector<128x128xbf16>, vector<128x32xbf16>, vector<128x32xf32> -> vector<128x32xf32>
    %c0_103 = arith.constant 0 : index
    %c96_104 = arith.constant 96 : index
    %134 = vector.load %arg7[%c0_103, %c96_104] : memref<1x128xf32, #tpu.memory_space<vmem>>, vector<1x32xf32>
    %135 = vector.broadcast %134 : vector<1x32xf32> to vector<128x32xf32>
    %136 = arith.addf %133, %135 : vector<128x32xf32>
    %c0_105 = arith.constant 0 : index
    %c0_106 = arith.constant 0 : index
    %c96_107 = arith.constant 96 : index
    %137 = vector.load %arg9[%c0_105, %c0_106, %c96_107] : memref<1x128x128xf32, #tpu.memory_space<vmem>>, vector<1x128x32xf32>
    %138 = vector.shape_cast %137 : vector<1x128x32xf32> to vector<128x32xf32>
    %139 = vector.shape_cast %136 : vector<128x32xf32> to vector<1x128x32xf32>
    tpu.vector_store %arg9[%c0_105, %c0_106, %c96_107], %139 {strides = array<i32>} : memref<1x128x128xf32, #tpu.memory_space<vmem>>, vector<1x128x32xf32>,
    return
  }
  func.func @transform_0(%arg0: i32, %arg1: i32) -> (i32, i32, i32) {
    %c0_i32 = arith.constant 0 : i32
    %c0_i32_0 = arith.constant 0 : i32
    return %arg1, %arg0, %c0_i32 : i32, i32, i32
  }
  func.func @transform_1(%arg0: i32, %arg1: i32) -> (i32, i32, i32) {
    %c0_i32 = arith.constant 0 : i32
    %c0_i32_0 = arith.constant 0 : i32
    %c0_i32_1 = arith.constant 0 : i32
    return %arg1, %c0_i32, %c0_i32_0 : i32, i32, i32
  }
  func.func @transform_2(%arg0: i32, %arg1: i32) -> (i32, i32, i32) {
    %c0_i32 = arith.constant 0 : i32
    %c0_i32_0 = arith.constant 0 : i32
    %c0_i32_1 = arith.constant 0 : i32
    return %arg1, %c0_i32, %c0_i32_0 : i32, i32, i32
  }
  func.func @transform_3(%arg0: i32, %arg1: i32) -> (i32, i32, i32) {
    %c0_i32 = arith.constant 0 : i32
    %c0_i32_0 = arith.constant 0 : i32
    %c0_i32_1 = arith.constant 0 : i32
    return %c0_i32, %arg0, %c0_i32_0 : i32, i32, i32
  }
  func.func @transform_4(%arg0: i32, %arg1: i32) -> (i32, i32, i32, i32) {
    %c0_i32 = arith.constant 0 : i32
    %c0_i32_0 = arith.constant 0 : i32
    %c0_i32_1 = arith.constant 0 : i32
    return %arg1, %c0_i32, %arg0, %c0_i32_0 : i32, i32, i32, i32
  }
  func.func @transform_5(%arg0: i32, %arg1: i32) -> (i32, i32) {
    %c0_i32 = arith.constant 0 : i32
    %c0_i32_0 = arith.constant 0 : i32
    %c0_i32_1 = arith.constant 0 : i32
    return %c0_i32, %c0_i32_0 : i32, i32
  }
  func.func @transform_6(%arg0: i32, %arg1: i32) -> (i32, i32, i32, i32) {
    %c0_i32 = arith.constant 0 : i32
    %c0_i32_0 = arith.constant 0 : i32
    %c0_i32_1 = arith.constant 0 : i32
    return %arg1, %c0_i32, %arg0, %c0_i32_0 : i32, i32, i32, i32
  }
  func.func @transform_7(%arg0: i32, %arg1: i32) -> (i32, i32, i32) {
    %c0_i32 = arith.constant 0 : i32
    %c0_i32_0 = arith.constant 0 : i32
    return %arg1, %arg0, %c0_i32 : i32, i32, i32
  }
}

</mosaic_0001>

<bundles_post_ra>
// kernel: multi_head_self_attention.2
= control target key start
LH: loop header
LB: loop body
LE: loop exit
PB: predicated region body
PF: predicated region fallthrough
CT: control target
= control target key end

     0   :  { %11 = vsyncpa [#allocation3], 0  ;;  %s1753_s18 = smov [#allocation2]   ;;  %s2162_s0 = inlined_call_operand.hbm [shape: f32[256,128], index: 0, kind: input, shape index: {}]   ;;  %s2163_s1 = inlined_call_operand.vmem [shape: bf16[128,384], index: 1, kind: input, shape index: {}]   ;;  %s2164_s2 = inlined_call_operand.vmem [shape: f32[1,384], index: 2, kind: input, shape index: {}]   ;;  %s2165_s3 = inlined_call_operand.vmem [shape: bf16[256,128], index: 3, kind: output, shape index: {0}]   ;;  %s2166_s4 = inlined_call_operand.vmem [shape: bf16[256,128], index: 4, kind: output, shape index: {1}]   ;;  %s2167_s5 = inlined_call_operand.vmem [shape: bf16[256,128], index: 5, kind: output, shape index: {2}]  }
   0x1   :  { %s17_s19 = sshll.u32 %s1753_s18, 4  ;;  %s1729_s22 = scalar_lea.hbm %s2162_s0, 4096  ;;  %s18_s19 = int_to_ptr.vmem [resolvable:$true] %s17_s19 }
   0x2   :  { %p1730_p0 = scmp.ne.s32.totalorder %s2162_s0, %s1729_s22  ;;  %p1733_p1 = scmp.lt.u32.totalorder %s1729_s22, %s2162_s0 }
   0x4   :  { %p1735_p2 = pnand %p1733_p1, %p1730_p0 }
   0x6   :  { %1738 = shalt.err (!%p1735_p2)
}
   0x7   :  { %s1739_s27 = scalar_lea.vmem %s18_s19, 4096  ;;  %p1744_p4 = scmp.lt.s32.totalorder %s18_s19, %s18_s19 }
   0x8   :  { %p1740_p3 = scmp.ne.s32.totalorder %s18_s19, %s1739_s27  ;;  %p1745_p5 = scmp.lt.s32.totalorder %s1739_s27, %s1739_s27 }
   0xa   :  { %p1746_p6 = por %p1745_p5, %p1744_p4 }
   0xc   :  { %p1747_p7 = pnand %p1746_p6, %p1740_p3 }
   0xe   :  { %1750 = shalt.err (!%p1747_p7)
}
   0xf   :  { %s1754_s28 = smov 128   ;;  %s1755_s29 = smov 8  }
  0x10   :  { %23 = dma.hbm_to_vmem [thread:$0]  %s2162_s0, 4096, %s18_s19, [#allocation3], %s1754_s28, %s1754_s28, %s1755_s29  }
  0x11   :  { %1751 = dma.done.wait [#allocation3], 4096  }
  0x12   :  { %1752 = vsyncadd [#allocation3], 4294963200  ;;  %v1756_v0 = vmov 0   ;;  %v1697_v1 = vld [vmem:[%s2163_s1 + $0x4] ss:$12 sps:$4 sm:$0xff]   ;;  %v33_v18 = vld [vmem:[#allocation2 + $0x8] sm:$0xff] }
  0x13   :  { %289 = vmatprep.mubr.bf16.mxu0 %v1756_v0  ;;  %409 = vmatprep.mubr.bf16.mxu1 %v1756_v0  ;;  %v1699_v2 = vld [vmem:[%s2163_s1] ss:$12 sps:$4 sm:$0xff]   ;;  %v1700_v3 = vld [vmem:[%s2163_s1 + $0x1c] ss:$12 sps:$4 sm:$0xff]   ;;  %v1702_v4 = vld [vmem:[%s2163_s1 + $0x18] ss:$12 sps:$4 sm:$0xff]  }
  0x14   :  { %257 = vmatprep.subr.bf16.mxu0 %v1697_v1  ;;  %1677 = vmatprep.subr.bf16.mxu1 %v1697_v1  ;;  %v1703_v5 = vld [vmem:[%s2163_s1 + $0x34] ss:$12 sps:$4 sm:$0xff]   ;;  %v1705_v6 = vld [vmem:[%s2163_s1 + $0x30] ss:$12 sps:$4 sm:$0xff]   ;;  %v1706_v7 = vld [vmem:[%s2163_s1 + $0x4c] ss:$12 sps:$4 sm:$0xff]  }
  0x15   :  { %258 = vmatpush1.bf16.msra.mxu0 %v1699_v2  ;;  %1685 = vmatpush1.bf16.msra.mxu1 %v1699_v2  ;;  %v1708_v8 = vld [vmem:[%s2163_s1 + $0x48] ss:$12 sps:$4 sm:$0xff]   ;;  %v1709_v9 = vld [vmem:[%s2163_s1 + $0x64] ss:$12 sps:$4 sm:$0xff]   ;;  %v1711_v10 = vld [vmem:[%s2163_s1 + $0x60] ss:$12 sps:$4 sm:$0xff]  }
  0x16   :  { %259 = vmatprep.subr.bf16.mxu0 %v1700_v3  ;;  %1678 = vmatprep.subr.bf16.mxu1 %v1700_v3  ;;  %v1712_v11 = vld [vmem:[%s2163_s1 + $0x7c] ss:$12 sps:$4 sm:$0xff]   ;;  %v1714_v12 = vld [vmem:[%s2163_s1 + $0x78] ss:$12 sps:$4 sm:$0xff]   ;;  %v1715_v13 = vld [vmem:[%s2163_s1 + $0x94] ss:$12 sps:$4 sm:$0xff]  }
  0x17   :  { %v1717_v14 = vld [vmem:[%s2163_s1 + $0x90] ss:$12 sps:$4 sm:$0xff]   ;;  %v1718_v15 = vld [vmem:[%s2163_s1 + $0xac] ss:$12 sps:$4 sm:$0xff]   ;;  %v1720_v16 = vld [vmem:[%s2163_s1 + $0xa8] ss:$12 sps:$4 sm:$0xff]  }
  0x18   :  { %v32_v17 = vld [vmem:[#allocation2] sm:$0xff]  ;;  %v57_v20 = vld [vmem:[#allocation2 + $0xc8] sm:$0xff]  ;;  %v34_v25 = vld [vmem:[#allocation2 + $0x10] sm:$0xff] }
  0x19   :  { %260 = vmatpush1.bf16.msra.mxu0 %v1702_v4  ;;  %1686 = vmatpush1.bf16.msra.mxu1 %v1702_v4  ;;  %v56_v19 = vld [vmem:[#allocation2 + $0xc0] sm:$0xff]  ;;  %v1721_v21 = vld [vmem:[%s2163_s1 + $0x8] ss:$12 sps:$4 sm:$0xff]   ;;  %v64_v22 = vpack.c.bf16 %v33_v18, %v32_v17  ;;  %v35_v26 = vld [vmem:[#allocation2 + $0x18] sm:$0xff] }
  0x1a   :  { %261 = vmatprep.subr.bf16.mxu0 %v1703_v5  ;;  %1679 = vmatprep.subr.bf16.mxu1 %v1703_v5  ;;  %v1852_v23 = vpack.c.bf16 %v57_v20, %v56_v19  ;;  %v1722_v24 = vld [vmem:[%s2163_s1 + $0x20] ss:$12 sps:$4 sm:$0xff]   ;;  %v58_v27 = vld [vmem:[#allocation2 + $0xd0] sm:$0xff]  ;;  %v59_v28 = vld [vmem:[#allocation2 + $0xd8] sm:$0xff]  ;;  %v65_v30 = vpack.c.bf16 %v35_v26, %v34_v25 }
  0x1b   :  { %v1723_v29 = vld [vmem:[%s2163_s1 + $0x38] ss:$12 sps:$4 sm:$0xff]   ;;  %v1863_v31 = vpack.c.bf16 %v59_v28, %v58_v27  ;;  %v1724_v32 = vld [vmem:[%s2163_s1 + $0x50] ss:$12 sps:$4 sm:$0xff]   ;;  %v37_v34 = vld [vmem:[#allocation2 + $0x28] sm:$0xff] }
  0x1c   :  { %v36_v33 = vld [vmem:[#allocation2 + $0x20] sm:$0xff]  ;;  %v61_v36 = vld [vmem:[#allocation2 + $0xe8] sm:$0xff]  ;;  %v38_v41 = vld [vmem:[#allocation2 + $0x30] sm:$0xff] }
  0x1d   :  { %262 = vmatpush1.bf16.msra.mxu0 %v1705_v6  ;;  %1687 = vmatpush1.bf16.msra.mxu1 %v1705_v6  ;;  %v60_v35 = vld [vmem:[#allocation2 + $0xe0] sm:$0xff]  ;;  %v1725_v37 = vld [vmem:[%s2163_s1 + $0x68] ss:$12 sps:$4 sm:$0xff]   ;;  %v66_v38 = vpack.c.bf16 %v37_v34, %v36_v33  ;;  %v39_v42 = vld [vmem:[#allocation2 + $0x38] sm:$0xff] }
  0x1e   :  { %263 = vmatprep.subr.bf16.mxu0 %v1706_v7  ;;  %1680 = vmatprep.subr.bf16.mxu1 %v1706_v7  ;;  %v1874_v39 = vpack.c.bf16 %v61_v36, %v60_v35  ;;  %v1726_v40 = vld [vmem:[%s2163_s1 + $0x80] ss:$12 sps:$4 sm:$0xff]   ;;  %v62_v43 = vld [vmem:[#allocation2 + $0xf0] sm:$0xff]  ;;  %v63_v44 = vld [vmem:[#allocation2 + $0xf8] sm:$0xff]  ;;  %v67_v46 = vpack.c.bf16 %v39_v42, %v38_v41 }
  0x1f   :  { %v1727_v45 = vld [vmem:[%s2163_s1 + $0x98] ss:$12 sps:$4 sm:$0xff]   ;;  %v1885_v47 = vpack.c.bf16 %v63_v44, %v62_v43  ;;  %v1728_v48 = vld [vmem:[%s2163_s1 + $0xb0] ss:$12 sps:$4 sm:$0xff]   ;;  %v41_v50 = vld [vmem:[#allocation2 + $0x48] sm:$0xff] }
  0x20   :  { %v40_v49 = vld [vmem:[#allocation2 + $0x40] sm:$0xff]  ;;  %v42_v52 = vld [vmem:[#allocation2 + $0x50] sm:$0xff]  ;;  %v43_v53 = vld [vmem:[#allocation2 + $0x58] sm:$0xff] }
  0x21   :  { %264 = vmatpush1.bf16.msra.mxu0 %v1708_v8  ;;  %1688 = vmatpush1.bf16.msra.mxu1 %v1708_v8  ;;  %v68_v51 = vpack.c.bf16 %v41_v50, %v40_v49  ;;  %v69_v54 = vpack.c.bf16 %v43_v53, %v42_v52  ;;  %v44_v55 = vld [vmem:[#allocation2 + $0x60] sm:$0xff]  ;;  %v45_v56 = vld [vmem:[#allocation2 + $0x68] sm:$0xff]  ;;  %v46_v58 = vld [vmem:[#allocation2 + $0x70] sm:$0xff] }
  0x22   :  { %265 = vmatprep.subr.bf16.mxu0 %v1709_v9  ;;  %1681 = vmatprep.subr.bf16.mxu1 %v1709_v9  ;;  %v70_v57 = vpack.c.bf16 %v45_v56, %v44_v55  ;;  %v47_v59 = vld [vmem:[#allocation2 + $0x78] sm:$0xff]  ;;  %v48_v60 = vld [vmem:[#allocation2 + $0x80] sm:$0xff]  ;;  %v49_v61 = vld [vmem:[#allocation2 + $0x88] sm:$0xff] }
  0x23   :  { %v71_v62 = vpack.c.bf16 %v47_v59, %v46_v58  ;;  %v72_v63 = vpack.c.bf16 %v49_v61, %v48_v60  ;;  %v50_v1 = vld [vmem:[#allocation2 + $0x90] sm:$0xff]  ;;  %v51_v2 = vld [vmem:[#allocation2 + $0x98] sm:$0xff]  ;;  %v52_v3 = vld [vmem:[#allocation2 + $0xa0] sm:$0xff] }
  0x24   :  { %v53_v4 = vld [vmem:[#allocation2 + $0xa8] sm:$0xff]  ;;  %v73_v5 = vpack.c.bf16 %v51_v2, %v50_v1  ;;  %v54_v7 = vld [vmem:[#allocation2 + $0xb0] sm:$0xff]  ;;  %v55_v8 = vld [vmem:[#allocation2 + $0xb8] sm:$0xff] }
  0x25   :  { %266 = vmatpush1.bf16.msra.mxu0 %v1711_v10  ;;  %1689 = vmatpush1.bf16.msra.mxu1 %v1711_v10  ;;  %v74_v6 = vpack.c.bf16 %v53_v4, %v52_v3  ;;  %v75_v9 = vpack.c.bf16 %v55_v8, %v54_v7  ;;  %v114_v10 = vlaneseq }
  0x26   :  { %267 = vmatprep.subr.bf16.mxu0 %v1712_v11  ;;  %1682 = vmatprep.subr.bf16.mxu1 %v1712_v11 }
  0x27   :  { %v1903_v11 = vshrl.u32 %v114_v10, 7 }
  0x29   :  { %268 = vmatpush1.bf16.msra.mxu0 %v1714_v12  ;;  %1690 = vmatpush1.bf16.msra.mxu1 %v1714_v12  ;;  %v116_v12 = vsub.s32 0, %v1903_v11 }
  0x2a   :  { %269 = vmatprep.subr.bf16.mxu0 %v1715_v13  ;;  %1683 = vmatprep.subr.bf16.mxu1 %v1715_v13  ;;  %v1909_v13 = vld [vmem:[%s2164_s2] sm:$0x7] }
  0x2d   :  { %270 = vmatpush1.bf16.msra.mxu0 %v1717_v14  ;;  %1691 = vmatpush1.bf16.msra.mxu1 %v1717_v14  ;;  %v120_v14 = vsub.s32 1, %v1903_v11 }
  0x2e   :  { %271 = vmatprep.subr.bf16.mxu0 %v1718_v15  ;;  %1684 = vmatprep.subr.bf16.mxu1 %v1718_v15  ;;  %v1913_v15 = vrot.slane %v1909_v13, %v116_v12 }
  0x2f   :  { %v1916_v17 = vrot.slane %v1909_v13, %v120_v14 }
  0x31   :  { %272 = vmatpush1.bf16.msra.mxu0 %v1720_v16  ;;  %1692 = vmatpush1.bf16.msra.mxu1 %v1720_v16 }
  0x32   :  { %1629 = vmatprep.subr.bf16.mxu1 %v1721_v21 }
  0x34   :  { %290 = vmatmul.mubr.bf16.vlgmr.msra.gmra.mrb[0].mxu0 %v64_v22  ;;  %410 = vmatmul.mubr.bf16.vlgmr.msra.gmra.mrb[0].mxu1 %v1852_v23 }
  0x35   :  { %1630 = vmatpush3.bf16.msra.mxu1 %v1721_v21  ;;  %299 = vmatprep.mubr.bf16.mxu0 %v1756_v0 }
  0x36   :  { %1631 = vmatprep.subr.bf16.mxu1 %v1722_v24  ;;  %419 = vmatprep.mubr.bf16.mxu1 %v1756_v0 }
  0x39   :  { %1632 = vmatpush3.bf16.msra.mxu1 %v1722_v24 }
  0x3a   :  { %1633 = vmatprep.subr.bf16.mxu1 %v1723_v29 }
  0x3c   :  { %300 = vmatmul.mubr.bf16.gmra.mrb[4].mxu0 %v65_v30  ;;  %420 = vmatmul.mubr.bf16.gmra.mrb[4].mxu1 %v1863_v31 }
  0x3d   :  { %1634 = vmatpush3.bf16.msra.mxu1 %v1723_v29  ;;  %309 = vmatprep.mubr.bf16.mxu0 %v1756_v0 }
  0x3e   :  { %1635 = vmatprep.subr.bf16.mxu1 %v1724_v32  ;;  %429 = vmatprep.mubr.bf16.mxu1 %v1756_v0 }
  0x41   :  { %1636 = vmatpush3.bf16.msra.mxu1 %v1724_v32 }
  0x42   :  { %1637 = vmatprep.subr.bf16.mxu1 %v1725_v37 }
  0x44   :  { %310 = vmatmul.mubr.bf16.gmra.mrb[8].mxu0 %v66_v38  ;;  %430 = vmatmul.mubr.bf16.gmra.mrb[8].mxu1 %v1874_v39 }
  0x45   :  { %1638 = vmatpush3.bf16.msra.mxu1 %v1725_v37  ;;  %319 = vmatprep.mubr.bf16.mxu0 %v1756_v0 }
  0x46   :  { %1639 = vmatprep.subr.bf16.mxu1 %v1726_v40  ;;  %439 = vmatprep.mubr.bf16.mxu1 %v1756_v0 }
  0x49   :  { %1640 = vmatpush3.bf16.msra.mxu1 %v1726_v40 }
  0x4a   :  { %1641 = vmatprep.subr.bf16.mxu1 %v1727_v45 }
  0x4c   :  { %320 = vmatmul.mubr.bf16.gmra.mrb[12].mxu0 %v67_v46  ;;  %440 = vmatmul.mubr.bf16.gmra.mrb[12].mxu1 %v1885_v47 }
  0x4d   :  { %1642 = vmatpush3.bf16.msra.mxu1 %v1727_v45  ;;  %329 = vmatprep.mubr.bf16.mxu0 %v1756_v0 }
  0x4e   :  { %1643 = vmatprep.subr.bf16.mxu1 %v1728_v48  ;;  %1645 = vmatprep.mubr.bf16.mxu1 %v64_v22 }
  0x51   :  { %1644 = vmatpush3.bf16.msra.mxu1 %v1728_v48 }
  0x54   :  { %330 = vmatmul.mubr.bf16.gmra.mrb[16].mxu0 %v68_v51  ;;  %1646 = vmatmul.mubr.bf16.vlgmr.msra.gmra.mrb[16].mxu1 %v65_v30 }
  0x55   :  { %339 = vmatprep.mubr.bf16.mxu0 %v1756_v0  ;;  %1649 = vmatprep.mubr.bf16.mxu1 %v66_v38 }
  0x5c   :  { %340 = vmatmul.mubr.bf16.gmra.mrb[20].mxu0 %v69_v54  ;;  %1650 = vmatmul.mubr.bf16.gmra.mrb[20].mxu1 %v67_v46 }
  0x5d   :  { %349 = vmatprep.mubr.bf16.mxu0 %v1756_v0  ;;  %1653 = vmatprep.mubr.bf16.mxu1 %v68_v51 }
  0x64   :  { %350 = vmatmul.mubr.bf16.gmra.mrb[24].mxu0 %v70_v57  ;;  %1654 = vmatmul.mubr.bf16.gmra.mrb[24].mxu1 %v69_v54 }
  0x65   :  { %359 = vmatprep.mubr.bf16.mxu0 %v1756_v0  ;;  %1657 = vmatprep.mubr.bf16.mxu1 %v70_v57 }
  0x6c   :  { %360 = vmatmul.mubr.bf16.gmra.mrb[28].mxu0 %v71_v62  ;;  %1658 = vmatmul.mubr.bf16.gmra.mrb[28].mxu1 %v71_v62 }
  0x6d   :  { %369 = vmatprep.mubr.bf16.mxu0 %v1756_v0  ;;  %1661 = vmatprep.mubr.bf16.mxu1 %v72_v63 }
  0x74   :  { %370 = vmatmul.mubr.bf16.gmra.mrb[32].mxu0 %v72_v63  ;;  %1662 = vmatmul.mubr.bf16.gmra.mrb[32].mxu1 %v73_v5 }
  0x75   :  { %379 = vmatprep.mubr.bf16.mxu0 %v1756_v0  ;;  %1665 = vmatprep.mubr.bf16.mxu1 %v74_v6 }
  0x7c   :  { %380 = vmatmul.mubr.bf16.gmra.mrb[36].mxu0 %v73_v5  ;;  %1666 = vmatmul.mubr.bf16.gmra.mrb[36].mxu1 %v75_v9 }
  0x7d   :  { %389 = vmatprep.mubr.bf16.mxu0 %v1756_v0  ;;  %1669 = vmatprep.mubr.bf16.mxu1 %v1852_v23 }
  0x84   :  { %390 = vmatmul.mubr.bf16.gmra.mrb[40].mxu0 %v74_v6  ;;  %1670 = vmatmul.mubr.bf16.gmra.mrb[40].mxu1 %v1863_v31 }
  0x85   :  { %399 = vmatprep.mubr.bf16.mxu0 %v1756_v0  ;;  %1673 = vmatprep.mubr.bf16.mxu1 %v1874_v39 }
  0x8c   :  { %400 = vmatmul.mubr.bf16.gmra.mrb[44].mxu0 %v75_v9  ;;  %1674 = vmatmul.mubr.bf16.gmra.mrb[44].mxu1 %v1885_v47 }
 0x107   :  { %v291_v0 = vpop.f32.mrb[0].mxu0  ;;  %v411_v16 = vpop.f32.mrb[0].mxu1 }
 0x108   :  { %v293_v18 = vpop.f32.mrb[1].mxu0  ;;  %v413_v19 = vpop.f32.mrb[1].mxu1  ;;  %v292_v22 = vadd.f32 %v291_v0, %v1913_v15  ;;  %v412_v23 = vadd.f32 %v411_v16, %v1913_v15 }
 0x109   :  { %v295_v20 = vpop.f32.mrb[2].mxu0  ;;  %v415_v21 = vpop.f32.mrb[2].mxu1  ;;  %v294_v28 = vadd.f32 %v293_v18, %v1916_v17  ;;  %v414_v29 = vadd.f32 %v413_v19, %v1916_v17 }
 0x10a   :  { %v296_v24 = vadd.f32 %v295_v20, %v1913_v15  ;;  %v416_v25 = vadd.f32 %v415_v21, %v1913_v15  ;;  %v297_v26 = vpop.f32.mrb[3].mxu0  ;;  %v417_v27 = vpop.f32.mrb[3].mxu1 }
 0x10b   :  { %v298_v30 = vadd.f32 %v297_v26, %v1916_v17  ;;  %v418_v31 = vadd.f32 %v417_v27, %v1916_v17 }
 0x10c   :  { %v1323_v32 = vpack.c.bf16 %v296_v24, %v292_v22  ;;  %v1383_v33 = vpack.c.bf16 %v416_v25, %v412_v23  ;;  %v124_v22 = vsub.s32 2, %v1903_v11 }
 0x10d   :  { %v1403_v34 = vpack.c.bf16 %v298_v30, %v294_v28  ;;  %v1463_v35 = vpack.c.bf16 %v418_v31, %v414_v29 }
 0x10e   :  { %1324 = vst [vmem:[%s2165_s3] sm:$0xff] %v1323_v32   ;;  %1571 = vst [vmem:[%s2165_s3 + $0x60] sm:$0xff] %v1383_v33  }
 0x10f   :  { %1404 = vst [vmem:[%s2166_s4] sm:$0xff] %v1403_v34   ;;  %1586 = vst [vmem:[%s2166_s4 + $0x60] sm:$0xff] %v1463_v35   ;;  %v301_v36 = vpop.f32.mrb[4].mxu0  ;;  %v421_v37 = vpop.f32.mrb[4].mxu1 }
 0x110   :  { %v303_v38 = vpop.f32.mrb[5].mxu0  ;;  %v423_v39 = vpop.f32.mrb[5].mxu1  ;;  %v302_v42 = vadd.f32 %v301_v36, %v1913_v15  ;;  %v422_v43 = vadd.f32 %v421_v37, %v1913_v15  ;;  %v1994_v36 = vrot.slane %v1909_v13, %v124_v22 }
 0x111   :  { %v305_v40 = vpop.f32.mrb[6].mxu0  ;;  %v425_v41 = vpop.f32.mrb[6].mxu1  ;;  %v304_v48 = vadd.f32 %v303_v38, %v1916_v17  ;;  %v424_v49 = vadd.f32 %v423_v39, %v1916_v17 }
 0x112   :  { %v306_v44 = vadd.f32 %v305_v40, %v1913_v15  ;;  %v426_v45 = vadd.f32 %v425_v41, %v1913_v15  ;;  %v307_v46 = vpop.f32.mrb[7].mxu0  ;;  %v427_v47 = vpop.f32.mrb[7].mxu1 }
 0x113   :  { %v308_v50 = vadd.f32 %v307_v46, %v1916_v17  ;;  %v428_v51 = vadd.f32 %v427_v47, %v1916_v17 }
 0x114   :  { %v1328_v52 = vpack.c.bf16 %v306_v44, %v302_v42  ;;  %v1388_v53 = vpack.c.bf16 %v426_v45, %v422_v43 }
 0x115   :  { %v1408_v54 = vpack.c.bf16 %v308_v50, %v304_v48  ;;  %v1468_v55 = vpack.c.bf16 %v428_v51, %v424_v49 }
 0x116   :  { %1560 = vst [vmem:[%s2165_s3 + $0x8] sm:$0xff] %v1328_v52   ;;  %1572 = vst [vmem:[%s2165_s3 + $0x68] sm:$0xff] %v1388_v53  }
 0x117   :  { %1575 = vst [vmem:[%s2166_s4 + $0x8] sm:$0xff] %v1408_v54   ;;  %1587 = vst [vmem:[%s2166_s4 + $0x68] sm:$0xff] %v1468_v55   ;;  %v311_v56 = vpop.f32.mrb[8].mxu0  ;;  %v431_v57 = vpop.f32.mrb[8].mxu1 }
 0x118   :  { %v313_v58 = vpop.f32.mrb[9].mxu0  ;;  %v433_v59 = vpop.f32.mrb[9].mxu1  ;;  %v312_v62 = vadd.f32 %v311_v56, %v1913_v15  ;;  %v432_v63 = vadd.f32 %v431_v57, %v1913_v15 }
 0x119   :  { %v315_v60 = vpop.f32.mrb[10].mxu0  ;;  %v435_v61 = vpop.f32.mrb[10].mxu1  ;;  %v314_v5 = vadd.f32 %v313_v58, %v1916_v17  ;;  %v434_v6 = vadd.f32 %v433_v59, %v1916_v17 }
 0x11a   :  { %v316_v1 = vadd.f32 %v315_v60, %v1913_v15  ;;  %v436_v2 = vadd.f32 %v435_v61, %v1913_v15  ;;  %v317_v3 = vpop.f32.mrb[11].mxu0  ;;  %v437_v4 = vpop.f32.mrb[11].mxu1 }
 0x11b   :  { %v318_v7 = vadd.f32 %v317_v3, %v1916_v17  ;;  %v438_v8 = vadd.f32 %v437_v4, %v1916_v17 }
 0x11c   :  { %v1333_v9 = vpack.c.bf16 %v316_v1, %v312_v62  ;;  %v1393_v10 = vpack.c.bf16 %v436_v2, %v432_v63 }
 0x11d   :  { %v1413_v12 = vpack.c.bf16 %v318_v7, %v314_v5  ;;  %v1473_v14 = vpack.c.bf16 %v438_v8, %v434_v6 }
 0x11e   :  { %1561 = vst [vmem:[%s2165_s3 + $0x10] sm:$0xff] %v1333_v9   ;;  %1573 = vst [vmem:[%s2165_s3 + $0x70] sm:$0xff] %v1393_v10  }
 0x11f   :  { %1576 = vst [vmem:[%s2166_s4 + $0x10] sm:$0xff] %v1413_v12   ;;  %1588 = vst [vmem:[%s2166_s4 + $0x70] sm:$0xff] %v1473_v14   ;;  %v321_v0 = vpop.f32.mrb[12].mxu0  ;;  %v441_v16 = vpop.f32.mrb[12].mxu1 }
 0x120   :  { %v323_v18 = vpop.f32.mrb[13].mxu0  ;;  %v443_v19 = vpop.f32.mrb[13].mxu1  ;;  %v322_v23 = vadd.f32 %v321_v0, %v1913_v15  ;;  %v442_v24 = vadd.f32 %v441_v16, %v1913_v15 }
 0x121   :  { %v325_v20 = vpop.f32.mrb[14].mxu0  ;;  %v445_v21 = vpop.f32.mrb[14].mxu1  ;;  %v324_v29 = vadd.f32 %v323_v18, %v1916_v17  ;;  %v444_v30 = vadd.f32 %v443_v19, %v1916_v17 }
 0x122   :  { %v326_v25 = vadd.f32 %v325_v20, %v1913_v15  ;;  %v446_v26 = vadd.f32 %v445_v21, %v1913_v15  ;;  %v327_v27 = vpop.f32.mrb[15].mxu0  ;;  %v447_v28 = vpop.f32.mrb[15].mxu1 }
 0x123   :  { %v328_v31 = vadd.f32 %v327_v27, %v1916_v17  ;;  %v448_v32 = vadd.f32 %v447_v28, %v1916_v17 }
 0x124   :  { %v1338_v33 = vpack.c.bf16 %v326_v25, %v322_v23  ;;  %v1398_v11 = vpack.c.bf16 %v446_v26, %v442_v24 }
 0x125   :  { %v1418_v34 = vpack.c.bf16 %v328_v31, %v324_v29  ;;  %v1478_v35 = vpack.c.bf16 %v448_v32, %v444_v30 }
 0x126   :  { %1562 = vst [vmem:[%s2165_s3 + $0x18] sm:$0xff] %v1338_v33   ;;  %1574 = vst [vmem:[%s2165_s3 + $0x78] sm:$0xff] %v1398_v11  }
 0x127   :  { %1577 = vst [vmem:[%s2166_s4 + $0x18] sm:$0xff] %v1418_v34   ;;  %1589 = vst [vmem:[%s2166_s4 + $0x78] sm:$0xff] %v1478_v35   ;;  %v331_v37 = vpop.f32.mrb[16].mxu0  ;;  %v1647_v38 = vpop.f32.mrb[16].mxu1 }
 0x128   :  { %v333_v39 = vpop.f32.mrb[17].mxu0  ;;  %v484_v40 = vpop.f32.mrb[17].mxu1  ;;  %v332_v43 = vadd.f32 %v331_v37, %v1913_v15  ;;  %v493_v44 = vadd.f32 %v1647_v38, %v1994_v36 }
 0x129   :  { %v335_v41 = vpop.f32.mrb[18].mxu0  ;;  %v1648_v42 = vpop.f32.mrb[18].mxu1  ;;  %v334_v48 = vadd.f32 %v333_v39, %v1916_v17  ;;  %v485_v49 = vadd.f32 %v484_v40, %v1994_v36 }
 0x12a   :  { %v336_v13 = vadd.f32 %v335_v41, %v1913_v15  ;;  %v496_v45 = vadd.f32 %v1648_v42, %v1994_v36  ;;  %v337_v46 = vpop.f32.mrb[19].mxu0  ;;  %v487_v47 = vpop.f32.mrb[19].mxu1 }
 0x12b   :  { %v338_v50 = vadd.f32 %v337_v46, %v1916_v17  ;;  %v488_v51 = vadd.f32 %v487_v47, %v1994_v36 }
 0x12c   :  { %v1343_v52 = vpack.c.bf16 %v336_v13, %v332_v43  ;;  %v1488_v53 = vpack.c.bf16 %v496_v45, %v493_v44 }
 0x12d   :  { %v1423_v54 = vpack.c.bf16 %v338_v50, %v334_v48  ;;  %v1483_v55 = vpack.c.bf16 %v488_v51, %v485_v49 }
 0x12e   :  { %1563 = vst [vmem:[%s2165_s3 + $0x20] sm:$0xff] %v1343_v52   ;;  %1590 = vst [vmem:[%s2167_s5 + $0x8] sm:$0xff] %v1488_v53  }
 0x12f   :  { %1578 = vst [vmem:[%s2166_s4 + $0x20] sm:$0xff] %v1423_v54   ;;  %1484 = vst [vmem:[%s2167_s5] sm:$0xff] %v1483_v55   ;;  %v341_v56 = vpop.f32.mrb[20].mxu0  ;;  %v1651_v57 = vpop.f32.mrb[20].mxu1 }
 0x130   :  { %v343_v58 = vpop.f32.mrb[21].mxu0  ;;  %v500_v59 = vpop.f32.mrb[21].mxu1  ;;  %v342_v62 = vadd.f32 %v341_v56, %v1913_v15  ;;  %v509_v63 = vadd.f32 %v1651_v57, %v1994_v36 }
 0x131   :  { %v345_v60 = vpop.f32.mrb[22].mxu0  ;;  %v1652_v61 = vpop.f32.mrb[22].mxu1  ;;  %v344_v5 = vadd.f32 %v343_v58, %v1916_v17  ;;  %v501_v6 = vadd.f32 %v500_v59, %v1994_v36 }
 0x132   :  { %v346_v1 = vadd.f32 %v345_v60, %v1913_v15  ;;  %v512_v2 = vadd.f32 %v1652_v61, %v1994_v36  ;;  %v347_v3 = vpop.f32.mrb[23].mxu0  ;;  %v503_v4 = vpop.f32.mrb[23].mxu1 }
 0x133   :  { %v348_v7 = vadd.f32 %v347_v3, %v1916_v17  ;;  %v504_v8 = vadd.f32 %v503_v4, %v1994_v36 }
 0x134   :  { %v1348_v9 = vpack.c.bf16 %v346_v1, %v342_v62  ;;  %v1498_v10 = vpack.c.bf16 %v512_v2, %v509_v63 }
 0x135   :  { %v1428_v12 = vpack.c.bf16 %v348_v7, %v344_v5  ;;  %v1493_v14 = vpack.c.bf16 %v504_v8, %v501_v6 }
 0x136   :  { %1564 = vst [vmem:[%s2165_s3 + $0x28] sm:$0xff] %v1348_v9   ;;  %1592 = vst [vmem:[%s2167_s5 + $0x18] sm:$0xff] %v1498_v10  }
 0x137   :  { %1579 = vst [vmem:[%s2166_s4 + $0x28] sm:$0xff] %v1428_v12   ;;  %1591 = vst [vmem:[%s2167_s5 + $0x10] sm:$0xff] %v1493_v14   ;;  %v351_v0 = vpop.f32.mrb[24].mxu0  ;;  %v1655_v16 = vpop.f32.mrb[24].mxu1 }
 0x138   :  { %v353_v18 = vpop.f32.mrb[25].mxu0  ;;  %v516_v19 = vpop.f32.mrb[25].mxu1  ;;  %v352_v22 = vadd.f32 %v351_v0, %v1913_v15  ;;  %v525_v23 = vadd.f32 %v1655_v16, %v1994_v36 }
 0x139   :  { %v355_v20 = vpop.f32.mrb[26].mxu0  ;;  %v1656_v21 = vpop.f32.mrb[26].mxu1  ;;  %v354_v28 = vadd.f32 %v353_v18, %v1916_v17  ;;  %v517_v29 = vadd.f32 %v516_v19, %v1994_v36 }
 0x13a   :  { %v356_v24 = vadd.f32 %v355_v20, %v1913_v15  ;;  %v528_v25 = vadd.f32 %v1656_v21, %v1994_v36  ;;  %v357_v26 = vpop.f32.mrb[27].mxu0  ;;  %v519_v27 = vpop.f32.mrb[27].mxu1 }
 0x13b   :  { %v358_v30 = vadd.f32 %v357_v26, %v1916_v17  ;;  %v520_v31 = vadd.f32 %v519_v27, %v1994_v36 }
 0x13c   :  { %v1353_v32 = vpack.c.bf16 %v356_v24, %v352_v22  ;;  %v1508_v33 = vpack.c.bf16 %v528_v25, %v525_v23 }
 0x13d   :  { %v1433_v11 = vpack.c.bf16 %v358_v30, %v354_v28  ;;  %v1503_v34 = vpack.c.bf16 %v520_v31, %v517_v29 }
 0x13e   :  { %1565 = vst [vmem:[%s2165_s3 + $0x30] sm:$0xff] %v1353_v32   ;;  %1594 = vst [vmem:[%s2167_s5 + $0x28] sm:$0xff] %v1508_v33  }
 0x13f   :  { %1580 = vst [vmem:[%s2166_s4 + $0x30] sm:$0xff] %v1433_v11   ;;  %1593 = vst [vmem:[%s2167_s5 + $0x20] sm:$0xff] %v1503_v34   ;;  %v361_v35 = vpop.f32.mrb[28].mxu0  ;;  %v1659_v37 = vpop.f32.mrb[28].mxu1 }
 0x140   :  { %v363_v38 = vpop.f32.mrb[29].mxu0  ;;  %v532_v39 = vpop.f32.mrb[29].mxu1  ;;  %v362_v42 = vadd.f32 %v361_v35, %v1913_v15  ;;  %v541_v43 = vadd.f32 %v1659_v37, %v1994_v36 }
 0x141   :  { %v365_v40 = vpop.f32.mrb[30].mxu0  ;;  %v1660_v41 = vpop.f32.mrb[30].mxu1  ;;  %v364_v47 = vadd.f32 %v363_v38, %v1916_v17  ;;  %v533_v48 = vadd.f32 %v532_v39, %v1994_v36 }
 0x142   :  { %v366_v44 = vadd.f32 %v365_v40, %v1913_v15  ;;  %v544_v13 = vadd.f32 %v1660_v41, %v1994_v36  ;;  %v367_v45 = vpop.f32.mrb[31].mxu0  ;;  %v535_v46 = vpop.f32.mrb[31].mxu1 }
 0x143   :  { %v368_v49 = vadd.f32 %v367_v45, %v1916_v17  ;;  %v536_v50 = vadd.f32 %v535_v46, %v1994_v36 }
 0x144   :  { %v1358_v51 = vpack.c.bf16 %v366_v44, %v362_v42  ;;  %v1518_v52 = vpack.c.bf16 %v544_v13, %v541_v43 }
 0x145   :  { %v1438_v53 = vpack.c.bf16 %v368_v49, %v364_v47  ;;  %v1513_v54 = vpack.c.bf16 %v536_v50, %v533_v48 }
 0x146   :  { %1566 = vst [vmem:[%s2165_s3 + $0x38] sm:$0xff] %v1358_v51   ;;  %1596 = vst [vmem:[%s2167_s5 + $0x38] sm:$0xff] %v1518_v52  }
 0x147   :  { %1581 = vst [vmem:[%s2166_s4 + $0x38] sm:$0xff] %v1438_v53   ;;  %1595 = vst [vmem:[%s2167_s5 + $0x30] sm:$0xff] %v1513_v54   ;;  %v371_v55 = vpop.f32.mrb[32].mxu0  ;;  %v1663_v56 = vpop.f32.mrb[32].mxu1 }
 0x148   :  { %v373_v57 = vpop.f32.mrb[33].mxu0  ;;  %v548_v58 = vpop.f32.mrb[33].mxu1  ;;  %v372_v61 = vadd.f32 %v371_v55, %v1913_v15  ;;  %v557_v62 = vadd.f32 %v1663_v56, %v1994_v36 }
 0x149   :  { %v375_v59 = vpop.f32.mrb[34].mxu0  ;;  %v1664_v60 = vpop.f32.mrb[34].mxu1  ;;  %v374_v4 = vadd.f32 %v373_v57, %v1916_v17  ;;  %v549_v5 = vadd.f32 %v548_v58, %v1994_v36 }
 0x14a   :  { %v376_v63 = vadd.f32 %v375_v59, %v1913_v15  ;;  %v560_v1 = vadd.f32 %v1664_v60, %v1994_v36  ;;  %v377_v2 = vpop.f32.mrb[35].mxu0  ;;  %v551_v3 = vpop.f32.mrb[35].mxu1 }
 0x14b   :  { %v378_v6 = vadd.f32 %v377_v2, %v1916_v17  ;;  %v552_v7 = vadd.f32 %v551_v3, %v1994_v36 }
 0x14c   :  { %v1363_v8 = vpack.c.bf16 %v376_v63, %v372_v61  ;;  %v1528_v9 = vpack.c.bf16 %v560_v1, %v557_v62 }
 0x14d   :  { %v1443_v10 = vpack.c.bf16 %v378_v6, %v374_v4  ;;  %v1523_v12 = vpack.c.bf16 %v552_v7, %v549_v5 }
 0x14e   :  { %1567 = vst [vmem:[%s2165_s3 + $0x40] sm:$0xff] %v1363_v8   ;;  %1598 = vst [vmem:[%s2167_s5 + $0x48] sm:$0xff] %v1528_v9  }
 0x14f   :  { %1582 = vst [vmem:[%s2166_s4 + $0x40] sm:$0xff] %v1443_v10   ;;  %1597 = vst [vmem:[%s2167_s5 + $0x40] sm:$0xff] %v1523_v12   ;;  %v381_v14 = vpop.f32.mrb[36].mxu0  ;;  %v1667_v0 = vpop.f32.mrb[36].mxu1 }
 0x150   :  { %v383_v16 = vpop.f32.mrb[37].mxu0  ;;  %v564_v18 = vpop.f32.mrb[37].mxu1  ;;  %v382_v21 = vadd.f32 %v381_v14, %v1913_v15  ;;  %v573_v22 = vadd.f32 %v1667_v0, %v1994_v36 }
 0x151   :  { %v385_v19 = vpop.f32.mrb[38].mxu0  ;;  %v1668_v20 = vpop.f32.mrb[38].mxu1  ;;  %v384_v27 = vadd.f32 %v383_v16, %v1916_v17  ;;  %v565_v28 = vadd.f32 %v564_v18, %v1994_v36 }
 0x152   :  { %v386_v23 = vadd.f32 %v385_v19, %v1913_v15  ;;  %v576_v24 = vadd.f32 %v1668_v20, %v1994_v36  ;;  %v387_v25 = vpop.f32.mrb[39].mxu0  ;;  %v567_v26 = vpop.f32.mrb[39].mxu1 }
 0x153   :  { %v388_v29 = vadd.f32 %v387_v25, %v1916_v17  ;;  %v568_v30 = vadd.f32 %v567_v26, %v1994_v36 }
 0x154   :  { %v1368_v31 = vpack.c.bf16 %v386_v23, %v382_v21  ;;  %v1538_v32 = vpack.c.bf16 %v576_v24, %v573_v22 }
 0x155   :  { %v1448_v33 = vpack.c.bf16 %v388_v29, %v384_v27  ;;  %v1533_v11 = vpack.c.bf16 %v568_v30, %v565_v28 }
 0x156   :  { %1568 = vst [vmem:[%s2165_s3 + $0x48] sm:$0xff] %v1368_v31   ;;  %1600 = vst [vmem:[%s2167_s5 + $0x58] sm:$0xff] %v1538_v32  }
 0x157   :  { %1583 = vst [vmem:[%s2166_s4 + $0x48] sm:$0xff] %v1448_v33   ;;  %1599 = vst [vmem:[%s2167_s5 + $0x50] sm:$0xff] %v1533_v11   ;;  %v391_v34 = vpop.f32.mrb[40].mxu0  ;;  %v1671_v35 = vpop.f32.mrb[40].mxu1 }
 0x158   :  { %v393_v37 = vpop.f32.mrb[41].mxu0  ;;  %v580_v38 = vpop.f32.mrb[41].mxu1  ;;  %v392_v41 = vadd.f32 %v391_v34, %v1913_v15  ;;  %v589_v42 = vadd.f32 %v1671_v35, %v1994_v36 }
 0x159   :  { %v395_v39 = vpop.f32.mrb[42].mxu0  ;;  %v1672_v40 = vpop.f32.mrb[42].mxu1  ;;  %v394_v46 = vadd.f32 %v393_v37, %v1916_v17  ;;  %v581_v47 = vadd.f32 %v580_v38, %v1994_v36 }
 0x15a   :  { %v396_v43 = vadd.f32 %v395_v39, %v1913_v15  ;;  %v592_v44 = vadd.f32 %v1672_v40, %v1994_v36  ;;  %v397_v13 = vpop.f32.mrb[43].mxu0  ;;  %v583_v45 = vpop.f32.mrb[43].mxu1 }
 0x15b   :  { %v398_v48 = vadd.f32 %v397_v13, %v1916_v17  ;;  %v584_v49 = vadd.f32 %v583_v45, %v1994_v36 }
 0x15c   :  { %v1373_v50 = vpack.c.bf16 %v396_v43, %v392_v41  ;;  %v1548_v51 = vpack.c.bf16 %v592_v44, %v589_v42 }
 0x15d   :  { %v1453_v52 = vpack.c.bf16 %v398_v48, %v394_v46  ;;  %v1543_v53 = vpack.c.bf16 %v584_v49, %v581_v47 }
 0x15e   :  { %1569 = vst [vmem:[%s2165_s3 + $0x50] sm:$0xff] %v1373_v50   ;;  %1602 = vst [vmem:[%s2167_s5 + $0x68] sm:$0xff] %v1548_v51  }
 0x15f   :  { %1584 = vst [vmem:[%s2166_s4 + $0x50] sm:$0xff] %v1453_v52   ;;  %1601 = vst [vmem:[%s2167_s5 + $0x60] sm:$0xff] %v1543_v53   ;;  %v401_v54 = vpop.f32.mrb[44].mxu0  ;;  %v1675_v55 = vpop.f32.mrb[44].mxu1 }
 0x160   :  { %v403_v56 = vpop.f32.mrb[45].mxu0  ;;  %v596_v57 = vpop.f32.mrb[45].mxu1  ;;  %v402_v60 = vadd.f32 %v401_v54, %v1913_v15  ;;  %v605_v61 = vadd.f32 %v1675_v55, %v1994_v36 }
 0x161   :  { %v405_v58 = vpop.f32.mrb[46].mxu0  ;;  %v1676_v59 = vpop.f32.mrb[46].mxu1  ;;  %v404_v3 = vadd.f32 %v403_v56, %v1916_v17  ;;  %v597_v4 = vadd.f32 %v596_v57, %v1994_v36 }
 0x162   :  { %v406_v62 = vadd.f32 %v405_v58, %v1913_v15  ;;  %v608_v63 = vadd.f32 %v1676_v59, %v1994_v36  ;;  %v407_v1 = vpop.f32.mrb[47].mxu0  ;;  %v599_v2 = vpop.f32.mrb[47].mxu1 }
 0x163   :  { %v408_v5 = vadd.f32 %v407_v1, %v1916_v17  ;;  %v600_v6 = vadd.f32 %v599_v2, %v1994_v36 }
 0x164   :  { %v1378_v7 = vpack.c.bf16 %v406_v62, %v402_v60  ;;  %v1558_v8 = vpack.c.bf16 %v608_v63, %v605_v61 }
 0x165   :  { %v1458_v9 = vpack.c.bf16 %v408_v5, %v404_v3  ;;  %v1553_v10 = vpack.c.bf16 %v600_v6, %v597_v4 }
 0x166   :  { %1570 = vst [vmem:[%s2165_s3 + $0x58] sm:$0xff] %v1378_v7   ;;  %1604 = vst [vmem:[%s2167_s5 + $0x78] sm:$0xff] %v1558_v8  }
 0x167   :  { %1585 = vst [vmem:[%s2166_s4 + $0x58] sm:$0xff] %v1458_v9   ;;  %1603 = vst [vmem:[%s2167_s5 + $0x70] sm:$0xff] %v1553_v10  }
 0x168   :  { %1103 = vsyncpa [#allocation3], 1 }

// kernel: multi_head_self_attention.3
= control target key start
LH: loop header
LB: loop body
LE: loop exit
PB: predicated region body
PF: predicated region fallthrough
CT: control target
= control target key end

     0   :  { %s7200_s0 = inlined_call_operand.vmem [shape: bf16[2,128,128], index: 0, kind: input, shape index: {}]   ;;  %s7201_s1 = inlined_call_operand.vmem [shape: bf16[2,128,128], index: 1, kind: input, shape index: {}]   ;;  %s7202_s2 = inlined_call_operand.vmem [shape: bf16[2,128,128], index: 2, kind: input, shape index: {}]   ;;  %s7203_s3 = inlined_call_operand.vmem [shape: f32[4,128,128], index: 3, kind: input, shape index: {}]   ;;  %s7204_s4 = inlined_call_operand.vmem [shape: f32[2,1,128,128], index: 4, kind: input, shape index: {}]   ;;  %s7205_s5 = inlined_call_operand.vmem [shape: f32[1,128], index: 5, kind: input, shape index: {}]   ;;  %s7206_s6 = inlined_call_operand.hbm [shape: bf16[2,4,128,128], index: 6, kind: output, shape index: {0}]   ;;  %s7207_s7 = inlined_call_operand.hbm [shape: f32[2,128,128], index: 7, kind: output, shape index: {1}]  }
   0x1   :  { %7212 = sst [smem:[#allocation12_spill]] %s7200_s0 }
   0x2   :  { %7213 = sst [smem:[#allocation13_spill]] %s7201_s1 }
   0x3   :  { %13 = vsyncpa [#allocation3], 0 }
   0x4   :  { %15 = vsyncpa [#allocation3 + $0x1], 0 }
   0x5   :  { %16 = vsyncpa [#allocation5], 0 }
   0x6   :  { %18 = vsyncpa [#allocation5 + $0x1], 0  ;;  %s5502_s24 = smov 0   ;;  %s5504_s25 = smov 0  }
   0x7   :  { %s5506_s26 = smov 0   ;;  %s5508_s27 = smov 0  }
   0x8   :  { %s5510_s28 = smov 0   ;;  %s5512_s29 = smov 0  }
   0x9 LB: > { %s3931_s30 = sadd.s32 4294967295, %s5452_s29   ;;  %s3932_s8 = sadd.s32 4294967294, %s5452_s29   ;;  %s5452_s29 = sphi %s5512_s29, %s24_s29   ;;  %s5448_s28 = sphi %s5510_s28, %s7232_s28   ;;  %s5444_s27 = sphi %s5508_s27, %s7231_s27   ;;  %s5440_s26 = sphi %s5506_s26, %s7230_s26   ;;  %s5436_s25 = sphi %s5504_s25, %s7229_s25   ;;  %s5432_s24 = sphi %s5502_s24, %s7228_s24  }
   0xa   : > { %s33_s9 = sadd.s32 1, %s5448_s28  ;;  %s200_s10 = sadd.s32 1, %s5440_s26 }
   0xb   : > { %p34_p0 = scmp.ge.s32.totalorder %s33_s9, 2  ;;  %p210_p1 = scmp.ne.s32.totalorder %s5440_s26, %s5436_s25 }
   0xc   : > { %p211_p2 = scmp.eq.s32.totalorder %s3931_s30, 1  ;;  %p216_p3 = scmp.ne.s32.totalorder %s5436_s25, %s5432_s24 }
   0xd   : > { %s7234_s9 = smov (%p34_p0, %s33_s9), 0  ;;  %p217_p5 = scmp.eq.s32.totalorder %s3932_s8, 1 }
   0xe   : > { %p5542_p4 = por %p211_p2, %p210_p1  ;;  %s195_s12 = ssub.s32 %s5448_s28, %s7234_s9 }
   0xf   : > { %p3936_p6 = scmp.ge.s32.totalorder %s5452_s29, 1  ;;  %p198_p7 = scmp.eq.s32.totalorder %s195_s12, 0 }
  0x10   : > { %p5549_p8 = por %p217_p5, %p216_p3  ;;  %p317_p9 = scmp.lt.s32.totalorder %s5452_s29, 3 }
  0x11   : > { %s5555_s14 = scalar_select %p198_p7, %s5440_s26, %s200_s10  }
  0x12   : > { %p318_p10 = pnand %p3936_p6, %p317_p9 }
  0x14   : > { %321 = sbr.rel (%p318_p10) target bundleno = 2957 (0xb8d), region = 44 }
  0x1b   : > { %p383_p11 = scmp.lt.s32.totalorder %s5444_s27, 1  ;;  %s7216_s1 = sld [smem:[#allocation13_spill]]  ;;  %vm533_vm0 = vcmask 261120   ;;  %v761_v35 = vld [vmem:[%s7203_s3 + $0x10] sm:$0xff]  ;;  %v759_v36 = vld [vmem:[%s7203_s3] sm:$0xff]  ;;  %v762_v38 = vld [vmem:[%s7203_s3 + $0x18] sm:$0xff] }
  0x1c   : > { %s7217_s0 = sld [smem:[#allocation12_spill]]  ;;  %s7208_s23 = smov 96   ;;  %v760_v42 = vld [vmem:[%s7203_s3 + $0x8] sm:$0xff]  ;;  %v765_v55 = vld [vmem:[%s7203_s3 + $0x30] sm:$0xff]  ;;  %v763_v57 = vld [vmem:[%s7203_s3 + $0x20] sm:$0xff]  ;;  %vm1996_vm1 = vcmask 523520  }
  0x1d   : > { %s5559_s15 = scalar_select %p383_p11, %s5444_s27, 1  ;;  %v766_v60 = vld [vmem:[%s7203_s3 + $0x38] sm:$0xff]  ;;  %vm2850_vm2 = vcmask 785920  }
  0x1e   : > { %s5457_s18 = smov [#allocation2]  }
  0x1f   : > { %s5562_s16 = sshll.u32 %s5559_s15, 6  ;;  %s4250_s12 = sshll.u32 %s5559_s15, 7 }
  0x20   : > { %s5624_s10 = scalar_lea.vmem %s7202_s2, %s5562_s16  ;;  %s5645_s20 = scalar_lea.vmem %s7204_s4, %s4250_s12 }
  0x21   : > { %s5568_s19 = scalar_lea.vmem %s7216_s1, %s5562_s16  ;;  %v5009_v26 = vld [vmem:[%s5624_s10] sm:$0xff]   ;;  %v5010_v27 = vld [vmem:[%s5624_s10 + $0x8] sm:$0xff]   ;;  %v5011_v28 = vld [vmem:[%s5624_s10 + $0x10] sm:$0xff]   ;;  %s7210_s12 = smov 64  }
  0x22   : > { %v4990_v0 = vld [vmem:[%s5568_s19] sm:$0xff]   ;;  %v4991_v1 = vld [vmem:[%s5568_s19 + $0x8] sm:$0xff]   ;;  %s5579_s22 = scalar_lea.vmem %s7217_s0, %s5562_s16  ;;  %v4992_v3 = vld [vmem:[%s5568_s19 + $0x10] sm:$0xff]   ;;  %4668 = vmatprep.subr.bf16.mxu1 %v5009_v26  ;;  %s5640_s16 = sand.u32 1, %s5436_s25  }
  0x23   : > { %4892 = vmatprep.subr.msk.bf16.mxu0 %vm533_vm0, %v4990_v0  ;;  %v559_v2 = vsel %vm533_vm0, %v4990_v0, 0  ;;  %v562_v4 = vsel %vm533_vm0, %v4991_v1, 0  ;;  %v4998_v5 = vld [vmem:[%s5579_s22] sm:$0xff]   ;;  %v4993_v6 = vld [vmem:[%s5568_s19 + $0x18] sm:$0xff]   ;;  %v4995_v8 = vld [vmem:[%s5568_s19 + $0x28] sm:$0xff]   ;;  %v565_v9 = vsel %vm533_vm0, %v4992_v3, 0  ;;  %4669 = vmatpush3.bf16.msra.mxu1 %v5009_v26 }
  0x24   : > { %4637 = vmatpush3.bf16.xpose.msra.mxu0 %v559_v2  ;;  %4652 = vmatprep.mubr.msk.bf16.mxu0 %vm533_vm0, %v4998_v5  ;;  %v4994_v7 = vld [vmem:[%s5568_s19 + $0x20] sm:$0xff]   ;;  %v568_v10 = vsel %vm533_vm0, %v4993_v6, 0  ;;  %v5006_v12 = vld [vmem:[%s5568_s19 + $0x8] sm:$0xff]   ;;  %v574_v13 = vsel %vm533_vm0, %v4995_v8, 0  ;;  %v4996_v15 = vld [vmem:[%s5568_s19 + $0x30] sm:$0xff]   ;;  %s3937_s0 = sshll.u32 %s5640_s16, 8 }
  0x25   : > { %4893 = vmatprep.subr.msk.bf16.mxu0 %vm533_vm0, %v4991_v1  ;;  %v571_v11 = vsel %vm533_vm0, %v4994_v7, 0  ;;  %v5007_v14 = vld [vmem:[%s5568_s19] sm:$0xff]   ;;  %1289 = vrot.lane.b32.xlu1 %v5006_v12, %s7208_s23  ;;  %v577_v16 = vsel %vm533_vm0, %v4996_v15, 0  ;;  %v4997_v17 = vld [vmem:[%s5568_s19 + $0x38] sm:$0xff]   ;;  %v4999_v19 = vld [vmem:[%s5579_s22 + $0x8] sm:$0xff]   ;;  %s5675_s1 = scalar_lea.vmem [#allocation2], %s3937_s0 }
  0x26   : > { %1287 = vrot.lane.b32.xlu0 %v5007_v14, %s7208_s23  ;;  %v580_v18 = vsel %vm533_vm0, %v4997_v17, 0  ;;  %v5000_v20 = vld [vmem:[%s5579_s22 + $0x10] sm:$0xff]   ;;  %v5001_v21 = vld [vmem:[%s5579_s22 + $0x18] sm:$0xff]   ;;  %v5002_v22 = vld [vmem:[%s5579_s22 + $0x20] sm:$0xff]   ;;  %4670 = vmatprep.subr.bf16.mxu1 %v5010_v27  ;;  %s7218_s0 = smov 96   ;;  %s3938_s17 = sshll.u32 %s5640_s16, 7 }
  0x27   : > { %v5003_v23 = vld [vmem:[%s5579_s22 + $0x28] sm:$0xff]   ;;  %v5004_v24 = vld [vmem:[%s5579_s22 + $0x30] sm:$0xff]   ;;  %v5005_v25 = vld [vmem:[%s5579_s22 + $0x38] sm:$0xff]   ;;  %4671 = vmatpush3.bf16.msra.mxu1 %v5010_v27  ;;  %s5986_s21 = scalar_lea.vmem [#allocation4], %s3938_s17  ;;  %s5456_s15 = smov 32  }
  0x28   : > { %v5012_v29 = vld [vmem:[%s5624_s10 + $0x18] sm:$0xff]   ;;  %4672 = vmatprep.subr.bf16.mxu1 %v5011_v28  ;;  %v5013_v30 = vld [vmem:[%s5624_s10 + $0x20] sm:$0xff]   ;;  %v5014_v31 = vld [vmem:[%s5624_s10 + $0x28] sm:$0xff]   ;;  %s7223_s17 = smov 64   ;;  %s5346_s30 = sshll.u32 %s5457_s18, 4  ;;  %s5347_s30 = int_to_ptr.vmem [resolvable:$false] %s5346_s30 }
  0x29   : > { %v5015_v32 = vld [vmem:[%s5624_s10 + $0x30] sm:$0xff]   ;;  %v5016_v33 = vld [vmem:[%s5624_s10 + $0x38] sm:$0xff]   ;;  %v5664_v43 = vld [vmem:[%s5645_s20] sm:$0xff]  ;;  %s5348_s8 = scalar_lea.vmem %s5347_s30, 8192 }
  0x2a   : > { %v5658_v39 = vld [vmem:[%s5645_s20 + $0x10] sm:$0xff]  ;;  %v5673_v53 = vld [vmem:[%s5645_s20 + $0x18] sm:$0xff]  ;;  %v5680_v54 = vld [vmem:[%s5645_s20 + $0x8] sm:$0xff] }
  0x2b   : > { %4673 = vmatpush3.bf16.msra.mxu1 %v5011_v28  ;;  %v5700_v61 = vld [vmem:[%s5645_s20 + $0x30] sm:$0xff]  ;;  %v764_v0 = vld [vmem:[%s7203_s3 + $0x28] sm:$0xff] }
  0x2c   : > { %4639 = vmatpush3.bf16.xpose.msra.mxu0 %v562_v4  ;;  %4674 = vmatprep.subr.bf16.mxu1 %v5012_v29 }
  0x2d   : > { %4894 = vmatprep.subr.msk.bf16.mxu0 %vm533_vm0, %v4992_v3  ;;  %v5708_v3 = vld [vmem:[%s5645_s20 + $0x38] sm:$0xff] }
  0x2f   : > { %4675 = vmatpush3.bf16.msra.mxu1 %v5012_v29 }
  0x30   : > { %4676 = vmatprep.subr.bf16.mxu1 %v5013_v30 }
  0x33   : > { %4677 = vmatpush3.bf16.msra.mxu1 %v5013_v30  ;;  %v5756_v30 = vld [vmem:[%s5645_s20 + $0x40] sm:$0xff] }
  0x34   : > { %4641 = vmatpush3.bf16.xpose.msra.mxu0 %v565_v9  ;;  %4678 = vmatprep.subr.bf16.mxu1 %v5014_v31 }
  0x35   : > { %4895 = vmatprep.subr.msk.bf16.mxu0 %vm533_vm0, %v4993_v6 }
  0x37   : > { %4679 = vmatpush3.bf16.msra.mxu1 %v5014_v31 }
  0x38   : > { %4680 = vmatprep.subr.bf16.mxu1 %v5015_v32 }
  0x3b   : > { %4681 = vmatpush3.bf16.msra.mxu1 %v5015_v32 }
  0x3c   : > { %4643 = vmatpush3.bf16.xpose.msra.mxu0 %v568_v10  ;;  %4682 = vmatprep.subr.bf16.mxu1 %v5016_v33 }
  0x3d   : > { %4896 = vmatprep.subr.msk.bf16.mxu0 %vm533_vm0, %v4994_v7 }
  0x3f   : > { %4683 = vmatpush3.bf16.msra.mxu1 %v5016_v33  ;;  %v5759_v33 = vld [vmem:[%s5645_s20 + $0x48] sm:$0xff] }
  0x44   : > { %4645 = vmatpush3.bf16.xpose.msra.mxu0 %v571_v11  ;;  %v5717_v11 = vld [vmem:[%s5645_s20 + $0x28] sm:$0xff] }
  0x45   : > { %4897 = vmatprep.subr.msk.bf16.mxu0 %vm533_vm0, %v4995_v8  ;;  %v5714_v8 = vld [vmem:[%s5645_s20 + $0x20] sm:$0xff] }
  0x4c   : > { %4647 = vmatpush3.bf16.xpose.msra.mxu0 %v574_v13  ;;  %v769_v13 = vld [vmem:[%s7203_s3 + $0x50] sm:$0xff] }
  0x4d   : > { %4898 = vmatprep.subr.msk.bf16.mxu0 %vm533_vm0, %v4996_v15  ;;  %v767_v15 = vld [vmem:[%s7203_s3 + $0x40] sm:$0xff] }
  0x54   : > { %4649 = vmatpush3.bf16.xpose.msra.mxu0 %v577_v16 }
  0x55   : > { %4899 = vmatprep.subr.msk.bf16.mxu0 %vm533_vm0, %v4997_v17 }
  0x5c   : > { %4651 = vmatpush3.bf16.xpose.msra.mxu0 %v580_v18  ;;  %v770_v18 = vld [vmem:[%s7203_s3 + $0x58] sm:$0xff] }
  0x63   : > { %4653 = vmatmul.mubr.msk.bf16.vlgmr.msra.gmra.mrb[0].mxu0 %vm533_vm0, %v4999_v19  ;;  %v5742_v19 = vld [vmem:[%s5645_s20 + $0x50] sm:$0xff] }
  0x64   : > { %4656 = vmatprep.mubr.msk.bf16.mxu0 %vm533_vm0, %v5000_v20 }
  0x6b   : > { %4657 = vmatmul.mubr.msk.bf16.gmra.mrb[4].mxu0 %vm533_vm0, %v5001_v21 }
  0x6c   : > { %4660 = vmatprep.mubr.msk.bf16.mxu0 %vm533_vm0, %v5002_v22  ;;  %v768_v22 = vld [vmem:[%s7203_s3 + $0x48] sm:$0xff] }
  0x73   : > { %4661 = vmatmul.mubr.msk.bf16.gmra.mrb[8].mxu0 %vm533_vm0, %v5003_v23 }
  0x74   : > { %4664 = vmatprep.mubr.msk.bf16.mxu0 %vm533_vm0, %v5004_v24 }
  0x7b   : > { %4665 = vmatmul.mubr.msk.bf16.gmra.mrb[12].mxu0 %vm533_vm0, %v5005_v25  ;;  %v5749_v25 = vld [vmem:[%s5645_s20 + $0x58] sm:$0xff] }
  0x98   : > { %v5634_v34 = vpop.permute.xlu0 %1287 }
  0x99   : > { %4900 = vmatprep.subr.msk.bf16.mxu1 %vm533_vm0, %v5634_v34 }
 0x136   : > { %v4654_v37 = vpop.f32.mrb[0].mxu0 }
 0x137   : > { %v777_v40 = vadd.f32 %v4654_v37, %v761_v35  ;;  %v616_v41 = vpop.f32.mrb[1].mxu0 }
 0x138   : > { %v775_v44 = vadd.f32 %v759_v36, %v616_v41  ;;  %v4655_v45 = vpop.f32.mrb[2].mxu0  ;;  %v773_v36 = vld [vmem:[%s7203_s3 + $0x70] sm:$0xff] }
 0x139   : > { %v4325_v46 = vpack.c.bf16 %v4655_v45, %v4654_v37  ;;  %v778_v47 = vadd.f32 %v4655_v45, %v762_v38  ;;  %v619_v48 = vpop.f32.mrb[3].mxu0  ;;  %v5667_v49 = vadd.f32 %v5658_v39, %v777_v40  ;;  %v771_v40 = vld [vmem:[%s7203_s3 + $0x60] sm:$0xff] }
 0x13a   : > { %v4320_v50 = vpack.c.bf16 %v619_v48, %v616_v41  ;;  %v776_v51 = vadd.f32 %v760_v42, %v619_v48  ;;  %v5670_v52 = vadd.f32 %v5664_v43, %v775_v44  ;;  %v5781_v42 = vld [vmem:[%s5645_s20 + $0x70] sm:$0xff] }
 0x13b   : > { %4477 = vst [vmem:[%s5675_s1 + $0x8] sm:$0xff] %v4325_v46   ;;  %827 = vmax.xlane.f32.xlu1 %v5667_v49  ;;  %v5688_v56 = vadd.f32 %v5673_v53, %v778_v47 }
 0x13c   : > { %4321 = vst [vmem:[%s5675_s1] sm:$0xff] %v4320_v50   ;;  %823 = vmax.xlane.f32.xlu0 %v5670_v52  ;;  %v5694_v59 = vadd.f32 %v5680_v54, %v776_v51  ;;  %v5789_v50 = vld [vmem:[%s5645_s20 + $0x60] sm:$0xff] }
 0x13e   : > { %v4658_v58 = vpop.f32.mrb[4].mxu0 }
 0x13f   : > { %v781_v62 = vadd.f32 %v4658_v58, %v765_v55  ;;  %829 = vmax.xlane.f32.xlu1 %v5688_v56  ;;  %v632_v63 = vpop.f32.mrb[5].mxu0 }
 0x140   : > { %v779_v1 = vadd.f32 %v763_v57, %v632_v63  ;;  %825 = vmax.xlane.f32.xlu0 %v5694_v59  ;;  %v4659_v2 = vpop.f32.mrb[6].mxu0 }
 0x141   : > { %v4335_v4 = vpack.c.bf16 %v4659_v2, %v4658_v58  ;;  %v782_v5 = vadd.f32 %v4659_v2, %v766_v60  ;;  %v5711_v6 = vadd.f32 %v5700_v61, %v781_v62  ;;  %v635_v7 = vpop.f32.mrb[7].mxu0  ;;  %v5008_v60 = vld [vmem:[%s5568_s19 + $0x18] sm:$0xff]   ;;  %v5017_v62 = vld [vmem:[%s5568_s19 + $0x10] sm:$0xff]  }
 0x142   : > { %v4330_v9 = vpack.c.bf16 %v635_v7, %v632_v63  ;;  %v780_v10 = vadd.f32 %v764_v0, %v635_v7  ;;  %v5729_v14 = vadd.f32 %v5714_v8, %v779_v1  ;;  %v774_v63 = vld [vmem:[%s7203_s3 + $0x78] sm:$0xff]  ;;  %v772_v1 = vld [vmem:[%s7203_s3 + $0x68] sm:$0xff] }
 0x143   : > { %4479 = vst [vmem:[%s5675_s1 + $0x18] sm:$0xff] %v4335_v4   ;;  %v5721_v12 = vadd.f32 %v5708_v3, %v782_v5  ;;  %v5809_v2 = vld [vmem:[%s5645_s20 + $0x78] sm:$0xff]  ;;  %v5815_v7 = vld [vmem:[%s5645_s20 + $0x68] sm:$0xff] }
 0x144   : > { %835 = vmax.xlane.f32.xlu0 %v5711_v6  ;;  %4478 = vst [vmem:[%s5675_s1 + $0x10] sm:$0xff] %v4330_v9   ;;  %v5736_v16 = vadd.f32 %v5717_v11, %v780_v10  ;;  %v5822_v10 = vpop.permute.xlu1 %1289 }
 0x145   : > { %837 = vmax.xlane.f32.xlu1 %v5721_v12 }
 0x146   : > { %v4662_v17 = vpop.f32.mrb[8].mxu0 }
 0x147   : > { %v785_v20 = vadd.f32 %v4662_v17, %v769_v13  ;;  %v648_v21 = vpop.f32.mrb[9].mxu0 }
 0x148   : > { %v783_v23 = vadd.f32 %v767_v15, %v648_v21  ;;  %831 = vmax.xlane.f32.xlu0 %v5729_v14  ;;  %v4663_v24 = vpop.f32.mrb[10].mxu0 }
 0x149   : > { %v4345_v26 = vpack.c.bf16 %v4663_v24, %v4662_v17  ;;  %v786_v27 = vadd.f32 %v4663_v24, %v770_v18  ;;  %833 = vmax.xlane.f32.xlu1 %v5736_v16  ;;  %v5753_v28 = vadd.f32 %v5742_v19, %v785_v20  ;;  %v651_v29 = vpop.f32.mrb[11].mxu0 }
 0x14a   : > { %v4340_v31 = vpack.c.bf16 %v651_v29, %v648_v21  ;;  %v784_v32 = vadd.f32 %v768_v22, %v651_v29  ;;  %v5771_v37 = vadd.f32 %v5756_v30, %v783_v23 }
 0x14b   : > { %4481 = vst [vmem:[%s5675_s1 + $0x28] sm:$0xff] %v4345_v26   ;;  %v5763_v35 = vadd.f32 %v5749_v25, %v786_v27 }
 0x14c   : > { %843 = vmax.xlane.f32.xlu0 %v5753_v28  ;;  %4480 = vst [vmem:[%s5675_s1 + $0x20] sm:$0xff] %v4340_v31   ;;  %v5775_v38 = vadd.f32 %v5759_v33, %v784_v32  ;;  %v5018_v32 = vld [vmem:[%s5568_s19 + $0x28] sm:$0xff]  }
 0x14d   : > { %845 = vmax.xlane.f32.xlu1 %v5763_v35 }
 0x14e   : > { %v4666_v41 = vpop.f32.mrb[12].mxu0 }
 0x14f   : > { %v789_v44 = vadd.f32 %v4666_v41, %v773_v36  ;;  %v664_v45 = vpop.f32.mrb[13].mxu0  ;;  %v5019_v36 = vld [vmem:[%s5568_s19 + $0x20] sm:$0xff]  }
 0x150   : > { %839 = vmax.xlane.f32.xlu0 %v5771_v37  ;;  %v787_v46 = vadd.f32 %v771_v40, %v664_v45  ;;  %v4667_v47 = vpop.f32.mrb[14].mxu0 }
 0x151   : > { %841 = vmax.xlane.f32.xlu1 %v5775_v38  ;;  %v5786_v48 = vadd.f32 %v5781_v42, %v789_v44  ;;  %v4355_v51 = vpack.c.bf16 %v4667_v47, %v4666_v41  ;;  %v667_v55 = vpop.f32.mrb[15].mxu0  ;;  %v790_v0 = vadd.f32 %v4667_v47, %v774_v63 }
 0x152   : > { %v4350_v57 = vpack.c.bf16 %v667_v55, %v664_v45  ;;  %v5794_v58 = vadd.f32 %v5789_v50, %v787_v46  ;;  %v788_v4 = vadd.f32 %v772_v1, %v667_v55 }
 0x153   : > { %4483 = vst [vmem:[%s5675_s1 + $0x38] sm:$0xff] %v4355_v51   ;;  %v5812_v5 = vadd.f32 %v5809_v2, %v790_v0 }
 0x154   : > { %851 = vmax.xlane.f32.xlu0 %v5786_v48  ;;  %4482 = vst [vmem:[%s5675_s1 + $0x30] sm:$0xff] %v4350_v57   ;;  %v5819_v9 = vadd.f32 %v5815_v7, %v788_v4 }
 0x158   : > { %847 = vmax.xlane.f32.xlu0 %v5794_v58 }
 0x162   : > { %1293 = vrot.lane.b32.xlu1 %v5008_v60, %s7218_s0 }
 0x16e   : > { %1291 = vrot.lane.b32.xlu0 %v5017_v62, %s7218_s0 }
 0x186   : > { %853 = vmax.xlane.f32.xlu1 %v5812_v5 }
 0x18a   : > { %849 = vmax.xlane.f32.xlu1 %v5819_v9 }
 0x1c8   : > { %v828_v13 = vpop.xlane.xlu1 %827 }
 0x1c9   : > { %v857_v15 = vsub.f32 %v5667_v49, %v828_v13  ;;  %v824_v17 = vpop.xlane.xlu0 %823 }
 0x1ca   : > { %v855_v18 = vsub.f32 %v5670_v52, %v824_v17 }
 0x1cb   : > { %v875_v20 = vmul.f32 1.442695, %v857_v15 }
 0x1cc   : > { %v871_v21 = vmul.f32 1.442695, %v855_v18  ;;  %v830_v22 = vpop.xlane.xlu1 %829 }
 0x1cd   : > { %5086 = vpow2.f32 %v875_v20  ;;  %v858_v23 = vsub.f32 %v5688_v56, %v830_v22  ;;  %v826_v24 = vpop.xlane.xlu0 %825 }
 0x1ce   : > { %v856_v26 = vsub.f32 %v5694_v59, %v826_v24  ;;  %5088 = vpow2.f32 %v871_v21 }
 0x1cf   : > { %v877_v27 = vmul.f32 1.442695, %v858_v23 }
 0x1d0   : > { %v873_v29 = vmul.f32 1.442695, %v856_v26 }
 0x1d1   : > { %5090 = vpow2.f32 %v877_v27  ;;  %v836_v59 = vpop.xlane.xlu0 %835 }
 0x1d2   : > { %5092 = vpow2.f32 %v873_v29  ;;  %v838_v44 = vpop.xlane.xlu1 %837  ;;  %v861_v47 = vsub.f32 %v5711_v6, %v836_v59 }
 0x1d3   : > { %v862_v63 = vsub.f32 %v5721_v12, %v838_v44 }
 0x1d4   : > { %v883_v57 = vmul.f32 1.442695, %v861_v47 }
 0x1d5   : > { %v832_v40 = vpop.xlane.xlu0 %831  ;;  %v885_v15 = vmul.f32 1.442695, %v862_v63  ;;  %v5026_v63 = vld [vmem:[%s5579_s22 + $0x20] sm:$0xff]  }
 0x1d6   : > { %v834_v46 = vpop.xlane.xlu1 %833  ;;  %v859_v51 = vsub.f32 %v5729_v14, %v832_v40  ;;  %5094 = vpow2.f32 %v883_v57  ;;  %v5021_v57 = vld [vmem:[%s5568_s19 + $0x38] sm:$0xff]  }
 0x1d7   : > { %v5828_v49 = vpop.eup %5086  ;;  %v860_v60 = vsub.f32 %v5736_v16, %v834_v46 }
 0x1d8   : > { %907 = vadd.xlane.f32.xlu0 %v5828_v49  ;;  %v5831_v52 = vpop.eup %5088  ;;  %v879_v0 = vmul.f32 1.442695, %v859_v51  ;;  %v5020_v51 = vld [vmem:[%s5568_s19 + $0x30] sm:$0xff]  }
 0x1d9   : > { %v844_v41 = vpop.xlane.xlu0 %843  ;;  %v881_v1 = vmul.f32 1.442695, %v860_v60  ;;  %v5024_v60 = vld [vmem:[%s5579_s22 + $0x10] sm:$0xff]  }
 0x1da   : > { %v846_v62 = vpop.xlane.xlu1 %845  ;;  %5096 = vpow2.f32 %v879_v0  ;;  %v865_v17 = vsub.f32 %v5753_v28, %v844_v41  ;;  %v5025_v0 = vld [vmem:[%s5579_s22 + $0x18] sm:$0xff]  }
 0x1db   : > { %v5833_v31 = vpop.eup %5090  ;;  %5098 = vpow2.f32 %v881_v1  ;;  %v866_v28 = vsub.f32 %v5763_v35, %v846_v62  ;;  %v5023_v62 = vld [vmem:[%s5579_s22 + $0x8] sm:$0xff]   ;;  %v5028_v1 = vld [vmem:[%s5579_s22 + $0x30] sm:$0xff]  }
 0x1dc   : > { %903 = vadd.xlane.f32.xlu0 %v5831_v52  ;;  %909 = vadd.xlane.f32.xlu1 %v5833_v31  ;;  %v5837_v56 = vpop.eup %5092  ;;  %5100 = vpow2.f32 %v885_v15  ;;  %v891_v16 = vmul.f32 1.442695, %v865_v17 }
 0x1dd   : > { %v840_v45 = vpop.xlane.xlu0 %839  ;;  %v893_v26 = vmul.f32 1.442695, %v866_v28 }
 0x1de   : > { %v842_v6 = vpop.xlane.xlu1 %841  ;;  %v863_v20 = vsub.f32 %v5771_v37, %v840_v45 }
 0x1df   : > { %v864_v27 = vsub.f32 %v5775_v38, %v842_v6 }
 0x1e0   : > { %905 = vadd.xlane.f32.xlu1 %v5837_v56  ;;  %v5854_v22 = vpop.eup %5094 }
 0x1e1   : > { %v852_v55 = vpop.xlane.xlu0 %851 }
 0x1e2   : > { %v869_v4 = vsub.f32 %v5786_v48, %v852_v55  ;;  %v5852_v21 = vpop.permute.xlu1 %1293  ;;  %v887_v48 = vmul.f32 1.442695, %v863_v20  ;;  %v5022_v55 = vld [vmem:[%s5579_s22] sm:$0xff]  }
 0x1e4   : > { %v899_v14 = vmul.f32 1.442695, %v869_v4  ;;  %v5858_v23 = vpop.eup %5096  ;;  %v5027_v4 = vld [vmem:[%s5579_s22 + $0x28] sm:$0xff]  }
 0x1e5   : > { %v848_v13 = vpop.xlane.xlu0 %847  ;;  %v5860_v24 = vpop.eup %5098 }
 0x1e6   : > { %v867_v18 = vsub.f32 %v5794_v58, %v848_v13  ;;  %5102 = vpow2.f32 %v899_v14  ;;  %v5866_v59 = vpop.eup %5100  ;;  %v5029_v13 = vld [vmem:[%s5579_s22 + $0x38] sm:$0xff]  }
 0x1e7   : > { %5104 = vpow2.f32 %v891_v16 }
 0x1e8   : > { %v895_v12 = vmul.f32 1.442695, %v867_v18 }
 0x1e9   : > { %v1292_v15 = vpop.permute.xlu0 %1291 }
 0x1ea   : > { %5106 = vpow2.f32 %v895_v12 }
 0x1eb   : > { %5108 = vpow2.f32 %v887_v48 }
 0x1f1   : > { %1297 = vrot.lane.b32.xlu1 %v5018_v32, %s7218_s0  ;;  %v5868_v32 = vpop.eup %5102 }
 0x1f2   : > { %1295 = vrot.lane.b32.xlu0 %v5019_v36, %s7218_s0  ;;  %v5873_v40 = vpop.eup %5104 }
 0x1f4   : > { %v5875_v41 = vpop.eup %5106 }
 0x1f5   : > { %v5879_v44 = vpop.eup %5108 }
 0x211   : > { %915 = vadd.xlane.f32.xlu0 %v5854_v22 }
 0x213   : > { %v854_v58 = vpop.xlane.xlu1 %853 }
 0x214   : > { %v870_v37 = vsub.f32 %v5812_v5, %v854_v58  ;;  %v889_v5 = vmul.f32 1.442695, %v864_v27 }
 0x215   : > { %913 = vadd.xlane.f32.xlu0 %v5860_v24  ;;  %911 = vadd.xlane.f32.xlu1 %v5858_v23 }
 0x216   : > { %v901_v29 = vmul.f32 1.442695, %v870_v37 }
 0x217   : > { %v850_v35 = vpop.xlane.xlu1 %849 }
 0x218   : > { %5110 = vpow2.f32 %v901_v29  ;;  %v868_v36 = vsub.f32 %v5819_v9, %v850_v35  ;;  %v1328_v35 = vsel %vm533_vm0, %v5634_v34, 0 }
 0x219   : > { %931 = vadd.xlane.f32.xlu0 %v5868_v32  ;;  %917 = vadd.xlane.f32.xlu1 %v5866_v59  ;;  %5112 = vpow2.f32 %v893_v26 }
 0x21a   : > { %5114 = vpow2.f32 %v889_v5  ;;  %v897_v38 = vmul.f32 1.442695, %v868_v36 }
 0x21c   : > { %5116 = vpow2.f32 %v897_v38 }
 0x21d   : > { %927 = vadd.xlane.f32.xlu0 %v5875_v41  ;;  %923 = vadd.xlane.f32.xlu1 %v5873_v40 }
 0x221   : > { %919 = vadd.xlane.f32.xlu1 %v5879_v44 }
 0x222   : > { %v5882_v45 = vpop.eup %5110 }
 0x223   : > { %933 = vadd.xlane.f32.xlu0 %v5882_v45  ;;  %v5885_v9 = vpop.eup %5112 }
 0x224   : > { %v5888_v46 = vpop.eup %5114 }
 0x225   : > { %925 = vadd.xlane.f32.xlu1 %v5885_v9 }
 0x226   : > { %v5891_v47 = vpop.eup %5116 }
 0x229   : > { %921 = vadd.xlane.f32.xlu1 %v5888_v46 }
 0x22d   : > { %929 = vadd.xlane.f32.xlu1 %v5891_v47 }
 0x239   : > { %1299 = vrot.lane.b32.xlu0 %v5020_v51, %s7218_s0 }
 0x23d   : > { %1231 = vrot.lane.b32.xlu0 %v5022_v55, %s7218_s0 }
 0x23e   : > { %1301 = vrot.lane.b32.xlu1 %v5021_v57, %s7218_s0 }
 0x241   : > { %1235 = vrot.lane.b32.xlu0 %v5024_v60, %s7218_s0 }
 0x242   : > { %1233 = vrot.lane.b32.xlu1 %v5023_v62, %s7218_s0 }
 0x245   : > { %1239 = vrot.lane.b32.xlu0 %v5026_v63, %s7218_s0 }
 0x246   : > { %1237 = vrot.lane.b32.xlu1 %v5025_v0, %s7218_s0 }
 0x249   : > { %1243 = vrot.lane.b32.xlu0 %v5028_v1, %s7218_s0 }
 0x24a   : > { %1241 = vrot.lane.b32.xlu1 %v5027_v4, %s7218_s0 }
 0x24e   : > { %1245 = vrot.lane.b32.xlu1 %v5029_v13, %s7218_s0 }
 0x265   : > { %v908_v17 = vpop.xlane.xlu0 %907 }
 0x269   : > { %v904_v6 = vpop.xlane.xlu0 %903  ;;  %v910_v14 = vpop.xlane.xlu1 %909 }
 0x26a   : > { %5118 = vrcp.f32 %v910_v14 }
 0x26b   : > { %5120 = vrcp.f32 %v904_v6 }
 0x26c   : > { %5122 = vrcp.f32 %v908_v17 }
 0x26d   : > { %v906_v18 = vpop.xlane.xlu1 %905  ;;  %v1296_v34 = vpop.permute.xlu0 %1295 }
 0x26e   : > { %5124 = vrcp.f32 %v906_v18 }
 0x274   : > { %v5119_v16 = vpop.eup %5118 }
 0x275   : > { %v5121_v20 = vpop.eup %5120  ;;  %v954_v48 = vmul.f32 %v5119_v16, %v5833_v31  ;;  %v1331_v31 = vsel %vm533_vm0, %v5822_v10, 0 }
 0x276   : > { %v5123_v12 = vpop.eup %5122  ;;  %v951_v58 = vmul.f32 %v5121_v20, %v5831_v52  ;;  %v1334_v52 = vsel %vm533_vm0, %v1292_v15, 0 }
 0x277   : > { %v953_v26 = vmul.f32 %v5123_v12, %v5828_v49  ;;  %v1337_v49 = vsel %vm533_vm0, %v5852_v21, 0 }
 0x278   : > { %v5125_v28 = vpop.eup %5124 }
 0x279   : > { %v952_v37 = vmul.f32 %v5125_v28, %v5837_v56  ;;  %v968_v29 = vpack.c.bf16 %v954_v48, %v953_v26  ;;  %v1298_v56 = vpop.permute.xlu1 %1297 }
 0x27a   : > { %v1343_v55 = vsel %vm533_vm0, %v1298_v56, 0 }
 0x27b   : > { %v967_v27 = vpack.c.bf16 %v952_v37, %v951_v58 }
 0x27d   : > { %4684 = vmatprep.mubr.bf16.mxu1 %v967_v27 }
 0x27e   : > { %4685 = vmatmul.mubr.bf16.vlgmr.msra.gmra.mrb[0].mxu1 %v968_v29 }
 0x27f   : > { %4701 = vmatpush3.bf16.xpose.msra.mxu1 %v1328_v35 }
 0x280   : > { %4901 = vmatprep.subr.msk.bf16.mxu1 %vm533_vm0, %v5822_v10  ;;  %v1340_v10 = vsel %vm533_vm0, %v1296_v34, 0 }
 0x287   : > { %4703 = vmatpush3.bf16.xpose.msra.mxu1 %v1331_v31 }
 0x288   : > { %4902 = vmatprep.subr.msk.bf16.mxu1 %vm533_vm0, %v1292_v15 }
 0x28f   : > { %4705 = vmatpush3.bf16.xpose.msra.mxu1 %v1334_v52 }
 0x290   : > { %4903 = vmatprep.subr.msk.bf16.mxu1 %vm533_vm0, %v5852_v21 }
 0x297   : > { %4707 = vmatpush3.bf16.xpose.msra.mxu1 %v1337_v49 }
 0x298   : > { %4904 = vmatprep.subr.msk.bf16.mxu1 %vm533_vm0, %v1296_v34 }
 0x29e   : > { %v916_v5 = vpop.xlane.xlu0 %915 }
 0x29f   : > { %4709 = vmatpush3.bf16.xpose.msra.mxu1 %v1340_v10 }
 0x2a0   : > { %4905 = vmatprep.subr.msk.bf16.mxu1 %vm533_vm0, %v1298_v56 }
 0x2a2   : > { %v914_v36 = vpop.xlane.xlu0 %913  ;;  %v912_v38 = vpop.xlane.xlu1 %911 }
 0x2a3   : > { %5126 = vrcp.f32 %v914_v36 }
 0x2a4   : > { %5128 = vrcp.f32 %v912_v38 }
 0x2a5   : > { %5130 = vrcp.f32 %v916_v5 }
 0x2a6   : > { %v932_v51 = vpop.xlane.xlu0 %931  ;;  %v918_v21 = vpop.xlane.xlu1 %917 }
 0x2a7   : > { %4711 = vmatpush3.bf16.xpose.msra.mxu1 %v1343_v55  ;;  %5132 = vrcp.f32 %v918_v21  ;;  %v5031_v21 = vld [vmem:[%s5624_s10 + $0x8] sm:$0xff]  }
 0x2a8   : > { %1810 = vrot.lane.b32.xlu1 %v5031_v21, %s7218_s0 }
 0x2aa   : > { %v924_v57 = vpop.xlane.xlu1 %923  ;;  %v928_v60 = vpop.xlane.xlu0 %927 }
 0x2ad   : > { %v5127_v62 = vpop.eup %5126 }
 0x2ae   : > { %v5129_v63 = vpop.eup %5128  ;;  %v920_v0 = vpop.xlane.xlu1 %919  ;;  %v956_v1 = vmul.f32 %v5127_v62, %v5860_v24  ;;  %v5034_v62 = vld [vmem:[%s5624_s10 + $0x20] sm:$0xff]  }
 0x2af   : > { %v955_v4 = vmul.f32 %v5129_v63, %v5858_v23  ;;  %v5131_v13 = vpop.eup %5130  ;;  %v5035_v63 = vld [vmem:[%s5624_s10 + $0x28] sm:$0xff]  }
 0x2b0   : > { %v934_v15 = vpop.xlane.xlu0 %933  ;;  %v957_v18 = vmul.f32 %v5131_v13, %v5854_v22  ;;  %v5036_v13 = vld [vmem:[%s5624_s10 + $0x30] sm:$0xff]  }
 0x2b1   : > { %v969_v17 = vpack.c.bf16 %v956_v1, %v955_v4  ;;  %v5133_v6 = vpop.eup %5132 }
 0x2b2   : > { %v926_v14 = vpop.xlane.xlu1 %925  ;;  %v958_v16 = vmul.f32 %v5133_v6, %v5866_v59  ;;  %v5039_v6 = vld [vmem:[%s5568_s19] sm:$0xff]  }
 0x2b3   : > { %4688 = vmatprep.mubr.bf16.mxu1 %v969_v17  ;;  %5134 = vrcp.f32 %v926_v14  ;;  %v5038_v17 = vld [vmem:[%s5568_s19 + $0x8] sm:$0xff]   ;;  %v5982_v14 = vld [vmem:[%s7205_s5] ss:$0 sm:$0xff] }
 0x2b4   : > { %v1300_v20 = vpop.permute.xlu0 %1299  ;;  %5136 = vrcp.f32 %v920_v0  ;;  %v970_v12 = vpack.c.bf16 %v958_v16, %v957_v18 }
 0x2b5   : > { %4906 = vmatprep.subr.msk.bf16.mxu1 %vm533_vm0, %v1300_v20  ;;  %v1346_v24 = vsel %vm533_vm0, %v1300_v20, 0  ;;  %5138 = vrcp.f32 %v924_v57 }
 0x2b6   : > { %v922_v23 = vpop.xlane.xlu1 %921  ;;  %4713 = vmatpush3.bf16.xpose.msra.mxu1 %v1346_v24 }
 0x2b7   : > { %4689 = vmatmul.mubr.bf16.gmra.mrb[4].mxu1 %v970_v12  ;;  %5140 = vrcp.f32 %v922_v23 }
 0x2b8   : > { %5142 = vrcp.f32 %v928_v60 }
 0x2ba   : > { %v930_v28 = vpop.xlane.xlu1 %929 }
 0x2bb   : > { %5144 = vrcp.f32 %v930_v28 }
 0x2bc   : > { %5146 = vrcp.f32 %v934_v15  ;;  %v5037_v15 = vld [vmem:[%s5624_s10 + $0x38] sm:$0xff]  }
 0x2bd   : > { %v5135_v22 = vpop.eup %5134  ;;  %5148 = vrcp.f32 %v932_v51  ;;  %v1232_v51 = vpop.permute.xlu0 %1231 }
 0x2be   : > { %v1302_v59 = vpop.permute.xlu1 %1301  ;;  %v5137_v48 = vpop.eup %5136  ;;  %v962_v27 = vmul.f32 %v5135_v22, %v5885_v9 }
 0x2bf   : > { %4907 = vmatprep.subr.msk.bf16.mxu1 %vm533_vm0, %v1302_v59  ;;  %v1349_v58 = vsel %vm533_vm0, %v1302_v59, 0  ;;  %v5139_v37 = vpop.eup %5138  ;;  %v959_v29 = vmul.f32 %v5137_v48, %v5879_v44 }
 0x2c0   : > { %4715 = vmatpush3.bf16.xpose.msra.mxu1 %v1349_v58  ;;  %v961_v52 = vmul.f32 %v5139_v37, %v5873_v40 }
 0x2c1   : > { %v5141_v26 = vpop.eup %5140  ;;  %v1236_v55 = vpop.permute.xlu0 %1235 }
 0x2c2   : > { %v960_v35 = vmul.f32 %v5141_v26, %v5888_v46  ;;  %v5143_v31 = vpop.eup %5142  ;;  %v972_v56 = vpack.c.bf16 %v962_v27, %v961_v52 }
 0x2c3   : > { %v963_v10 = vmul.f32 %v5143_v31, %v5875_v41  ;;  %v1234_v41 = vpop.permute.xlu1 %1233 }
 0x2c4   : > { %v971_v49 = vpack.c.bf16 %v960_v35, %v959_v29 }
 0x2c5   : > { %v5145_v34 = vpop.eup %5144  ;;  %v1240_v60 = vpop.permute.xlu0 %1239 }
 0x2c6   : > { %v5147_v5 = vpop.eup %5146  ;;  %4692 = vmatprep.mubr.bf16.mxu1 %v971_v49  ;;  %v964_v36 = vmul.f32 %v5145_v34, %v5891_v47  ;;  %v5030_v47 = vld [vmem:[%s5624_s10] sm:$0xff]  }
 0x2c7   : > { %4693 = vmatmul.mubr.bf16.gmra.mrb[8].mxu1 %v972_v56  ;;  %v5149_v9 = vpop.eup %5148  ;;  %v966_v44 = vmul.f32 %v5147_v5, %v5882_v45  ;;  %1808 = vrot.lane.b32.xlu0 %v5030_v47, %s7218_s0  ;;  %v5033_v45 = vld [vmem:[%s5624_s10 + $0x18] sm:$0xff]   ;;  %v1238_v57 = vpop.permute.xlu1 %1237 }
 0x2c8   : > { %v973_v38 = vpack.c.bf16 %v964_v36, %v963_v10  ;;  %v965_v40 = vmul.f32 %v5149_v9, %v5868_v32  ;;  %v5032_v32 = vld [vmem:[%s5624_s10 + $0x10] sm:$0xff]   ;;  %1814 = vrot.lane.b32.xlu1 %v5033_v45, %s7218_s0 }
 0x2c9   : > { %v1244_v1 = vpop.permute.xlu0 %1243 }
 0x2ca   : > { %4696 = vmatprep.mubr.bf16.mxu1 %v973_v38  ;;  %v974_v46 = vpack.c.bf16 %v966_v44, %v965_v40 }
 0x2cb   : > { %1812 = vrot.lane.b32.xlu0 %v5032_v32, %s7218_s0  ;;  %v1242_v0 = vpop.permute.xlu1 %1241 }
 0x2cc   : > { %1818 = vrot.lane.b32.xlu1 %v5035_v63, %s7218_s0 }
 0x2cf   : > { %4697 = vmatmul.mubr.bf16.gmra.mrb[12].mxu1 %v974_v46  ;;  %1816 = vrot.lane.b32.xlu0 %v5034_v62, %s7218_s0  ;;  %v1246_v4 = vpop.permute.xlu1 %1245 }
 0x2d0   : > { %4716 = vmatprep.mubr.msk.bf16.mxu1 %vm533_vm0, %v1232_v51  ;;  %1822 = vrot.lane.b32.xlu1 %v5037_v15, %s7218_s0 }
 0x2d3   : > { %1820 = vrot.lane.b32.xlu0 %v5036_v13, %s7218_s0  ;;  %v4052_v13 = vld [vmem:[%s7203_s3 + $0x80] sm:$0xff] }
 0x2d4   : > { %2143 = vrot.lane.b32.xlu1 %v5038_v17, %s7210_s12 }
 0x2d7   : > { %4717 = vmatmul.mubr.msk.bf16.vlgmr.msra.gmra.mrb[16].mxu1 %vm533_vm0, %v1234_v41  ;;  %2141 = vrot.lane.b32.xlu0 %v5039_v6, %s7210_s12  ;;  %v4053_v6 = vld [vmem:[%s7203_s3 + $0x88] sm:$0xff] }
 0x2d8   : > { %4720 = vmatprep.mubr.msk.bf16.mxu1 %vm533_vm0, %v1236_v55 }
 0x2df   : > { %4721 = vmatmul.mubr.msk.bf16.gmra.mrb[20].mxu1 %vm533_vm0, %v1238_v57 }
 0x2e0   : > { %4724 = vmatprep.mubr.msk.bf16.mxu1 %vm533_vm0, %v1240_v60 }
 0x2e7   : > { %4725 = vmatmul.mubr.msk.bf16.gmra.mrb[24].mxu1 %vm533_vm0, %v1242_v0 }
 0x2e8   : > { %4728 = vmatprep.mubr.msk.bf16.mxu1 %vm533_vm0, %v1244_v1  ;;  %v4054_v1 = vld [vmem:[%s7203_s3 + $0x90] sm:$0xff] }
 0x2ef   : > { %4729 = vmatmul.mubr.msk.bf16.gmra.mrb[28].mxu1 %vm533_vm0, %v1246_v4 }
 0x31a   : > { %v1811_v48 = vpop.permute.xlu1 %1810 }
 0x339   : > { %v1809_v59 = vpop.permute.xlu0 %1808 }
 0x33a   : > { %4732 = vmatprep.subr.bf16.mxu0 %v1809_v59  ;;  %v1815_v37 = vpop.permute.xlu1 %1814 }
 0x33b   : > { %4733 = vmatpush3.bf16.msra.mxu0 %v1809_v59  ;;  %v4058_v59 = vld [vmem:[%s7203_s3 + $0xb0] sm:$0xff] }
 0x33c   : > { %4734 = vmatprep.subr.bf16.mxu0 %v1811_v48 }
 0x33d   : > { %v1813_v58 = vpop.permute.xlu0 %1812 }
 0x33e   : > { %v1819_v27 = vpop.permute.xlu1 %1818 }
 0x33f   : > { %4735 = vmatpush3.bf16.msra.mxu0 %v1811_v48 }
 0x340   : > { %4736 = vmatprep.subr.bf16.mxu0 %v1813_v58 }
 0x341   : > { %v1817_v26 = vpop.permute.xlu0 %1816 }
 0x342   : > { %v1823_v35 = vpop.permute.xlu1 %1822 }
 0x343   : > { %4737 = vmatpush3.bf16.msra.mxu0 %v1813_v58 }
 0x344   : > { %4738 = vmatprep.subr.bf16.mxu0 %v1815_v37 }
 0x345   : > { %v1821_v29 = vpop.permute.xlu0 %1820 }
 0x347   : > { %4739 = vmatpush3.bf16.msra.mxu0 %v1815_v37  ;;  %v4059_v37 = vld [vmem:[%s7203_s3 + $0xb8] sm:$0xff] }
 0x348   : > { %4740 = vmatprep.subr.bf16.mxu0 %v1817_v26 }
 0x349   : > { %v5998_v31 = vpop.permute.xlu0 %2141 }
 0x34b   : > { %4741 = vmatpush3.bf16.msra.mxu0 %v1817_v26 }
 0x34c   : > { %4742 = vmatprep.subr.bf16.mxu0 %v1819_v27 }
 0x34f   : > { %4743 = vmatpush3.bf16.msra.mxu0 %v1819_v27  ;;  %v4057_v27 = vld [vmem:[%s7203_s3 + $0xa8] sm:$0xff] }
 0x350   : > { %4744 = vmatprep.subr.bf16.mxu0 %v1821_v29 }
 0x351   : > { %v4686_v18 = vpop.f32.mrb[0].mxu1 }
 0x352   : > { %v1089_v16 = vadd.f32 %v4686_v18, %v5982_v14  ;;  %v1080_v20 = vpop.f32.mrb[1].mxu1 }
 0x353   : > { %v1081_v12 = vadd.f32 %v5982_v14, %v1080_v20  ;;  %v4687_v24 = vpop.f32.mrb[2].mxu1  ;;  %4745 = vmatpush3.bf16.msra.mxu0 %v1821_v29 }
 0x354   : > { %1145 = vst.msk [vmem:[%s5986_s21 + $0x10] sm:$0xff] %vm533_vm0, %v1089_v16  ;;  %v1092_v23 = vadd.f32 %v4687_v24, %v5982_v14  ;;  %v1083_v28 = vpop.f32.mrb[3].mxu1  ;;  %4746 = vmatprep.subr.bf16.mxu0 %v1823_v35  ;;  %v4055_v24 = vld [vmem:[%s7203_s3 + $0x98] sm:$0xff] }
 0x355   : > { %1143 = vst.msk [vmem:[%s5986_s21] sm:$0xff] %vm533_vm0, %v1081_v12  ;;  %v1084_v22 = vadd.f32 %v5982_v14, %v1083_v28 }
 0x356   : > { %1146 = vst.msk [vmem:[%s5986_s21 + $0x18] sm:$0xff] %vm533_vm0, %v1092_v23 }
 0x357   : > { %1144 = vst.msk [vmem:[%s5986_s21 + $0x8] sm:$0xff] %vm533_vm0, %v1084_v22  ;;  %4747 = vmatpush3.bf16.msra.mxu0 %v1823_v35 }
 0x358   : > { %4908 = vmatprep.subr.msk.bf16.mxu0 %vm533_vm0, %v5998_v31 }
 0x38a   : > { %v4690_v52 = vpop.f32.mrb[4].mxu1 }
 0x38b   : > { %v1105_v49 = vadd.f32 %v4690_v52, %v5982_v14  ;;  %v1096_v34 = vpop.f32.mrb[5].mxu1 }
 0x38c   : > { %v1097_v56 = vadd.f32 %v5982_v14, %v1096_v34  ;;  %v4691_v5 = vpop.f32.mrb[6].mxu1  ;;  %v4056_v34 = vld [vmem:[%s7203_s3 + $0xa0] sm:$0xff] }
 0x38d   : > { %1149 = vst.msk [vmem:[%s5986_s21 + $0x30] sm:$0xff] %vm533_vm0, %v1105_v49  ;;  %v1108_v10 = vadd.f32 %v4691_v5, %v5982_v14  ;;  %v1099_v36 = vpop.f32.mrb[7].mxu1 }
 0x38e   : > { %1147 = vst.msk [vmem:[%s5986_s21 + $0x20] sm:$0xff] %vm533_vm0, %v1097_v56  ;;  %v1100_v9 = vadd.f32 %v5982_v14, %v1099_v36 }
 0x38f   : > { %1150 = vst.msk [vmem:[%s5986_s21 + $0x38] sm:$0xff] %vm533_vm0, %v1108_v10 }
 0x390   : > { %1148 = vst.msk [vmem:[%s5986_s21 + $0x28] sm:$0xff] %vm533_vm0, %v1100_v9 }
 0x39a   : > { %v4694_v38 = vpop.f32.mrb[8].mxu1 }
 0x39b   : > { %v1121_v44 = vadd.f32 %v4694_v38, %v5982_v14  ;;  %v1112_v40 = vpop.f32.mrb[9].mxu1 }
 0x39c   : > { %v1113_v46 = vadd.f32 %v5982_v14, %v1112_v40  ;;  %v4695_v51 = vpop.f32.mrb[10].mxu1 }
 0x39d   : > { %1153 = vst.msk [vmem:[%s5986_s21 + $0x50] sm:$0xff] %vm533_vm0, %v1121_v44  ;;  %v1124_v41 = vadd.f32 %v4695_v51, %v5982_v14  ;;  %v1115_v55 = vpop.f32.mrb[11].mxu1 }
 0x39e   : > { %1151 = vst.msk [vmem:[%s5986_s21 + $0x40] sm:$0xff] %vm533_vm0, %v1113_v46  ;;  %v1116_v47 = vadd.f32 %v5982_v14, %v1115_v55  ;;  %v4061_v46 = vld [vmem:[%s7203_s3 + $0xc8] sm:$0xff] }
 0x39f   : > { %1154 = vst.msk [vmem:[%s5986_s21 + $0x58] sm:$0xff] %vm533_vm0, %v1124_v41 }
 0x3a0   : > { %1152 = vst.msk [vmem:[%s5986_s21 + $0x48] sm:$0xff] %vm533_vm0, %v1116_v47 }
 0x3a2   : > { %v4698_v21 = vpop.f32.mrb[12].mxu1 }
 0x3a3   : > { %v1137_v32 = vadd.f32 %v4698_v21, %v5982_v14  ;;  %v1128_v45 = vpop.f32.mrb[13].mxu1  ;;  %v4060_v21 = vld [vmem:[%s7203_s3 + $0xc0] sm:$0xff] }
 0x3a4   : > { %v1129_v57 = vadd.f32 %v5982_v14, %v1128_v45  ;;  %v4699_v60 = vpop.f32.mrb[14].mxu1 }
 0x3a5   : > { %1157 = vst.msk [vmem:[%s5986_s21 + $0x70] sm:$0xff] %vm533_vm0, %v1137_v32  ;;  %v1140_v62 = vadd.f32 %v4699_v60, %v5982_v14  ;;  %v1131_v63 = vpop.f32.mrb[15].mxu1 }
 0x3a6   : > { %1155 = vst.msk [vmem:[%s5986_s21 + $0x60] sm:$0xff] %vm533_vm0, %v1129_v57  ;;  %v1132_v0 = vadd.f32 %v5982_v14, %v1131_v63 }
 0x3a7   : > { %1158 = vst.msk [vmem:[%s5986_s21 + $0x78] sm:$0xff] %vm533_vm0, %v1140_v62 }
 0x3a8   : > { %1156 = vst.msk [vmem:[%s5986_s21 + $0x68] sm:$0xff] %vm533_vm0, %v1132_v0 }
 0x3aa   : > { %v4718_v4 = vpop.f32.mrb[16].mxu1 }
 0x3ab   : > { %v1548_v15 = vadd.f32 %v4718_v4, %v4054_v1  ;;  %v1385_v17 = vpop.f32.mrb[17].mxu1 }
 0x3ac   : > { %v4719_v14 = vpop.f32.mrb[18].mxu1  ;;  %v1546_v18 = vadd.f32 %v4052_v13, %v1385_v17 }
 0x3ad   : > { %v4365_v16 = vpack.c.bf16 %v4719_v14, %v4718_v4  ;;  %v1388_v20 = vpop.f32.mrb[19].mxu1  ;;  %v6048_v12 = vadd.f32 %v1548_v15, %v5658_v39  ;;  %v1549_v48 = vadd.f32 %v4719_v14, %v4055_v24  ;;  %v4065_v24 = vld [vmem:[%s7203_s3 + $0xe8] sm:$0xff] }
 0x3ae   : > { %v4360_v23 = vpack.c.bf16 %v1388_v20, %v1385_v17  ;;  %v1547_v28 = vadd.f32 %v4053_v6, %v1388_v20  ;;  %v6063_v39 = vadd.f32 %v1546_v18, %v5664_v43 }
 0x3af   : > { %4485 = vst [vmem:[%s5675_s1 + $0x48] sm:$0xff] %v4365_v16   ;;  %1598 = vmax.xlane.f32.xlu0 %v6048_v12  ;;  %v6074_v52 = vadd.f32 %v1549_v48, %v5673_v53  ;;  %v4062_v53 = vld [vmem:[%s7203_s3 + $0xd0] sm:$0xff] }
 0x3b0   : > { %4484 = vst [vmem:[%s5675_s1 + $0x40] sm:$0xff] %v4360_v23   ;;  %v6057_v22 = vadd.f32 %v1547_v28, %v5680_v54  ;;  %v5041_v16 = vld [vmem:[%s5568_s19 + $0x10] sm:$0xff]  }
 0x3b2   : > { %1596 = vmax.xlane.f32.xlu1 %v6057_v22  ;;  %v4722_v58 = vpop.f32.mrb[20].mxu1 }
 0x3b3   : > { %v1552_v26 = vadd.f32 %v4722_v58, %v4058_v59  ;;  %1594 = vmax.xlane.f32.xlu0 %v6063_v39  ;;  %v1401_v54 = vpop.f32.mrb[21].mxu1  ;;  %v6162_v59 = vpop.permute.xlu1 %2143 }
 0x3b4   : > { %v4723_v29 = vpop.f32.mrb[22].mxu1  ;;  %v1550_v9 = vadd.f32 %v4056_v34, %v1401_v54 }
 0x3b5   : > { %v4375_v43 = vpack.c.bf16 %v4723_v29, %v4722_v58  ;;  %v1553_v35 = vadd.f32 %v4723_v29, %v4059_v37  ;;  %v1404_v49 = vpop.f32.mrb[23].mxu1  ;;  %v6085_v36 = vadd.f32 %v1552_v26, %v5700_v61 }
 0x3b6   : > { %v4370_v56 = vpack.c.bf16 %v1404_v49, %v1401_v54  ;;  %v1551_v5 = vadd.f32 %v4057_v27, %v1404_v49 }
 0x3b7   : > { %4487 = vst [vmem:[%s5675_s1 + $0x58] sm:$0xff] %v4375_v43   ;;  %1600 = vmax.xlane.f32.xlu0 %v6074_v52  ;;  %v6082_v10 = vadd.f32 %v1553_v35, %v5708_v3  ;;  %v4063_v3 = vld [vmem:[%s7203_s3 + $0xd8] sm:$0xff] }
 0x3b8   : > { %4486 = vst [vmem:[%s5675_s1 + $0x50] sm:$0xff] %v4370_v56   ;;  %v6093_v38 = vadd.f32 %v1551_v5, %v5717_v11  ;;  %v6104_v11 = vadd.f32 %v1550_v9, %v5714_v8  ;;  %v4066_v8 = vld [vmem:[%s7203_s3 + $0xf0] sm:$0xff]  ;;  %v5043_v5 = vld [vmem:[%s5568_s19 + $0x20] sm:$0xff]  }
 0x3b9   : > { %1608 = vmax.xlane.f32.xlu1 %v6082_v10 }
 0x3ba   : > { %v4726_v44 = vpop.f32.mrb[24].mxu1 }
 0x3bb   : > { %v1556_v40 = vadd.f32 %v4726_v44, %v4062_v53  ;;  %1606 = vmax.xlane.f32.xlu0 %v6085_v36  ;;  %v1417_v61 = vpop.f32.mrb[25].mxu1 }
 0x3bc   : > { %v4727_v51 = vpop.f32.mrb[26].mxu1  ;;  %v1554_v62 = vadd.f32 %v4060_v21, %v1417_v61 }
 0x3bd   : > { %v4385_v41 = vpack.c.bf16 %v4727_v51, %v4726_v44  ;;  %v1557_v55 = vadd.f32 %v4727_v51, %v4063_v3  ;;  %1604 = vmax.xlane.f32.xlu1 %v6093_v38  ;;  %v1420_v47 = vpop.f32.mrb[27].mxu1  ;;  %v6115_v60 = vadd.f32 %v1556_v40, %v5742_v19  ;;  %v4064_v19 = vld [vmem:[%s7203_s3 + $0xe0] sm:$0xff] }
 0x3be   : > { %v4380_v32 = vpack.c.bf16 %v1420_v47, %v1417_v61  ;;  %v1555_v45 = vadd.f32 %v4061_v46, %v1420_v47  ;;  %v6131_v13 = vadd.f32 %v1554_v62, %v5756_v30  ;;  %v5040_v30 = vld [vmem:[%s5568_s19 + $0x18] sm:$0xff]  }
 0x3bf   : > { %4489 = vst [vmem:[%s5675_s1 + $0x68] sm:$0xff] %v4385_v41   ;;  %1602 = vmax.xlane.f32.xlu0 %v6104_v11  ;;  %v6112_v57 = vadd.f32 %v1557_v55, %v5749_v25 }
 0x3c0   : > { %4488 = vst [vmem:[%s5675_s1 + $0x60] sm:$0xff] %v4380_v32   ;;  %v6123_v63 = vadd.f32 %v1555_v45, %v5759_v33 }
 0x3c1   : > { %1616 = vmax.xlane.f32.xlu1 %v6112_v57 }
 0x3c2   : > { %v4730_v0 = vpop.f32.mrb[28].mxu1 }
 0x3c3   : > { %1614 = vmax.xlane.f32.xlu0 %v6115_v60  ;;  %v1560_v25 = vadd.f32 %v4730_v0, %v4066_v8  ;;  %v1433_v1 = vpop.f32.mrb[29].mxu1 }
 0x3c4   : > { %v4731_v4 = vpop.f32.mrb[30].mxu1  ;;  %v1558_v6 = vadd.f32 %v4064_v19, %v1433_v1 }
 0x3c5   : > { %1612 = vmax.xlane.f32.xlu1 %v6123_v63  ;;  %v4395_v33 = vpack.c.bf16 %v4731_v4, %v4730_v0  ;;  %v1436_v15 = vpop.f32.mrb[31].mxu1  ;;  %v6135_v14 = vadd.f32 %v1560_v25, %v5781_v42  ;;  %v4067_v42 = vld [vmem:[%s7203_s3 + $0xf8] sm:$0xff] }
 0x3c6   : > { %v4390_v17 = vpack.c.bf16 %v1436_v15, %v1433_v1  ;;  %v6141_v18 = vadd.f32 %v1558_v6, %v5789_v50  ;;  %v1561_v20 = vadd.f32 %v4731_v4, %v4067_v42  ;;  %v1559_v23 = vadd.f32 %v4065_v24, %v1436_v15 }
 0x3c7   : > { %1610 = vmax.xlane.f32.xlu0 %v6131_v13  ;;  %4491 = vst [vmem:[%s5675_s1 + $0x78] sm:$0xff] %v4395_v33  }
 0x3c8   : > { %4490 = vst [vmem:[%s5675_s1 + $0x70] sm:$0xff] %v4390_v17   ;;  %v6155_v50 = vadd.f32 %v1561_v20, %v5809_v2  ;;  %v6159_v28 = vadd.f32 %v1559_v23, %v5815_v7 }
 0x3cb   : > { %1622 = vmax.xlane.f32.xlu0 %v6135_v14 }
 0x3cf   : > { %1618 = vmax.xlane.f32.xlu0 %v6141_v18 }
 0x3d6   : > { %2147 = vrot.lane.b32.xlu1 %v5040_v30, %s7210_s12 }
 0x3e5   : > { %2145 = vrot.lane.b32.xlu0 %v5041_v16, %s7210_s12 }
 0x3fa   : > { %1624 = vmax.xlane.f32.xlu1 %v6155_v50 }
 0x3fe   : > { %1620 = vmax.xlane.f32.xlu1 %v6159_v28 }
 0x43c   : > { %v1599_v48 = vpop.xlane.xlu0 %1598 }
 0x43d   : > { %v1628_v58 = vsub.f32 %v6048_v12, %v1599_v48 }
 0x43f   : > { %v1646_v37 = vmul.f32 1.442695, %v1628_v58  ;;  %v1597_v26 = vpop.xlane.xlu1 %1596 }
 0x440   : > { %v1627_v54 = vsub.f32 %v6057_v22, %v1597_v26  ;;  %v1595_v27 = vpop.xlane.xlu0 %1594 }
 0x441   : > { %5150 = vpow2.f32 %v1646_v37  ;;  %v1626_v2 = vsub.f32 %v6063_v39, %v1595_v27  ;;  %v5044_v27 = vld [vmem:[%s5568_s19 + $0x30] sm:$0xff]  }
 0x442   : > { %v1644_v29 = vmul.f32 1.442695, %v1627_v54 }
 0x443   : > { %v1642_v43 = vmul.f32 1.442695, %v1626_v2  ;;  %v5045_v2 = vld [vmem:[%s5568_s19 + $0x38] sm:$0xff]  }
 0x444   : > { %5152 = vpow2.f32 %v1644_v29  ;;  %v1601_v7 = vpop.xlane.xlu0 %1600  ;;  %v5046_v29 = vld [vmem:[%s5579_s22] sm:$0xff]  }
 0x445   : > { %5154 = vpow2.f32 %v1642_v43  ;;  %v1629_v35 = vsub.f32 %v6074_v52, %v1601_v7  ;;  %v5042_v52 = vld [vmem:[%s5568_s19 + $0x28] sm:$0xff]   ;;  %v5048_v7 = vld [vmem:[%s5579_s22 + $0x10] sm:$0xff]  }
 0x446   : > { %v1609_v9 = vpop.xlane.xlu1 %1608  ;;  %v5047_v43 = vld [vmem:[%s5579_s22 + $0x8] sm:$0xff]  }
 0x447   : > { %v1648_v49 = vmul.f32 1.442695, %v1629_v35  ;;  %v1633_v21 = vsub.f32 %v6082_v10, %v1609_v9  ;;  %v5049_v35 = vld [vmem:[%s5579_s22 + $0x18] sm:$0xff]  }
 0x448   : > { %v1607_v56 = vpop.xlane.xlu0 %1606 }
 0x449   : > { %5156 = vpow2.f32 %v1648_v49  ;;  %v1632_v3 = vsub.f32 %v6085_v36, %v1607_v56  ;;  %v1656_v62 = vmul.f32 1.442695, %v1633_v21  ;;  %v5050_v49 = vld [vmem:[%s5579_s22 + $0x20] sm:$0xff]   ;;  %v5051_v56 = vld [vmem:[%s5579_s22 + $0x28] sm:$0xff]  }
 0x44a   : > { %v1605_v40 = vpop.xlane.xlu1 %1604 }
 0x44b   : > { %v6168_v12 = vpop.eup %5150  ;;  %v1654_v46 = vmul.f32 1.442695, %v1632_v3  ;;  %v1631_v41 = vsub.f32 %v6093_v38, %v1605_v40 }
 0x44c   : > { %1678 = vadd.xlane.f32.xlu1 %v6168_v12  ;;  %v1603_v53 = vpop.xlane.xlu0 %1602 }
 0x44d   : > { %v1630_v51 = vsub.f32 %v6104_v11, %v1603_v53  ;;  %5158 = vpow2.f32 %v1654_v46  ;;  %v1652_v45 = vmul.f32 1.442695, %v1631_v41 }
 0x44e   : > { %v6171_v22 = vpop.eup %5152  ;;  %v1617_v55 = vpop.xlane.xlu1 %1616 }
 0x44f   : > { %v6173_v34 = vpop.eup %5154  ;;  %1676 = vadd.xlane.f32.xlu0 %v6171_v22  ;;  %v1650_v32 = vmul.f32 1.442695, %v1630_v51  ;;  %v1637_v10 = vsub.f32 %v6112_v57, %v1617_v55 }
 0x450   : > { %1674 = vadd.xlane.f32.xlu1 %v6173_v34  ;;  %v1615_v44 = vpop.xlane.xlu0 %1614 }
 0x451   : > { %v1636_v8 = vsub.f32 %v6115_v60, %v1615_v44  ;;  %5160 = vpow2.f32 %v1650_v32  ;;  %v1664_v17 = vmul.f32 1.442695, %v1637_v10 }
 0x452   : > { %v1613_v0 = vpop.xlane.xlu1 %1612  ;;  %5162 = vpow2.f32 %v1652_v45 }
 0x453   : > { %v6177_v39 = vpop.eup %5156  ;;  %v1662_v25 = vmul.f32 1.442695, %v1636_v8  ;;  %5164 = vpow2.f32 %v1656_v62  ;;  %v2182_v62 = vsel %vm533_vm0, %v5998_v31, 0 }
 0x454   : > { %1680 = vadd.xlane.f32.xlu1 %v6177_v39  ;;  %v1611_v61 = vpop.xlane.xlu0 %1610 }
 0x455   : > { %v1634_v11 = vsub.f32 %v6131_v13, %v1611_v61  ;;  %5166 = vpow2.f32 %v1662_v25  ;;  %v1635_v13 = vsub.f32 %v6123_v63, %v1613_v0 }
 0x456   : > { %v6195_v60 = vpop.permute.xlu1 %2147 }
 0x457   : > { %v1658_v4 = vmul.f32 1.442695, %v1634_v11  ;;  %v6193_v33 = vpop.eup %5158  ;;  %v1660_v30 = vmul.f32 1.442695, %v1635_v13 }
 0x458   : > { %v1623_v47 = vpop.xlane.xlu0 %1622 }
 0x459   : > { %v1640_v36 = vsub.f32 %v6135_v14, %v1623_v47 }
 0x45b   : > { %v1670_v38 = vmul.f32 1.442695, %v1640_v36  ;;  %v6199_v6 = vpop.eup %5160 }
 0x45c   : > { %v1619_v1 = vpop.xlane.xlu0 %1618 }
 0x45d   : > { %v1638_v19 = vsub.f32 %v6141_v18, %v1619_v1  ;;  %5168 = vpow2.f32 %v1670_v38  ;;  %v6201_v18 = vpop.eup %5162 }
 0x45e   : > { %5170 = vpow2.f32 %v1658_v4  ;;  %v6206_v42 = vpop.eup %5164 }
 0x45f   : > { %v1666_v15 = vmul.f32 1.442695, %v1638_v19  ;;  %v6208_v63 = vpop.eup %5166 }
 0x460   : > { %v2146_v53 = vpop.permute.xlu0 %2145 }
 0x461   : > { %5172 = vpow2.f32 %v1666_v15 }
 0x462   : > { %5174 = vpow2.f32 %v1664_v17 }
 0x465   : > { %2151 = vrot.lane.b32.xlu1 %v5042_v52, %s7210_s12  ;;  %2149 = vrot.lane.b32.xlu0 %v5043_v5, %s7210_s12  ;;  %v5052_v52 = vld [vmem:[%s5579_s22 + $0x30] sm:$0xff]   ;;  %v5053_v5 = vld [vmem:[%s5579_s22 + $0x38] sm:$0xff]  }
 0x484   : > { %1686 = vadd.xlane.f32.xlu0 %v6193_v33 }
 0x487   : > { %v1625_v14 = vpop.xlane.xlu1 %1624 }
 0x488   : > { %v1641_v57 = vsub.f32 %v6155_v50, %v1625_v14  ;;  %1682 = vadd.xlane.f32.xlu0 %v6199_v6  ;;  %v6213_v50 = vpop.eup %5168 }
 0x489   : > { %1684 = vadd.xlane.f32.xlu1 %v6201_v18  ;;  %v6215_v48 = vpop.eup %5170 }
 0x48a   : > { %v1672_v16 = vmul.f32 1.442695, %v1641_v57 }
 0x48b   : > { %v1621_v20 = vpop.xlane.xlu1 %1620 }
 0x48c   : > { %5176 = vpow2.f32 %v1672_v16  ;;  %v1639_v24 = vsub.f32 %v6159_v28, %v1621_v20  ;;  %1688 = vadd.xlane.f32.xlu0 %v6206_v42  ;;  %v6219_v28 = vpop.eup %5172 }
 0x48d   : > { %1694 = vadd.xlane.f32.xlu1 %v6208_v63  ;;  %5178 = vpow2.f32 %v1660_v30  ;;  %v6221_v58 = vpop.eup %5174 }
 0x48e   : > { %v1668_v23 = vmul.f32 1.442695, %v1639_v24 }
 0x490   : > { %1702 = vadd.xlane.f32.xlu0 %v6213_v50  ;;  %5180 = vpow2.f32 %v1668_v23 }
 0x491   : > { %1690 = vadd.xlane.f32.xlu1 %v6215_v48 }
 0x494   : > { %1698 = vadd.xlane.f32.xlu0 %v6219_v28 }
 0x495   : > { %1696 = vadd.xlane.f32.xlu1 %v6221_v58 }
 0x496   : > { %v6225_v37 = vpop.eup %5176 }
 0x497   : > { %v6227_v26 = vpop.eup %5178 }
 0x498   : > { %1704 = vadd.xlane.f32.xlu0 %v6225_v37 }
 0x499   : > { %1692 = vadd.xlane.f32.xlu1 %v6227_v26 }
 0x49a   : > { %v6231_v54 = vpop.eup %5180 }
 0x49d   : > { %1700 = vadd.xlane.f32.xlu1 %v6231_v54 }
 0x4ae   : > { %2153 = vrot.lane.b32.xlu0 %v5044_v27, %s7210_s12  ;;  %2155 = vrot.lane.b32.xlu1 %v5045_v2, %s7210_s12 }
 0x4b2   : > { %2085 = vrot.lane.b32.xlu0 %v5046_v29, %s7210_s12  ;;  %2087 = vrot.lane.b32.xlu1 %v5047_v43, %s7210_s12 }
 0x4b6   : > { %2089 = vrot.lane.b32.xlu0 %v5048_v7, %s7210_s12  ;;  %2091 = vrot.lane.b32.xlu1 %v5049_v35, %s7210_s12 }
 0x4ba   : > { %2093 = vrot.lane.b32.xlu0 %v5050_v49, %s7210_s12  ;;  %2095 = vrot.lane.b32.xlu1 %v5051_v56, %s7210_s12 }
 0x4be   : > { %2097 = vrot.lane.b32.xlu0 %v5052_v52, %s7210_s12  ;;  %2099 = vrot.lane.b32.xlu1 %v5053_v5, %s7210_s12 }
 0x4d9   : > { %v1679_v9 = vpop.xlane.xlu1 %1678 }
 0x4dc   : > { %v1677_v44 = vpop.xlane.xlu0 %1676 }
 0x4dd   : > { %5182 = vrcp.f32 %v1677_v44  ;;  %v1675_v3 = vpop.xlane.xlu1 %1674 }
 0x4de   : > { %5184 = vrcp.f32 %v1675_v3 }
 0x4df   : > { %5186 = vrcp.f32 %v1679_v9 }
 0x4e0   : > { %v2150_v31 = vpop.permute.xlu0 %2149 }
 0x4e1   : > { %v1681_v40 = vpop.xlane.xlu1 %1680  ;;  %v2194_v0 = vsel %vm533_vm0, %v2150_v31, 0 }
 0x4e2   : > { %5188 = vrcp.f32 %v1681_v40 }
 0x4e7   : > { %v5183_v61 = vpop.eup %5182 }
 0x4e8   : > { %v5185_v46 = vpop.eup %5184  ;;  %v1723_v51 = vmul.f32 %v5183_v61, %v6171_v22  ;;  %v2185_v22 = vsel %vm533_vm0, %v6162_v59, 0 }
 0x4e9   : > { %v1722_v41 = vmul.f32 %v5185_v46, %v6173_v34  ;;  %v5187_v55 = vpop.eup %5186  ;;  %v2191_v34 = vsel %vm533_vm0, %v6195_v60, 0 }
 0x4ea   : > { %v1724_v32 = vmul.f32 %v5187_v55, %v6168_v12  ;;  %v2188_v12 = vsel %vm533_vm0, %v2146_v53, 0 }
 0x4eb   : > { %v1738_v47 = vpack.c.bf16 %v1723_v51, %v1722_v41 }
 0x4ec   : > { %v5189_v21 = vpop.eup %5188 }
 0x4ed   : > { %v1725_v45 = vmul.f32 %v5189_v21, %v6177_v39  ;;  %4748 = vmatprep.mubr.bf16.mxu0 %v1738_v47  ;;  %v5055_v21 = vld [vmem:[%s5624_s10 + $0x8] sm:$0xff]  }
 0x4ee   : > { %2664 = vrot.lane.b32.xlu1 %v5055_v21, %s7210_s12 }
 0x4ef   : > { %v1739_v8 = vpack.c.bf16 %v1725_v45, %v1724_v32 }
 0x4f1   : > { %4749 = vmatmul.mubr.bf16.vlgmr.msra.gmra.mrb[16].mxu0 %v1739_v8  ;;  %v5058_v8 = vld [vmem:[%s5624_s10 + $0x20] sm:$0xff]  }
 0x4f2   : > { %4765 = vmatpush3.bf16.xpose.msra.mxu0 %v2182_v62  ;;  %v5059_v62 = vld [vmem:[%s5624_s10 + $0x28] sm:$0xff]  }
 0x4f3   : > { %4909 = vmatprep.subr.msk.bf16.mxu0 %vm533_vm0, %v6162_v59  ;;  %v2152_v59 = vpop.permute.xlu1 %2151 }
 0x4f4   : > { %v2197_v1 = vsel %vm533_vm0, %v2152_v59, 0 }
 0x4fa   : > { %4767 = vmatpush3.bf16.xpose.msra.mxu0 %v2185_v22  ;;  %v5060_v22 = vld [vmem:[%s5624_s10 + $0x30] sm:$0xff]  }
 0x4fb   : > { %4910 = vmatprep.subr.msk.bf16.mxu0 %vm533_vm0, %v2146_v53 }
 0x502   : > { %4769 = vmatpush3.bf16.xpose.msra.mxu0 %v2188_v12  ;;  %v5061_v12 = vld [vmem:[%s5624_s10 + $0x38] sm:$0xff]  }
 0x503   : > { %4911 = vmatprep.subr.msk.bf16.mxu0 %vm533_vm0, %v6195_v60 }
 0x50a   : > { %4771 = vmatpush3.bf16.xpose.msra.mxu0 %v2191_v34 }
 0x50b   : > { %4912 = vmatprep.subr.msk.bf16.mxu0 %vm533_vm0, %v2150_v31 }
 0x511   : > { %v1687_v39 = vpop.xlane.xlu0 %1686 }
 0x512   : > { %4773 = vmatpush3.bf16.xpose.msra.mxu0 %v2194_v0  ;;  %v5062_v0 = vld [vmem:[%s5568_s19 + $0x8] sm:$0xff]  }
 0x513   : > { %4913 = vmatprep.subr.msk.bf16.mxu0 %vm533_vm0, %v2152_v59  ;;  %v5063_v59 = vld [vmem:[%s5568_s19] sm:$0xff]  }
 0x515   : > { %v1683_v36 = vpop.xlane.xlu0 %1682 }
 0x516   : > { %5190 = vrcp.f32 %v1683_v36  ;;  %v1685_v25 = vpop.xlane.xlu1 %1684 }
 0x517   : > { %5192 = vrcp.f32 %v1685_v25 }
 0x518   : > { %5194 = vrcp.f32 %v1687_v39 }
 0x519   : > { %v1689_v11 = vpop.xlane.xlu0 %1688 }
 0x51a   : > { %5196 = vrcp.f32 %v1689_v11  ;;  %4775 = vmatpush3.bf16.xpose.msra.mxu0 %v2197_v1  ;;  %v1695_v38 = vpop.xlane.xlu1 %1694 }
 0x51d   : > { %v1703_v19 = vpop.xlane.xlu0 %1702 }
 0x51e   : > { %v1691_v10 = vpop.xlane.xlu1 %1690 }
 0x520   : > { %v5191_v4 = vpop.eup %5190 }
 0x521   : > { %v5193_v60 = vpop.eup %5192  ;;  %v1699_v15 = vpop.xlane.xlu0 %1698  ;;  %v1726_v17 = vmul.f32 %v5191_v4, %v6199_v6 }
 0x522   : > { %v5195_v13 = vpop.eup %5194  ;;  %v1697_v14 = vpop.xlane.xlu1 %1696  ;;  %v1727_v57 = vmul.f32 %v5193_v60, %v6201_v18 }
 0x523   : > { %5198 = vrcp.f32 %v1697_v14  ;;  %v1728_v24 = vmul.f32 %v5195_v13, %v6193_v33 }
 0x524   : > { %v5197_v30 = vpop.eup %5196  ;;  %v1740_v16 = vpack.c.bf16 %v1727_v57, %v1726_v17  ;;  %5200 = vrcp.f32 %v1691_v10 }
 0x525   : > { %v1705_v20 = vpop.xlane.xlu0 %1704  ;;  %v1729_v23 = vmul.f32 %v5197_v30, %v6206_v42  ;;  %5202 = vrcp.f32 %v1695_v38 }
 0x526   : > { %4752 = vmatprep.mubr.bf16.mxu0 %v1740_v16  ;;  %v1693_v27 = vpop.xlane.xlu1 %1692 }
 0x527   : > { %5204 = vrcp.f32 %v1693_v27  ;;  %v1741_v2 = vpack.c.bf16 %v1729_v23, %v1728_v24 }
 0x528   : > { %5206 = vrcp.f32 %v1699_v15 }
 0x529   : > { %4753 = vmatmul.mubr.bf16.gmra.mrb[20].mxu0 %v1741_v2  ;;  %v2154_v6 = vpop.permute.xlu0 %2153 }
 0x52a   : > { %v1701_v29 = vpop.xlane.xlu1 %1700  ;;  %4914 = vmatprep.subr.msk.bf16.mxu0 %vm533_vm0, %v2154_v6  ;;  %v2200_v18 = vsel %vm533_vm0, %v2154_v6, 0 }
 0x52b   : > { %5208 = vrcp.f32 %v1701_v29  ;;  %4777 = vmatpush3.bf16.xpose.msra.mxu0 %v2200_v18 }
 0x52c   : > { %5210 = vrcp.f32 %v1705_v20 }
 0x52d   : > { %v5199_v43 = vpop.eup %5198  ;;  %5212 = vrcp.f32 %v1703_v19  ;;  %v2086_v55 = vpop.permute.xlu0 %2085 }
 0x52e   : > { %v2156_v33 = vpop.permute.xlu1 %2155  ;;  %v5201_v42 = vpop.eup %5200  ;;  %v1733_v56 = vmul.f32 %v5199_v43, %v6221_v58 }
 0x52f   : > { %4915 = vmatprep.subr.msk.bf16.mxu0 %vm533_vm0, %v2156_v33  ;;  %v5203_v7 = vpop.eup %5202  ;;  %v2203_v35 = vsel %vm533_vm0, %v2156_v33, 0  ;;  %v1730_v52 = vmul.f32 %v5201_v42, %v6215_v48  ;;  %v4135_v33 = vld [vmem:[%s7203_s3 + $0x110] sm:$0xff] }
 0x530   : > { %v1732_v9 = vmul.f32 %v5203_v7, %v6208_v63  ;;  %v6358_v7 = vld [vmem:[%s5645_s20 + $0x10] sm:$0xff] }
 0x531   : > { %v5205_v49 = vpop.eup %5204  ;;  %v2090_v47 = vpop.permute.xlu0 %2089 }
 0x532   : > { %v1731_v5 = vmul.f32 %v5205_v49, %v6227_v26  ;;  %v5207_v53 = vpop.eup %5206  ;;  %v1743_v40 = vpack.c.bf16 %v1733_v56, %v1732_v9 }
 0x533   : > { %4779 = vmatpush3.bf16.xpose.msra.mxu0 %v2203_v35  ;;  %v1734_v46 = vmul.f32 %v5207_v53, %v6219_v28  ;;  %v2088_v28 = vpop.permute.xlu1 %2087  ;;  %v4133_v35 = vld [vmem:[%s7203_s3 + $0x100] sm:$0xff] }
 0x534   : > { %v1742_v44 = vpack.c.bf16 %v1731_v5, %v1730_v52  ;;  %v4134_v52 = vld [vmem:[%s7203_s3 + $0x108] sm:$0xff] }
 0x535   : > { %v5209_v3 = vpop.eup %5208  ;;  %v2094_v45 = vpop.permute.xlu0 %2093 }
 0x536   : > { %v5211_v61 = vpop.eup %5210  ;;  %4756 = vmatprep.mubr.bf16.mxu0 %v1742_v44  ;;  %v1735_v51 = vmul.f32 %v5209_v3, %v6231_v54  ;;  %v5054_v54 = vld [vmem:[%s5624_s10] sm:$0xff]  }
 0x537   : > { %4757 = vmatmul.mubr.bf16.gmra.mrb[24].mxu0 %v1743_v40  ;;  %v5213_v58 = vpop.eup %5212  ;;  %v1737_v26 = vmul.f32 %v5211_v61, %v6225_v37  ;;  %2662 = vrot.lane.b32.xlu0 %v5054_v54, %s7210_s12  ;;  %v5057_v37 = vld [vmem:[%s5624_s10 + $0x18] sm:$0xff]   ;;  %v2092_v32 = vpop.permute.xlu1 %2091  ;;  %v6370_v40 = vld [vmem:[%s5645_s20 + $0x8] sm:$0xff]  ;;  %v6373_v61 = vld [vmem:[%s5645_s20] sm:$0xff] }
 0x538   : > { %v1744_v48 = vpack.c.bf16 %v1735_v51, %v1734_v46  ;;  %v1736_v63 = vmul.f32 %v5213_v58, %v6213_v50  ;;  %v5056_v50 = vld [vmem:[%s5624_s10 + $0x10] sm:$0xff]   ;;  %2668 = vrot.lane.b32.xlu1 %v5057_v37, %s7210_s12  ;;  %v4136_v46 = vld [vmem:[%s7203_s3 + $0x118] sm:$0xff] }
 0x539   : > { %v2098_v31 = vpop.permute.xlu0 %2097  ;;  %v6402_v37 = vld [vmem:[%s5645_s20 + $0x30] sm:$0xff] }
 0x53a   : > { %4760 = vmatprep.mubr.bf16.mxu0 %v1744_v48  ;;  %v1745_v41 = vpack.c.bf16 %v1737_v26, %v1736_v63  ;;  %v4139_v26 = vld [vmem:[%s7203_s3 + $0x130] sm:$0xff] }
 0x53b   : > { %2666 = vrot.lane.b32.xlu0 %v5056_v50, %s7210_s12  ;;  %v2096_v34 = vpop.permute.xlu1 %2095  ;;  %v4138_v50 = vld [vmem:[%s7203_s3 + $0x128] sm:$0xff] }
 0x53c   : > { %2672 = vrot.lane.b32.xlu1 %v5059_v62, %s7210_s12 }
 0x53f   : > { %4761 = vmatmul.mubr.bf16.gmra.mrb[28].mxu0 %v1745_v41  ;;  %2670 = vrot.lane.b32.xlu0 %v5058_v8, %s7210_s12  ;;  %v2100_v39 = vpop.permute.xlu1 %2099 }
 0x540   : > { %4780 = vmatprep.mubr.msk.bf16.mxu0 %vm533_vm0, %v2086_v55  ;;  %2676 = vrot.lane.b32.xlu1 %v5061_v12, %s7210_s12  ;;  %v6391_v55 = vld [vmem:[%s5645_s20 + $0x18] sm:$0xff] }
 0x543   : > { %2674 = vrot.lane.b32.xlu0 %v5060_v22, %s7210_s12 }
 0x544   : > { %2997 = vrot.lane.b32.xlu1 %v5062_v0, %s5456_s15  ;;  %v6414_v0 = vld [vmem:[%s5645_s20 + $0x28] sm:$0xff] }
 0x547   : > { %4781 = vmatmul.mubr.msk.bf16.vlgmr.msra.gmra.mrb[32].mxu0 %vm533_vm0, %v2088_v28  ;;  %2995 = vrot.lane.b32.xlu0 %v5063_v59, %s5456_s15 }
 0x548   : > { %4784 = vmatprep.mubr.msk.bf16.mxu0 %vm533_vm0, %v2090_v47  ;;  %v4140_v47 = vld [vmem:[%s7203_s3 + $0x138] sm:$0xff] }
 0x54f   : > { %4785 = vmatmul.mubr.msk.bf16.gmra.mrb[36].mxu0 %vm533_vm0, %v2092_v32 }
 0x550   : > { %4788 = vmatprep.mubr.msk.bf16.mxu0 %vm533_vm0, %v2094_v45  ;;  %v6405_v45 = vld [vmem:[%s5645_s20 + $0x38] sm:$0xff] }
 0x557   : > { %4789 = vmatmul.mubr.msk.bf16.gmra.mrb[40].mxu0 %vm533_vm0, %v2096_v34  ;;  %v4137_v34 = vld [vmem:[%s7203_s3 + $0x120] sm:$0xff] }
 0x558   : > { %4792 = vmatprep.mubr.msk.bf16.mxu0 %vm533_vm0, %v2098_v31 }
 0x55f   : > { %4793 = vmatmul.mubr.msk.bf16.gmra.mrb[44].mxu0 %vm533_vm0, %v2100_v39 }
 0x560   : > { %v2665_v19 = vpop.permute.xlu1 %2664 }
 0x5a9   : > { %v2663_v1 = vpop.permute.xlu0 %2662 }
 0x5aa   : > { %4796 = vmatprep.subr.bf16.mxu1 %v2663_v1  ;;  %v2669_v4 = vpop.permute.xlu1 %2668 }
 0x5ab   : > { %4797 = vmatpush3.bf16.msra.mxu1 %v2663_v1 }
 0x5ac   : > { %4798 = vmatprep.subr.bf16.mxu1 %v2665_v19 }
 0x5ad   : > { %v2667_v10 = vpop.permute.xlu0 %2666 }
 0x5ae   : > { %v2673_v15 = vpop.permute.xlu1 %2672 }
 0x5af   : > { %4799 = vmatpush3.bf16.msra.mxu1 %v2665_v19  ;;  %v4143_v19 = vld [vmem:[%s7203_s3 + $0x150] sm:$0xff] }
 0x5b0   : > { %4800 = vmatprep.subr.bf16.mxu1 %v2667_v10 }
 0x5b1   : > { %v2671_v60 = vpop.permute.xlu0 %2670 }
 0x5b2   : > { %v2677_v13 = vpop.permute.xlu1 %2676 }
 0x5b3   : > { %4801 = vmatpush3.bf16.msra.mxu1 %v2667_v10 }
 0x5b4   : > { %4802 = vmatprep.subr.bf16.mxu1 %v2669_v4 }
 0x5b5   : > { %v2675_v17 = vpop.permute.xlu0 %2674 }
 0x5b7   : > { %4803 = vmatpush3.bf16.msra.mxu1 %v2669_v4 }
 0x5b8   : > { %4804 = vmatprep.subr.bf16.mxu1 %v2671_v60 }
 0x5b9   : > { %v6326_v14 = vpop.permute.xlu0 %2995 }
 0x5bb   : > { %4805 = vmatpush3.bf16.msra.mxu1 %v2671_v60  ;;  %v6433_v60 = vld [vmem:[%s5645_s20 + $0x20] sm:$0xff] }
 0x5bc   : > { %4806 = vmatprep.subr.bf16.mxu1 %v2673_v15 }
 0x5bf   : > { %4807 = vmatpush3.bf16.msra.mxu1 %v2673_v15 }
 0x5c0   : > { %4808 = vmatprep.subr.bf16.mxu1 %v2675_v17 }
 0x5c3   : > { %4809 = vmatpush3.bf16.msra.mxu1 %v2675_v17  ;;  %v4144_v17 = vld [vmem:[%s7203_s3 + $0x158] sm:$0xff] }
 0x5c4   : > { %v6318_v36 = vpop.f32.mrb[16].mxu0  ;;  %4810 = vmatprep.subr.bf16.mxu1 %v2677_v13 }
 0x5c5   : > { %v6320_v25 = vpop.f32.mrb[17].mxu0 }
 0x5c6   : > { %v6322_v11 = vpop.f32.mrb[18].mxu0 }
 0x5c7   : > { %v6324_v38 = vpop.f32.mrb[19].mxu0  ;;  %4811 = vmatpush3.bf16.msra.mxu1 %v2677_v13 }
 0x5c8   : > { %4916 = vmatprep.subr.msk.bf16.mxu1 %vm533_vm0, %v6326_v14 }
 0x5fc   : > { %v6330_v57 = vpop.f32.mrb[20].mxu0 }
 0x5fd   : > { %v6332_v30 = vpop.f32.mrb[21].mxu0 }
 0x5fe   : > { %v6334_v16 = vpop.f32.mrb[22].mxu0 }
 0x5ff   : > { %v6336_v20 = vpop.f32.mrb[23].mxu0 }
 0x60a   : > { %v6338_v24 = vpop.f32.mrb[24].mxu0 }
 0x60b   : > { %v6340_v23 = vpop.f32.mrb[25].mxu0 }
 0x60c   : > { %v6342_v27 = vpop.f32.mrb[26].mxu0 }
 0x60d   : > { %v6344_v2 = vpop.f32.mrb[27].mxu0 }
 0x612   : > { %v6346_v6 = vpop.f32.mrb[28].mxu0 }
 0x613   : > { %7219 = vst [vmem:[#allocation8_spill] sm:$0xff] %v6346_v6  ;;  %v6348_v29 = vpop.f32.mrb[29].mxu0 }
 0x614   : > { %7220 = vst [vmem:[#allocation9_spill] sm:$0xff] %v6348_v29  ;;  %v6350_v18 = vpop.f32.mrb[30].mxu0 }
 0x615   : > { %7221 = vst [vmem:[#allocation10_spill] sm:$0xff] %v6350_v18  ;;  %v6352_v43 = vpop.f32.mrb[31].mxu0 }
 0x616   : > { %7222 = vst [vmem:[#allocation11_spill] sm:$0xff] %v6352_v43 }
 0x61a   : > { %v4782_v42 = vpop.f32.mrb[32].mxu0 }
 0x61b   : > { %v2402_v49 = vadd.f32 %v4782_v42, %v4135_v33  ;;  %v2239_v56 = vpop.f32.mrb[33].mxu0 }
 0x61c   : > { %v4783_v5 = vpop.f32.mrb[34].mxu0  ;;  %v2400_v9 = vadd.f32 %v4133_v35, %v2239_v56  ;;  %v6443_v35 = vld [vmem:[%s5645_s20 + $0x50] sm:$0xff] }
 0x61d   : > { %v6367_v53 = vadd.f32 %v6358_v7, %v2402_v49  ;;  %v4405_v44 = vpack.c.bf16 %v4783_v5, %v4782_v42  ;;  %v2242_v3 = vpop.f32.mrb[35].mxu0  ;;  %v2403_v41 = vadd.f32 %v4783_v5, %v4136_v46  ;;  %v4142_v42 = vld [vmem:[%s7203_s3 + $0x148] sm:$0xff] }
 0x61e   : > { %v4400_v51 = vpack.c.bf16 %v2242_v3, %v2239_v56  ;;  %v2401_v58 = vadd.f32 %v4134_v52, %v2242_v3  ;;  %v6388_v63 = vadd.f32 %v6373_v61, %v2400_v9  ;;  %v6446_v56 = vld [vmem:[%s5645_s20 + $0x58] sm:$0xff]  ;;  %v4141_v3 = vld [vmem:[%s7203_s3 + $0x140] sm:$0xff] }
 0x61f   : > { %4493 = vst [vmem:[%s5675_s1 + $0x88] sm:$0xff] %v4405_v44   ;;  %2452 = vmax.xlane.f32.xlu0 %v6367_v53  ;;  %v6408_v8 = vadd.f32 %v6391_v55, %v2403_v41 }
 0x620   : > { %4492 = vst [vmem:[%s5675_s1 + $0x80] sm:$0xff] %v4400_v51   ;;  %v6382_v48 = vadd.f32 %v6370_v40, %v2401_v58  ;;  %v6456_v58 = vld [vmem:[%s5645_s20 + $0x48] sm:$0xff] }
 0x622   : > { %2450 = vmax.xlane.f32.xlu1 %v6382_v48  ;;  %v4786_v28 = vpop.f32.mrb[36].mxu0 }
 0x623   : > { %v2406_v54 = vadd.f32 %v4786_v28, %v4139_v26  ;;  %2448 = vmax.xlane.f32.xlu0 %v6388_v63  ;;  %v2255_v21 = vpop.f32.mrb[37].mxu0 }
 0x624   : > { %v4787_v32 = vpop.f32.mrb[38].mxu0  ;;  %v2404_v10 = vadd.f32 %v4137_v34, %v2255_v21 }
 0x625   : > { %v4415_v62 = vpack.c.bf16 %v4787_v32, %v4786_v28  ;;  %v2407_v22 = vadd.f32 %v4787_v32, %v4140_v47  ;;  %v2258_v12 = vpop.f32.mrb[39].mxu0  ;;  %v6417_v59 = vadd.f32 %v6402_v37, %v2406_v54  ;;  %v4147_v28 = vld [vmem:[%s7203_s3 + $0x170] sm:$0xff] }
 0x626   : > { %v4410_v31 = vpack.c.bf16 %v2258_v12, %v2255_v21  ;;  %v2405_v39 = vadd.f32 %v4138_v50, %v2258_v12  ;;  %v6449_v52 = vadd.f32 %v6433_v60, %v2404_v10  ;;  %v6475_v21 = vld [vmem:[%s5645_s20 + $0x40] sm:$0xff] }
 0x627   : > { %4495 = vst [vmem:[%s5675_s1 + $0x98] sm:$0xff] %v4415_v62   ;;  %v6421_v1 = vadd.f32 %v6405_v45, %v2407_v22  ;;  %2454 = vmax.xlane.f32.xlu0 %v6408_v8  ;;  %v6479_v22 = vld [vmem:[%s5645_s20 + $0x70] sm:$0xff]  ;;  %v4145_v12 = vld [vmem:[%s7203_s3 + $0x160] sm:$0xff] }
 0x628   : > { %4494 = vst [vmem:[%s5675_s1 + $0x90] sm:$0xff] %v4410_v31   ;;  %v6429_v4 = vadd.f32 %v6414_v0, %v2405_v39 }
 0x629   : > { %2462 = vmax.xlane.f32.xlu1 %v6421_v1 }
 0x62a   : > { %v4790_v15 = vpop.f32.mrb[40].mxu0 }
 0x62b   : > { %v2410_v13 = vadd.f32 %v4790_v15, %v4143_v19  ;;  %2460 = vmax.xlane.f32.xlu0 %v6417_v59  ;;  %v2271_v33 = vpop.f32.mrb[41].mxu0 }
 0x62c   : > { %v4791_v49 = vpop.f32.mrb[42].mxu0  ;;  %v2408_v47 = vadd.f32 %v4141_v3, %v2271_v33  ;;  %v4146_v3 = vld [vmem:[%s7203_s3 + $0x168] sm:$0xff] }
 0x62d   : > { %v4425_v5 = vpack.c.bf16 %v4791_v49, %v4790_v15  ;;  %v2411_v9 = vadd.f32 %v4791_v49, %v4144_v17  ;;  %2458 = vmax.xlane.f32.xlu1 %v6429_v4  ;;  %v2274_v44 = vpop.f32.mrb[43].mxu0  ;;  %v6459_v26 = vadd.f32 %v6443_v35, %v2410_v13  ;;  %v6494_v13 = vld [vmem:[%s5645_s20 + $0x60] sm:$0xff]  ;;  %v5065_v49 = vld [vmem:[%s5568_s19 + $0x10] sm:$0xff]  }
 0x62e   : > { %v4420_v46 = vpack.c.bf16 %v2274_v44, %v2271_v33  ;;  %v2409_v51 = vadd.f32 %v4142_v42, %v2274_v44  ;;  %v6485_v31 = vadd.f32 %v6475_v21, %v2408_v47  ;;  %v5064_v42 = vld [vmem:[%s5568_s19 + $0x18] sm:$0xff]  }
 0x62f   : > { %4497 = vst [vmem:[%s5675_s1 + $0xa8] sm:$0xff] %v4425_v5   ;;  %v6463_v41 = vadd.f32 %v6446_v56, %v2411_v9  ;;  %2456 = vmax.xlane.f32.xlu0 %v6449_v52  ;;  %v4148_v5 = vld [vmem:[%s7203_s3 + $0x178] sm:$0xff] }
 0x630   : > { %4496 = vst [vmem:[%s5675_s1 + $0xa0] sm:$0xff] %v4420_v46   ;;  %v6471_v54 = vadd.f32 %v6456_v58, %v2409_v51  ;;  %v6510_v44 = vld [vmem:[%s5645_s20 + $0x78] sm:$0xff] }
 0x631   : > { %2470 = vmax.xlane.f32.xlu1 %v6463_v41 }
 0x632   : > { %v4794_v50 = vpop.f32.mrb[44].mxu0 }
 0x633   : > { %2468 = vmax.xlane.f32.xlu0 %v6459_v26  ;;  %v2414_v32 = vadd.f32 %v4794_v50, %v4147_v28  ;;  %v2287_v62 = vpop.f32.mrb[45].mxu0  ;;  %v6519_v28 = vld [vmem:[%s5645_s20 + $0x68] sm:$0xff]  ;;  %s3722_s20 = scalar_lea.sflag [#allocation3], %s5640_s16 }
 0x634   : > { %v4795_v34 = vpop.f32.mrb[46].mxu0  ;;  %v2412_v17 = vadd.f32 %v4145_v12, %v2287_v62 }
 0x635   : > { %2466 = vmax.xlane.f32.xlu1 %v6471_v54  ;;  %v4435_v39 = vpack.c.bf16 %v4795_v34, %v4794_v50  ;;  %v2290_v19 = vpop.f32.mrb[47].mxu0  ;;  %v6489_v15 = vadd.f32 %v6479_v22, %v2414_v32  ;;  %v2415_v9 = vadd.f32 %v4795_v34, %v4148_v5  ;;  %v6526_v50 = vpop.permute.xlu1 %2997 }
 0x636   : > { %v4430_v10 = vpack.c.bf16 %v2290_v19, %v2287_v62  ;;  %v6498_v33 = vadd.f32 %v6494_v13, %v2412_v17  ;;  %v2413_v51 = vadd.f32 %v4146_v3, %v2290_v19 }
 0x637   : > { %2464 = vmax.xlane.f32.xlu0 %v6485_v31  ;;  %4499 = vst [vmem:[%s5675_s1 + $0xb8] sm:$0xff] %v4435_v39   ;;  %v6516_v46 = vadd.f32 %v6510_v44, %v2415_v9 }
 0x638   : > { %4498 = vst [vmem:[%s5675_s1 + $0xb0] sm:$0xff] %v4430_v10   ;;  %v6522_v47 = vadd.f32 %v6519_v28, %v2413_v51 }
 0x63b   : > { %2476 = vmax.xlane.f32.xlu0 %v6489_v15 }
 0x63f   : > { %2472 = vmax.xlane.f32.xlu0 %v6498_v33 }
 0x646   : > { %3001 = vrot.lane.b32.xlu1 %v5064_v42, %s5456_s15 }
 0x655   : > { %2999 = vrot.lane.b32.xlu0 %v5065_v49, %s5456_s15 }
 0x66a   : > { %2478 = vmax.xlane.f32.xlu1 %v6516_v46 }
 0x66e   : > { %2474 = vmax.xlane.f32.xlu1 %v6522_v47 }
 0x6ac   : > { %v2453_v32 = vpop.xlane.xlu0 %2452 }
 0x6ad   : > { %v2482_v62 = vsub.f32 %v6367_v53, %v2453_v32  ;;  %v5067_v32 = vld [vmem:[%s5568_s19 + $0x20] sm:$0xff]  }
 0x6af   : > { %v2500_v12 = vmul.f32 1.442695, %v2482_v62  ;;  %v2451_v34 = vpop.xlane.xlu1 %2450 }
 0x6b0   : > { %v2481_v39 = vsub.f32 %v6382_v48, %v2451_v34  ;;  %v2449_v10 = vpop.xlane.xlu0 %2448 }
 0x6b1   : > { %5214 = vpow2.f32 %v2500_v12  ;;  %v2480_v19 = vsub.f32 %v6388_v63, %v2449_v10 }
 0x6b2   : > { %v2498_v17 = vmul.f32 1.442695, %v2481_v39 }
 0x6b3   : > { %v2496_v42 = vmul.f32 1.442695, %v2480_v19 }
 0x6b4   : > { %5216 = vpow2.f32 %v2498_v17  ;;  %v2455_v49 = vpop.xlane.xlu0 %2454 }
 0x6b5   : > { %5218 = vpow2.f32 %v2496_v42  ;;  %v2483_v5 = vsub.f32 %v6408_v8, %v2455_v49  ;;  %v5066_v8 = vld [vmem:[%s5568_s19 + $0x28] sm:$0xff]  }
 0x6b6   : > { %v2463_v12 = vpop.xlane.xlu1 %2462 }
 0x6b7   : > { %v2502_v9 = vmul.f32 1.442695, %v2483_v5  ;;  %v2487_v6 = vsub.f32 %v6421_v1, %v2463_v12 }
 0x6b8   : > { %v2461_v51 = vpop.xlane.xlu0 %2460 }
 0x6b9   : > { %5220 = vpow2.f32 %v2502_v9  ;;  %v2486_v39 = vsub.f32 %v6417_v59, %v2461_v51  ;;  %v2510_v29 = vmul.f32 1.442695, %v2487_v6 }
 0x6ba   : > { %v2459_v10 = vpop.xlane.xlu1 %2458 }
 0x6bb   : > { %v6532_v53 = vpop.eup %5214  ;;  %v2508_v17 = vmul.f32 1.442695, %v2486_v39  ;;  %v2485_v49 = vsub.f32 %v6429_v4, %v2459_v10 }
 0x6bc   : > { %2532 = vadd.xlane.f32.xlu1 %v6532_v53  ;;  %v2457_v62 = vpop.xlane.xlu0 %2456 }
 0x6bd   : > { %v2484_v42 = vsub.f32 %v6449_v52, %v2457_v62  ;;  %5222 = vpow2.f32 %v2508_v17  ;;  %v2506_v18 = vmul.f32 1.442695, %v2485_v49 }
 0x6be   : > { %v6535_v48 = vpop.eup %5216  ;;  %v2471_v5 = vpop.xlane.xlu1 %2470 }
 0x6bf   : > { %v6537_v3 = vpop.eup %5218  ;;  %2530 = vadd.xlane.f32.xlu0 %v6535_v48  ;;  %v2491_v1 = vsub.f32 %v6463_v41, %v2471_v5 }
 0x6c0   : > { %2528 = vadd.xlane.f32.xlu1 %v6537_v3  ;;  %v2469_v34 = vpop.xlane.xlu0 %2468 }
 0x6c2   : > { %v2467_v43 = vpop.xlane.xlu1 %2466 }
 0x6c3   : > { %v6541_v63 = vpop.eup %5220 }
 0x6c4   : > { %2534 = vadd.xlane.f32.xlu1 %v6541_v63  ;;  %v2465_v19 = vpop.xlane.xlu0 %2464 }
 0x6c5   : > { %v2488_v52 = vsub.f32 %v6485_v31, %v2465_v19  ;;  %v2489_v31 = vsub.f32 %v6471_v54, %v2467_v43 }
 0x6c6   : > { %v6559_v6 = vpop.permute.xlu1 %3001 }
 0x6c7   : > { %v2512_v12 = vmul.f32 1.442695, %v2488_v52  ;;  %v6557_v10 = vpop.eup %5222  ;;  %v5069_v52 = vld [vmem:[%s5568_s19 + $0x38] sm:$0xff]  }
 0x6c8   : > { %v2477_v9 = vpop.xlane.xlu0 %2476 }
 0x6c9   : > { %v2494_v59 = vsub.f32 %v6489_v15, %v2477_v9 }
 0x6cb   : > { %v2524_v4 = vmul.f32 1.442695, %v2494_v59 }
 0x6cc   : > { %v2473_v62 = vpop.xlane.xlu0 %2472 }
 0x6cd   : > { %v2492_v39 = vsub.f32 %v6498_v33, %v2473_v62  ;;  %v5070_v62 = vld [vmem:[%s5579_s22] sm:$0xff]  }
 0x6d5   : > { %3005 = vrot.lane.b32.xlu1 %v5066_v8, %s5456_s15  ;;  %3003 = vrot.lane.b32.xlu0 %v5067_v32, %s5456_s15  ;;  %v2504_v8 = vmul.f32 1.442695, %v2484_v42  ;;  %v2490_v32 = vsub.f32 %v6459_v26, %v2469_v34  ;;  %v2518_v26 = vmul.f32 1.442695, %v2491_v1  ;;  %v2514_v34 = vmul.f32 1.442695, %v2489_v31 }
 0x6d6   : > { %v5073_v1 = vld [vmem:[%s5579_s22 + $0x18] sm:$0xff]  }
 0x6d7   : > { %5224 = vpow2.f32 %v2504_v8  ;;  %v2516_v51 = vmul.f32 1.442695, %v2490_v32  ;;  %v5077_v31 = vld [vmem:[%s5579_s22 + $0x38] sm:$0xff]  }
 0x6d8   : > { %5226 = vpow2.f32 %v2506_v18  ;;  %v2520_v18 = vmul.f32 1.442695, %v2492_v39  ;;  %v5072_v39 = vld [vmem:[%s5579_s22 + $0x10] sm:$0xff]  }
 0x6d9   : > { %5228 = vpow2.f32 %v2510_v29 }
 0x6da   : > { %5230 = vpow2.f32 %v2516_v51  ;;  %v5068_v51 = vld [vmem:[%s5568_s19 + $0x30] sm:$0xff]  }
 0x6db   : > { %5232 = vpow2.f32 %v2524_v4  ;;  %v5071_v4 = vld [vmem:[%s5579_s22 + $0x8] sm:$0xff]  }
 0x6dc   : > { %5234 = vpow2.f32 %v2512_v12  ;;  %v5074_v12 = vld [vmem:[%s5579_s22 + $0x20] sm:$0xff]  }
 0x6dd   : > { %5236 = vpow2.f32 %v2520_v18  ;;  %v5075_v18 = vld [vmem:[%s5579_s22 + $0x28] sm:$0xff]  }
 0x6de   : > { %5238 = vpow2.f32 %v2518_v26  ;;  %v5076_v26 = vld [vmem:[%s5579_s22 + $0x30] sm:$0xff]   ;;  %s3742_s22 = sshll.u32 %s5675_s1, 4  ;;  %s7077_s22 = int_to_ptr.vmem [resolvable:$true] %s3742_s22 }
 0x6df   : > { %s5342_s12 = scalar_lea.vmem %s7077_s22, 4096  ;;  %p5349_p1 = scmp.lt.s32.totalorder %s7077_s22, %s5347_s30 }
 0x6e0   : > { %p5343_p12 = scmp.ne.s32.totalorder %s7077_s22, %s5342_s12  ;;  %p5350_p2 = scmp.lt.s32.totalorder %s5348_s8, %s5342_s12 }
 0x6e1   : > { %v6563_v29 = vpop.eup %5224 }
 0x6e2   : > { %v6565_v33 = vpop.eup %5226  ;;  %p5344_p13 = pnand %p5343_p12, %p5542_p4  ;;  %p5351_p3 = por %p5350_p2, %p5349_p1 }
 0x6e3   : > { %v6570_v17 = vpop.eup %5228 }
 0x6e4   : > { %v6572_v43 = vpop.eup %5230  ;;  %p5345_p0 = pneg %p5344_p13 }
 0x6e5   : > { %v6577_v49 = vpop.eup %5232 }
 0x6e6   : > { %v6579_v5 = vpop.eup %5234  ;;  %p5352_p5 = pnand %p5351_p3, %p5345_p0 }
 0x6f4   : > { %2540 = vadd.xlane.f32.xlu0 %v6557_v10 }
 0x6f7   : > { %v2479_v15 = vpop.xlane.xlu1 %2478 }
 0x6f8   : > { %v2495_v41 = vsub.f32 %v6516_v46, %v2479_v15  ;;  %2536 = vadd.xlane.f32.xlu0 %v6563_v29  ;;  %v3000_v15 = vpop.permute.xlu0 %2999 }
 0x6f9   : > { %2538 = vadd.xlane.f32.xlu1 %v6565_v33 }
 0x6fa   : > { %v2526_v19 = vmul.f32 1.442695, %v2495_v41 }
 0x6fb   : > { %v2475_v42 = vpop.xlane.xlu1 %2474 }
 0x6fc   : > { %5240 = vpow2.f32 %v2526_v19  ;;  %v2493_v54 = vsub.f32 %v6522_v47, %v2475_v42  ;;  %2542 = vadd.xlane.f32.xlu0 %v6570_v17  ;;  %v6583_v47 = vpop.eup %5236 }
 0x6fd   : > { %2548 = vadd.xlane.f32.xlu1 %v6572_v43  ;;  %5242 = vpow2.f32 %v2514_v34  ;;  %v6585_v9 = vpop.eup %5238 }
 0x6fe   : > { %v2522_v46 = vmul.f32 1.442695, %v2493_v54 }
 0x700   : > { %2556 = vadd.xlane.f32.xlu0 %v6577_v49  ;;  %5244 = vpow2.f32 %v2522_v46 }
 0x701   : > { %2544 = vadd.xlane.f32.xlu1 %v6579_v5 }
 0x704   : > { %2552 = vadd.xlane.f32.xlu0 %v6583_v47 }
 0x705   : > { %2550 = vadd.xlane.f32.xlu1 %v6585_v9 }
 0x706   : > { %v6589_v8 = vpop.eup %5240 }
 0x707   : > { %v6591_v32 = vpop.eup %5242 }
 0x708   : > { %2558 = vadd.xlane.f32.xlu0 %v6589_v8 }
 0x709   : > { %2546 = vadd.xlane.f32.xlu1 %v6591_v32 }
 0x70a   : > { %v6595_v59 = vpop.eup %5244 }
 0x70d   : > { %2554 = vadd.xlane.f32.xlu1 %v6595_v59 }
 0x71e   : > { %3007 = vrot.lane.b32.xlu0 %v5068_v51, %s5456_s15  ;;  %3009 = vrot.lane.b32.xlu1 %v5069_v52, %s5456_s15 }
 0x722   : > { %2939 = vrot.lane.b32.xlu0 %v5070_v62, %s5456_s15  ;;  %2941 = vrot.lane.b32.xlu1 %v5071_v4, %s5456_s15 }
 0x726   : > { %2943 = vrot.lane.b32.xlu0 %v5072_v39, %s5456_s15  ;;  %2945 = vrot.lane.b32.xlu1 %v5073_v1, %s5456_s15 }
 0x72a   : > { %2947 = vrot.lane.b32.xlu0 %v5074_v12, %s5456_s15  ;;  %2949 = vrot.lane.b32.xlu1 %v5075_v18, %s5456_s15 }
 0x72e   : > { %2951 = vrot.lane.b32.xlu0 %v5076_v26, %s5456_s15  ;;  %2953 = vrot.lane.b32.xlu1 %v5077_v31, %s5456_s15  ;;  %v3036_v26 = vsel %vm533_vm0, %v6326_v14, 0 }
 0x749   : > { %v2533_v41 = vpop.xlane.xlu1 %2532 }
 0x74c   : > { %v2531_v34 = vpop.xlane.xlu0 %2530 }
 0x74d   : > { %5246 = vrcp.f32 %v2531_v34  ;;  %v2529_v19 = vpop.xlane.xlu1 %2528 }
 0x74e   : > { %5248 = vrcp.f32 %v2529_v19 }
 0x74f   : > { %5250 = vrcp.f32 %v2533_v41 }
 0x750   : > { %v3004_v14 = vpop.permute.xlu0 %3003 }
 0x751   : > { %v2535_v42 = vpop.xlane.xlu1 %2534  ;;  %v3048_v31 = vsel %vm533_vm0, %v3004_v14, 0 }
 0x752   : > { %5252 = vrcp.f32 %v2535_v42 }
 0x757   : > { %v5247_v54 = vpop.eup %5246 }
 0x758   : > { %v5249_v46 = vpop.eup %5248  ;;  %v2577_v51 = vmul.f32 %v5247_v54, %v6535_v48  ;;  %v3039_v48 = vsel %vm533_vm0, %v6526_v50, 0 }
 0x759   : > { %v2576_v52 = vmul.f32 %v5249_v46, %v6537_v3  ;;  %v5251_v62 = vpop.eup %5250  ;;  %v3045_v3 = vsel %vm533_vm0, %v6559_v6, 0 }
 0x75a   : > { %v2578_v1 = vmul.f32 %v5251_v62, %v6532_v53  ;;  %v3042_v53 = vsel %vm533_vm0, %v3000_v15, 0 }
 0x75b   : > { %v2592_v4 = vpack.c.bf16 %v2577_v51, %v2576_v52 }
 0x75c   : > { %v5253_v39 = vpop.eup %5252 }
 0x75d   : > { %v2579_v12 = vmul.f32 %v5253_v39, %v6541_v63  ;;  %4812 = vmatprep.mubr.bf16.mxu1 %v2592_v4 }
 0x75f   : > { %v2593_v18 = vpack.c.bf16 %v2579_v12, %v2578_v1 }
 0x761   : > { %4813 = vmatmul.mubr.bf16.vlgmr.msra.gmra.mrb[32].mxu1 %v2593_v18 }
 0x762   : > { %4829 = vmatpush3.bf16.xpose.msra.mxu1 %v3036_v26 }
 0x763   : > { %4917 = vmatprep.subr.msk.bf16.mxu1 %vm533_vm0, %v6526_v50  ;;  %v3006_v50 = vpop.permute.xlu1 %3005 }
 0x764   : > { %v3051_v19 = vsel %vm533_vm0, %v3006_v50, 0 }
 0x76a   : > { %4831 = vmatpush3.bf16.xpose.msra.mxu1 %v3039_v48 }
 0x76b   : > { %4918 = vmatprep.subr.msk.bf16.mxu1 %vm533_vm0, %v3000_v15 }
 0x772   : > { %4833 = vmatpush3.bf16.xpose.msra.mxu1 %v3042_v53 }
 0x773   : > { %4919 = vmatprep.subr.msk.bf16.mxu1 %vm533_vm0, %v6559_v6 }
 0x77a   : > { %4835 = vmatpush3.bf16.xpose.msra.mxu1 %v3045_v3 }
 0x77b   : > { %4920 = vmatprep.subr.msk.bf16.mxu1 %vm533_vm0, %v3004_v14 }
 0x781   : > { %v2541_v63 = vpop.xlane.xlu0 %2540 }
 0x782   : > { %4837 = vmatpush3.bf16.xpose.msra.mxu1 %v3048_v31 }
 0x783   : > { %4921 = vmatprep.subr.msk.bf16.mxu1 %vm533_vm0, %v3006_v50 }
 0x785   : > { %v2537_v41 = vpop.xlane.xlu0 %2536 }
 0x786   : > { %5254 = vrcp.f32 %v2537_v41  ;;  %v2539_v15 = vpop.xlane.xlu1 %2538 }
 0x787   : > { %5256 = vrcp.f32 %v2539_v15 }
 0x788   : > { %5258 = vrcp.f32 %v2541_v63 }
 0x789   : > { %v2543_v34 = vpop.xlane.xlu0 %2542 }
 0x78a   : > { %5260 = vrcp.f32 %v2543_v34  ;;  %4839 = vmatpush3.bf16.xpose.msra.mxu1 %v3051_v19  ;;  %v2549_v6 = vpop.xlane.xlu1 %2548 }
 0x78d   : > { %v2557_v42 = vpop.xlane.xlu0 %2556 }
 0x78e   : > { %v2545_v54 = vpop.xlane.xlu1 %2544 }
 0x790   : > { %v5255_v46 = vpop.eup %5254 }
 0x791   : > { %v5257_v51 = vpop.eup %5256  ;;  %v2553_v52 = vpop.xlane.xlu0 %2552  ;;  %v2580_v62 = vmul.f32 %v5255_v46, %v6563_v29 }
 0x792   : > { %v5259_v4 = vpop.eup %5258  ;;  %v2551_v39 = vpop.xlane.xlu1 %2550  ;;  %v2581_v1 = vmul.f32 %v5257_v51, %v6565_v33 }
 0x793   : > { %5262 = vrcp.f32 %v2551_v39  ;;  %v2582_v48 = vmul.f32 %v5259_v4, %v6557_v10 }
 0x794   : > { %v5261_v12 = vpop.eup %5260  ;;  %v2594_v18 = vpack.c.bf16 %v2581_v1, %v2580_v62  ;;  %5264 = vrcp.f32 %v2545_v54 }
 0x795   : > { %v2559_v26 = vpop.xlane.xlu0 %2558  ;;  %v2583_v53 = vmul.f32 %v5261_v12, %v6570_v17  ;;  %5266 = vrcp.f32 %v2549_v6 }
 0x796   : > { %4816 = vmatprep.mubr.bf16.mxu1 %v2594_v18  ;;  %v2547_v3 = vpop.xlane.xlu1 %2546 }
 0x797   : > { %5268 = vrcp.f32 %v2547_v3  ;;  %v2595_v14 = vpack.c.bf16 %v2583_v53, %v2582_v48 }
 0x798   : > { %5270 = vrcp.f32 %v2553_v52 }
 0x799   : > { %4817 = vmatmul.mubr.bf16.gmra.mrb[36].mxu1 %v2595_v14  ;;  %v3008_v29 = vpop.permute.xlu0 %3007  ;;  %v5080_v14 = vld [vmem:[%s5624_s10 + $0x10] sm:$0xff]  }
 0x79a   : > { %v2555_v63 = vpop.xlane.xlu1 %2554  ;;  %4922 = vmatprep.subr.msk.bf16.mxu1 %vm533_vm0, %v3008_v29  ;;  %v3054_v33 = vsel %vm533_vm0, %v3008_v29, 0 }
 0x79b   : > { %5272 = vrcp.f32 %v2555_v63  ;;  %4841 = vmatpush3.bf16.xpose.msra.mxu1 %v3054_v33 }
 0x79c   : > { %5274 = vrcp.f32 %v2559_v26 }
 0x79d   : > { %v5263_v31 = vpop.eup %5262  ;;  %5276 = vrcp.f32 %v2557_v42  ;;  %v2940_v12 = vpop.permute.xlu0 %2939 }
 0x79e   : > { %v3010_v10 = vpop.permute.xlu1 %3009  ;;  %v5265_v17 = vpop.eup %5264  ;;  %v2587_v34 = vmul.f32 %v5263_v31, %v6585_v9 }
 0x79f   : > { %4923 = vmatprep.subr.msk.bf16.mxu1 %vm533_vm0, %v3010_v10  ;;  %v5267_v50 = vpop.eup %5266  ;;  %v3057_v41 = vsel %vm533_vm0, %v3010_v10, 0  ;;  %v2584_v19 = vmul.f32 %v5265_v17, %v6579_v5 }
 0x7a0   : > { %v2586_v46 = vmul.f32 %v5267_v50, %v6572_v43 }
 0x7a1   : > { %v5269_v15 = vpop.eup %5268  ;;  %v2944_v26 = vpop.permute.xlu0 %2943 }
 0x7a2   : > { %v2585_v6 = vmul.f32 %v5269_v15, %v6591_v32  ;;  %v5271_v54 = vpop.eup %5270  ;;  %v2597_v52 = vpack.c.bf16 %v2587_v34, %v2586_v46  ;;  %v2942_v18 = vpop.permute.xlu1 %2941 }
 0x7a3   : > { %4843 = vmatpush3.bf16.xpose.msra.mxu1 %v3057_v41  ;;  %v2588_v4 = vmul.f32 %v5271_v54, %v6583_v47  ;;  %v5078_v47 = vld [vmem:[%s5624_s10] sm:$0xff]  }
 0x7a4   : > { %v2596_v51 = vpack.c.bf16 %v2585_v6, %v2584_v19  ;;  %3516 = vrot.lane.b32.xlu0 %v5078_v47, %s5456_s15 }
 0x7a5   : > { %v5273_v42 = vpop.eup %5272 }
 0x7a6   : > { %v5275_v62 = vpop.eup %5274  ;;  %4820 = vmatprep.mubr.bf16.mxu1 %v2596_v51  ;;  %v2589_v39 = vmul.f32 %v5273_v42, %v6595_v59  ;;  %v5079_v59 = vld [vmem:[%s5624_s10 + $0x8] sm:$0xff]  }
 0x7a7   : > { %4821 = vmatmul.mubr.bf16.gmra.mrb[40].mxu1 %v2597_v52  ;;  %v5277_v9 = vpop.eup %5276  ;;  %v2591_v32 = vmul.f32 %v5275_v62, %v6589_v8  ;;  %3518 = vrot.lane.b32.xlu1 %v5079_v59, %s5456_s15  ;;  %v2946_v8 = vpop.permute.xlu1 %2945 }
 0x7a8   : > { %v2598_v5 = vpack.c.bf16 %v2589_v39, %v2588_v4  ;;  %v2590_v43 = vmul.f32 %v5277_v9, %v6577_v49  ;;  %v2948_v49 = vpop.permute.xlu0 %2947  ;;  %3520 = vrot.lane.b32.xlu0 %v5080_v14, %s5456_s15  ;;  %v4216_v39 = vld [vmem:[%s7203_s3 + $0x190] sm:$0xff] }
 0x7aa   : > { %4824 = vmatprep.mubr.bf16.mxu1 %v2598_v5  ;;  %v2599_v1 = vpack.c.bf16 %v2591_v32, %v2590_v43  ;;  %v4214_v5 = vld [vmem:[%s7203_s3 + $0x180] sm:$0xff] }
 0x7ab   : > { %v2950_v48 = vpop.permute.xlu1 %2949 }
 0x7ac   : > { %v2952_v53 = vpop.permute.xlu0 %2951 }
 0x7af   : > { %4825 = vmatmul.mubr.bf16.gmra.mrb[44].mxu1 %v2599_v1  ;;  %v2954_v3 = vpop.permute.xlu1 %2953  ;;  %v4215_v1 = vld [vmem:[%s7203_s3 + $0x188] sm:$0xff] }
 0x7b0   : > { %4844 = vmatprep.mubr.msk.bf16.mxu1 %vm533_vm0, %v2940_v12 }
 0x7b7   : > { %4845 = vmatmul.mubr.msk.bf16.vlgmr.msra.gmra.mrb[48].mxu1 %vm533_vm0, %v2942_v18 }
 0x7b8   : > { %4848 = vmatprep.mubr.msk.bf16.mxu1 %vm533_vm0, %v2944_v26 }
 0x7bf   : > { %4849 = vmatmul.mubr.msk.bf16.gmra.mrb[52].mxu1 %vm533_vm0, %v2946_v8  ;;  %v4217_v8 = vld [vmem:[%s7203_s3 + $0x198] sm:$0xff] }
 0x7c0   : > { %4852 = vmatprep.mubr.msk.bf16.mxu1 %vm533_vm0, %v2948_v49 }
 0x7c7   : > { %4853 = vmatmul.mubr.msk.bf16.gmra.mrb[56].mxu1 %vm533_vm0, %v2950_v48 }
 0x7c8   : > { %4856 = vmatprep.mubr.msk.bf16.mxu1 %vm533_vm0, %v2952_v53 }
 0x7cf   : > { %4857 = vmatmul.mubr.msk.bf16.gmra.mrb[60].mxu1 %vm533_vm0, %v2954_v3 }
 0x816   : > { %v3517_v10 = vpop.permute.xlu0 %3516 }
 0x817   : > { %4860 = vmatprep.subr.bf16.mxu0 %v3517_v10 }
 0x818   : > { %4861 = vmatpush3.bf16.msra.mxu0 %v3517_v10 }
 0x819   : > { %v3519_v17 = vpop.permute.xlu1 %3518 }
 0x81a   : > { %4862 = vmatprep.subr.bf16.mxu0 %v3519_v17  ;;  %v3521_v50 = vpop.permute.xlu0 %3520 }
 0x81c   : > { %4863 = vmatpush3.bf16.msra.mxu0 %v3519_v17  ;;  %v4221_v17 = vld [vmem:[%s7203_s3 + $0x1b8] sm:$0xff] }
 0x81d   : > { %4864 = vmatprep.subr.bf16.mxu0 %v3521_v50 }
 0x820   : > { %4865 = vmatpush3.bf16.msra.mxu0 %v3521_v50 }
 0x834   : > { %v6668_v29 = vpop.f32.mrb[32].mxu1 }
 0x835   : > { %v6670_v63 = vpop.f32.mrb[33].mxu1 }
 0x836   : > { %v6672_v33 = vpop.f32.mrb[34].mxu1 }
 0x837   : > { %v6674_v31 = vpop.f32.mrb[35].mxu1 }
 0x86c   : > { %v6676_v41 = vpop.f32.mrb[36].mxu1 }
 0x86d   : > { %v6678_v15 = vpop.f32.mrb[37].mxu1 }
 0x86e   : > { %v6680_v34 = vpop.f32.mrb[38].mxu1 }
 0x86f   : > { %v6682_v19 = vpop.f32.mrb[39].mxu1 }
 0x87a   : > { %v6684_v6 = vpop.f32.mrb[40].mxu1 }
 0x87b   : > { %v6686_v54 = vpop.f32.mrb[41].mxu1 }
 0x87c   : > { %v6688_v46 = vpop.f32.mrb[42].mxu1 }
 0x87d   : > { %v6690_v51 = vpop.f32.mrb[43].mxu1 }
 0x882   : > { %v6692_v42 = vpop.f32.mrb[44].mxu1 }
 0x883   : > { %v6694_v52 = vpop.f32.mrb[45].mxu1 }
 0x884   : > { %v6696_v62 = vpop.f32.mrb[46].mxu1 }
 0x885   : > { %v6698_v4 = vpop.f32.mrb[47].mxu1 }
 0x88a   : > { %v4846_v9 = vpop.f32.mrb[48].mxu1 }
 0x88b   : > { %v3256_v32 = vadd.f32 %v4846_v9, %v4216_v39  ;;  %v3093_v43 = vpop.f32.mrb[49].mxu1 }
 0x88c   : > { %v4847_v12 = vpop.f32.mrb[50].mxu1  ;;  %v3254_v26 = vadd.f32 %v4214_v5, %v3093_v43 }
 0x88d   : > { %v6710_v18 = vadd.f32 %v3256_v32, %v6358_v7  ;;  %v4445_v47 = vpack.c.bf16 %v4847_v12, %v4846_v9  ;;  %v3096_v59 = vpop.f32.mrb[51].mxu1  ;;  %v4220_v7 = vld [vmem:[%s7203_s3 + $0x1b0] sm:$0xff]  ;;  %v3257_v14 = vadd.f32 %v4847_v12, %v4217_v8 }
 0x88e   : > { %v4440_v49 = vpack.c.bf16 %v3096_v59, %v3093_v43  ;;  %v3255_v48 = vadd.f32 %v4215_v1, %v3096_v59  ;;  %v6725_v3 = vadd.f32 %v3254_v26, %v6373_v61  ;;  %v4219_v61 = vld [vmem:[%s7203_s3 + $0x1a8] sm:$0xff]  ;;  %v4218_v1 = vld [vmem:[%s7203_s3 + $0x1a0] sm:$0xff] }
 0x88f   : > { %4501 = vst [vmem:[%s5675_s1 + $0xc8] sm:$0xff] %v4445_v47   ;;  %3306 = vmax.xlane.f32.xlu0 %v6710_v18  ;;  %v6736_v9 = vadd.f32 %v3257_v14, %v6391_v55  ;;  %v4224_v55 = vld [vmem:[%s7203_s3 + $0x1d0] sm:$0xff]  ;;  %v4223_v14 = vld [vmem:[%s7203_s3 + $0x1c8] sm:$0xff] }
 0x890   : > { %4500 = vst [vmem:[%s5675_s1 + $0xc0] sm:$0xff] %v4440_v49   ;;  %v6719_v53 = vadd.f32 %v3255_v48, %v6370_v40 }
 0x892   : > { %3304 = vmax.xlane.f32.xlu1 %v6719_v53  ;;  %v4850_v10 = vpop.f32.mrb[52].mxu1 }
 0x893   : > { %v3260_v50 = vadd.f32 %v4850_v10, %v4220_v7  ;;  %3302 = vmax.xlane.f32.xlu0 %v6725_v3  ;;  %v3109_v40 = vpop.f32.mrb[53].mxu1 }
 0x894   : > { %v4851_v39 = vpop.f32.mrb[54].mxu1  ;;  %v3258_v8 = vadd.f32 %v4218_v1, %v3109_v40 }
 0x895   : > { %v4455_v5 = vpack.c.bf16 %v4851_v39, %v4850_v10  ;;  %v3261_v32 = vadd.f32 %v4851_v39, %v4221_v17  ;;  %v3112_v43 = vpop.f32.mrb[55].mxu1  ;;  %v6742_v26 = vadd.f32 %v3260_v50, %v6402_v37  ;;  %v4225_v37 = vld [vmem:[%s7203_s3 + $0x1d8] sm:$0xff] }
 0x896   : > { %v4450_v12 = vpack.c.bf16 %v3112_v43, %v3109_v40  ;;  %v3259_v59 = vadd.f32 %v4219_v61, %v3112_v43  ;;  %v6765_v17 = vadd.f32 %v3258_v8, %v6433_v60  ;;  %v4228_v60 = vld [vmem:[%s7203_s3 + $0x1f0] sm:$0xff] }
 0x897   : > { %4503 = vst [vmem:[%s5675_s1 + $0xd8] sm:$0xff] %v4455_v5   ;;  %v6746_v47 = vadd.f32 %v3261_v32, %v6405_v45  ;;  %3308 = vmax.xlane.f32.xlu0 %v6736_v9 }
 0x898   : > { %4502 = vst [vmem:[%s5675_s1 + $0xd0] sm:$0xff] %v4450_v12   ;;  %v6758_v45 = vadd.f32 %v3259_v59, %v6414_v0  ;;  %v4222_v0 = vld [vmem:[%s7203_s3 + $0x1c0] sm:$0xff] }
 0x899   : > { %3316 = vmax.xlane.f32.xlu1 %v6746_v47 }
 0x89a   : > { %v4854_v49 = vpop.f32.mrb[56].mxu1 }
 0x89b   : > { %v3264_v48 = vadd.f32 %v4854_v49, %v4224_v55  ;;  %3314 = vmax.xlane.f32.xlu0 %v6742_v26  ;;  %v3125_v7 = vpop.f32.mrb[57].mxu1  ;;  %v4226_v55 = vld [vmem:[%s7203_s3 + $0x1e0] sm:$0xff] }
 0x89c   : > { %v4855_v10 = vpop.f32.mrb[58].mxu1  ;;  %v3262_v1 = vadd.f32 %v4222_v0, %v3125_v7 }
 0x89d   : > { %v4465_v50 = vpack.c.bf16 %v4855_v10, %v4854_v49  ;;  %v3265_v40 = vadd.f32 %v4855_v10, %v4225_v37  ;;  %3312 = vmax.xlane.f32.xlu1 %v6758_v45  ;;  %v3128_v39 = vpop.f32.mrb[59].mxu1  ;;  %v6772_v32 = vadd.f32 %v3264_v48, %v6443_v35 }
 0x89e   : > { %v4460_v61 = vpack.c.bf16 %v3128_v39, %v3125_v7  ;;  %v3263_v5 = vadd.f32 %v4223_v14, %v3128_v39  ;;  %v6792_v49 = vadd.f32 %v3262_v1, %v6475_v21  ;;  %v5081_v21 = vld [vmem:[%s5624_s10 + $0x20] sm:$0xff]  }
 0x89f   : > { %4505 = vst [vmem:[%s5675_s1 + $0xe8] sm:$0xff] %v4465_v50   ;;  %v6776_v43 = vadd.f32 %v3265_v40, %v6446_v56  ;;  %3310 = vmax.xlane.f32.xlu0 %v6765_v17  ;;  %v5082_v50 = vld [vmem:[%s5624_s10 + $0x18] sm:$0xff]  }
 0x8a0   : > { %4504 = vst [vmem:[%s5675_s1 + $0xe0] sm:$0xff] %v4460_v61   ;;  %v6784_v12 = vadd.f32 %v3263_v5, %v6456_v58  ;;  %v5083_v5 = vld [vmem:[%s5624_s10 + $0x28] sm:$0xff]  }
 0x8a1   : > { %3324 = vmax.xlane.f32.xlu1 %v6776_v43 }
 0x8a2   : > { %v4858_v35 = vpop.f32.mrb[60].mxu1 }
 0x8a3   : > { %3322 = vmax.xlane.f32.xlu0 %v6772_v32  ;;  %v3268_v56 = vadd.f32 %v4858_v35, %v4228_v60  ;;  %v3141_v59 = vpop.f32.mrb[61].mxu1 }
 0x8a4   : > { %v4859_v8 = vpop.f32.mrb[62].mxu1  ;;  %v3266_v14 = vadd.f32 %v4226_v55, %v3141_v59 }
 0x8a5   : > { %3320 = vmax.xlane.f32.xlu1 %v6784_v12  ;;  %v4475_v58 = vpack.c.bf16 %v4859_v8, %v4858_v35  ;;  %v3144_v37 = vpop.f32.mrb[63].mxu1  ;;  %v6796_v7 = vadd.f32 %v3268_v56, %v6479_v22  ;;  %v4229_v22 = vld [vmem:[%s7203_s3 + $0x1f8] sm:$0xff] }
 0x8a6   : > { %v4470_v48 = vpack.c.bf16 %v3144_v37, %v3141_v59  ;;  %v6802_v10 = vadd.f32 %v3266_v14, %v6494_v13  ;;  %v3269_v40 = vadd.f32 %v4859_v8, %v4229_v22  ;;  %v4227_v13 = vld [vmem:[%s7203_s3 + $0x1e8] sm:$0xff] }
 0x8a7   : > { %3318 = vmax.xlane.f32.xlu0 %v6792_v49  ;;  %4507 = vst [vmem:[%s5675_s1 + $0xf8] sm:$0xff] %v4475_v58   ;;  %v3267_v0 = vadd.f32 %v4227_v13, %v3144_v37 }
 0x8a8   : > { %4506 = vst [vmem:[%s5675_s1 + $0xf0] sm:$0xff] %v4470_v48   ;;  %v6817_v39 = vadd.f32 %v3269_v40, %v6510_v44 }
 0x8a9   : > { %v6821_v61 = vadd.f32 %v3267_v0, %v6519_v28 }
 0x8ab   : > { %3330 = vmax.xlane.f32.xlu0 %v6796_v7 }
 0x8af   : > { %3326 = vmax.xlane.f32.xlu0 %v6802_v10 }
 0x8b6   : > { %3524 = vrot.lane.b32.xlu1 %v5081_v21, %s5456_s15 }
 0x8c5   : > { %3522 = vrot.lane.b32.xlu0 %v5082_v50, %s5456_s15 }
 0x8da   : > { %3332 = vmax.xlane.f32.xlu1 %v6817_v39 }
 0x8de   : > { %3328 = vmax.xlane.f32.xlu1 %v6821_v61 }
 0x8ef   : > { %3526 = vrot.lane.b32.xlu1 %v5083_v5, %s5456_s15 }
 0x91c   : > { %v3307_v60 = vpop.xlane.xlu0 %3306 }
 0x91d   : > { %v3336_v1 = vsub.f32 %v6710_v18, %v3307_v60 }
 0x91f   : > { %v3354_v35 = vmul.f32 1.442695, %v3336_v1  ;;  %v3305_v59 = vpop.xlane.xlu1 %3304 }
 0x920   : > { %v3303_v56 = vpop.xlane.xlu0 %3302  ;;  %v3335_v8 = vsub.f32 %v6719_v53, %v3305_v59 }
 0x921   : > { %5278 = vpow2.f32 %v3354_v35  ;;  %v3334_v44 = vsub.f32 %v6725_v3, %v3303_v56 }
 0x922   : > { %v3352_v14 = vmul.f32 1.442695, %v3335_v8 }
 0x923   : > { %v3350_v55 = vmul.f32 1.442695, %v3334_v44 }
 0x924   : > { %v3309_v58 = vpop.xlane.xlu0 %3308 }
 0x925   : > { %5280 = vpow2.f32 %v3350_v55  ;;  %v3337_v28 = vsub.f32 %v6736_v9, %v3309_v58 }
 0x926   : > { %v3317_v37 = vpop.xlane.xlu1 %3316 }
 0x927   : > { %v3356_v48 = vmul.f32 1.442695, %v3337_v28  ;;  %v3341_v53 = vsub.f32 %v6746_v47, %v3317_v37 }
 0x928   : > { %v3315_v21 = vpop.xlane.xlu0 %3314 }
 0x929   : > { %5282 = vpow2.f32 %v3356_v48  ;;  %v3340_v18 = vsub.f32 %v6742_v26, %v3315_v21  ;;  %v3364_v35 = vmul.f32 1.442695, %v3341_v53 }
 0x92a   : > { %v3313_v50 = vpop.xlane.xlu1 %3312  ;;  %5284 = vpow2.f32 %v3352_v14 }
 0x92b   : > { %v6831_v22 = vpop.eup %5278  ;;  %v3362_v40 = vmul.f32 1.442695, %v3340_v18  ;;  %v3339_v3 = vsub.f32 %v6758_v45, %v3313_v50 }
 0x92c   : > { %v3311_v13 = vpop.xlane.xlu0 %3310  ;;  %3386 = vadd.xlane.f32.xlu1 %v6831_v22 }
 0x92d   : > { %5286 = vpow2.f32 %v3362_v40  ;;  %v3360_v9 = vmul.f32 1.442695, %v3339_v3  ;;  %v3338_v0 = vsub.f32 %v6765_v17, %v3311_v13 }
 0x92e   : > { %v3325_v26 = vpop.xlane.xlu1 %3324 }
 0x92f   : > { %v6837_v5 = vpop.eup %5280  ;;  %v3358_v60 = vmul.f32 1.442695, %v3338_v0  ;;  %5288 = vpow2.f32 %v3360_v9  ;;  %v3345_v47 = vsub.f32 %v6776_v43, %v3325_v26 }
 0x930   : > { %v3323_v1 = vpop.xlane.xlu0 %3322  ;;  %3382 = vadd.xlane.f32.xlu1 %v6837_v5 }
 0x931   : > { %5290 = vpow2.f32 %v3358_v60  ;;  %v3344_v45 = vsub.f32 %v6772_v32, %v3323_v1  ;;  %v3372_v37 = vmul.f32 1.442695, %v3345_v47  ;;  %v5085_v1 = vld [vmem:[%s5624_s10 + $0x38] sm:$0xff]  }
 0x932   : > { %5292 = vpow2.f32 %v3364_v35  ;;  %v3321_v17 = vpop.xlane.xlu1 %3320  ;;  %v5084_v35 = vld [vmem:[%s5624_s10 + $0x30] sm:$0xff]   ;;  %s4315_s10 = sshll.u32 %s5444_s27, 12 }
 0x933   : > { %v6841_v56 = vpop.eup %5282  ;;  %v3370_v59 = vmul.f32 1.442695, %v3344_v45  ;;  %v3343_v32 = vsub.f32 %v6784_v12, %v3321_v17  ;;  %v4149_v45 = vld [vmem:[%s7205_s5] ss:$0 sm:$0xff]  ;;  %s7074_s19 = scalar_lea.hbm %s7206_s6, %s4315_s10 }
 0x934   : > { %v3319_v44 = vpop.xlane.xlu0 %3318  ;;  %3388 = vadd.xlane.f32.xlu1 %v6841_v56  ;;  %v6846_v8 = vpop.eup %5284 }
 0x935   : > { %v3342_v55 = vsub.f32 %v6792_v49, %v3319_v44  ;;  %5294 = vpow2.f32 %v3370_v59  ;;  %v3368_v18 = vmul.f32 1.442695, %v3343_v32 }
 0x936   : > { %v3525_v53 = vpop.permute.xlu1 %3524 }
 0x937   : > { %v6848_v58 = vpop.eup %5286  ;;  %v3366_v28 = vmul.f32 1.442695, %v3342_v55 }
 0x938   : > { %v3331_v48 = vpop.xlane.xlu0 %3330  ;;  %3394 = vadd.xlane.f32.xlu0 %v6848_v58  ;;  %3384 = vadd.xlane.f32.xlu1 %v6846_v8 }
 0x939   : > { %5296 = vpow2.f32 %v3366_v28  ;;  %v3348_v43 = vsub.f32 %v6796_v7, %v3331_v48  ;;  %v6854_v14 = vpop.eup %5288 }
 0x93a   : > { %5298 = vpow2.f32 %v3372_v37 }
 0x93b   : > { %v6856_v49 = vpop.eup %5290  ;;  %v3378_v21 = vmul.f32 1.442695, %v3348_v43 }
 0x93c   : > { %3390 = vadd.xlane.f32.xlu0 %v6856_v49  ;;  %v3327_v50 = vpop.xlane.xlu0 %3326  ;;  %3392 = vadd.xlane.f32.xlu1 %v6854_v14  ;;  %v6861_v40 = vpop.eup %5292 }
 0x93d   : > { %5300 = vpow2.f32 %v3378_v21  ;;  %v3346_v12 = vsub.f32 %v6802_v10, %v3327_v50 }
 0x93e   : > { %5302 = vpow2.f32 %v3368_v18 }
 0x93f   : > { %v3374_v3 = vmul.f32 1.442695, %v3346_v12  ;;  %v6864_v13 = vpop.eup %5294 }
 0x940   : > { %v3523_v7 = vpop.permute.xlu0 %3522  ;;  %3396 = vadd.xlane.f32.xlu0 %v6861_v40 }
 0x941   : > { %5304 = vpow2.f32 %v3374_v3  ;;  %4866 = vmatprep.subr.bf16.mxu0 %v3523_v7 }
 0x942   : > { %4867 = vmatpush3.bf16.msra.mxu0 %v3523_v7 }
 0x943   : > { %v6866_v9 = vpop.eup %5296  ;;  %4868 = vmatprep.subr.bf16.mxu0 %v3525_v53 }
 0x944   : > { %3402 = vadd.xlane.f32.xlu0 %v6864_v13  ;;  %3398 = vadd.xlane.f32.xlu1 %v6866_v9  ;;  %v6870_v10 = vpop.eup %5298 }
 0x946   : > { %4869 = vmatpush3.bf16.msra.mxu0 %v3525_v53 }
 0x947   : > { %v6872_v0 = vpop.eup %5300 }
 0x948   : > { %3410 = vadd.xlane.f32.xlu1 %v6872_v0  ;;  %3404 = vadd.xlane.f32.xlu0 %v6870_v10  ;;  %v6876_v60 = vpop.eup %5302 }
 0x94b   : > { %v6878_v26 = vpop.eup %5304 }
 0x94c   : > { %3406 = vadd.xlane.f32.xlu1 %v6878_v26  ;;  %3400 = vadd.xlane.f32.xlu0 %v6876_v60 }
 0x95d   : > { %3530 = vrot.lane.b32.xlu1 %v5085_v1, %s5456_s15 }
 0x961   : > { %2686 = vrot.lane.b32.xlu1 %v4149_v45, %s7223_s17 }
 0x962   : > { %3528 = vrot.lane.b32.xlu0 %v5084_v35, %s5456_s15 }
 0x965   : > { %3540 = vrot.lane.b32.xlu1 %v4149_v45, %s5456_s15 }
 0x967   : > { %v3333_v47 = vpop.xlane.xlu1 %3332 }
 0x968   : > { %v3349_v55 = vsub.f32 %v6817_v39, %v3333_v47 }
 0x96a   : > { %v3380_v37 = vmul.f32 1.442695, %v3349_v55 }
 0x96b   : > { %v3329_v59 = vpop.xlane.xlu1 %3328 }
 0x96c   : > { %v3347_v44 = vsub.f32 %v6821_v61, %v3329_v59 }
 0x96e   : > { %v3376_v28 = vmul.f32 1.442695, %v3347_v44 }
 0x96f   : > { %v3527_v17 = vpop.permute.xlu1 %3526 }
 0x970   : > { %4870 = vmatprep.subr.bf16.mxu0 %v3527_v17  ;;  %5306 = vpow2.f32 %v3376_v28 }
 0x971   : > { %4871 = vmatpush3.bf16.msra.mxu0 %v3527_v17  ;;  %5308 = vpow2.f32 %v3380_v37 }
 0x97a   : > { %v6893_v32 = vpop.eup %5306 }
 0x97b   : > { %v6896_v48 = vpop.eup %5308 }
 0x981   : > { %3408 = vadd.xlane.f32.xlu0 %v6893_v32 }
 0x985   : > { %3412 = vadd.xlane.f32.xlu0 %v6896_v48 }
 0x99b   : > { %1832 = vrot.lane.b32.xlu0 %v4149_v45, %s7218_s0 }
 0x9b9   : > { %v3387_v61 = vpop.xlane.xlu1 %3386 }
 0x9bd   : > { %v3383_v43 = vpop.xlane.xlu1 %3382 }
 0x9be   : > { %5310 = vrcp.f32 %v3383_v43 }
 0x9c1   : > { %v3389_v21 = vpop.xlane.xlu1 %3388 }
 0x9c5   : > { %v3395_v18 = vpop.xlane.xlu0 %3394  ;;  %v3385_v39 = vpop.xlane.xlu1 %3384 }
 0x9c6   : > { %5312 = vrcp.f32 %v3385_v39 }
 0x9c7   : > { %5314 = vrcp.f32 %v3389_v21 }
 0x9c8   : > { %v5311_v7 = vpop.eup %5310 }
 0x9c9   : > { %v3391_v50 = vpop.xlane.xlu0 %3390  ;;  %v3393_v12 = vpop.xlane.xlu1 %3392  ;;  %v3430_v47 = vmul.f32 %v5311_v7, %v6837_v5 }
 0x9ca   : > { %5316 = vrcp.f32 %v3391_v50 }
 0x9cb   : > { %5318 = vrcp.f32 %v3393_v12 }
 0x9cc   : > { %5320 = vrcp.f32 %v3387_v61 }
 0x9cd   : > { %v3397_v3 = vpop.xlane.xlu0 %3396 }
 0x9ce   : > { %5322 = vrcp.f32 %v3397_v3 }
 0x9d0   : > { %v5313_v53 = vpop.eup %5312 }
 0x9d1   : > { %v3403_v1 = vpop.xlane.xlu0 %3402  ;;  %v3399_v35 = vpop.xlane.xlu1 %3398  ;;  %v3431_v59 = vmul.f32 %v5313_v53, %v6846_v8 }
 0x9d2   : > { %v5315_v37 = vpop.eup %5314 }
 0x9d3   : > { %v3446_v45 = vpack.c.bf16 %v3431_v59, %v3430_v47  ;;  %v3433_v50 = vmul.f32 %v5315_v37, %v6841_v56 }
 0x9d4   : > { %v5317_v43 = vpop.eup %5316 }
 0x9d5   : > { %v3405_v44 = vpop.xlane.xlu0 %3404  ;;  %v3411_v17 = vpop.xlane.xlu1 %3410  ;;  %4876 = vmatprep.mubr.bf16.mxu0 %v3446_v45  ;;  %v3434_v61 = vmul.f32 %v5317_v43, %v6856_v49 }
 0x9d6   : > { %v5319_v21 = vpop.eup %5318 }
 0x9d7   : > { %v5321_v5 = vpop.eup %5320  ;;  %v3435_v12 = vmul.f32 %v5319_v21, %v6854_v14 }
 0x9d8   : > { %v3432_v3 = vmul.f32 %v5321_v5, %v6831_v22 }
 0x9d9   : > { %v3401_v55 = vpop.xlane.xlu0 %3400  ;;  %v3407_v28 = vpop.xlane.xlu1 %3406  ;;  %v3448_v53 = vpack.c.bf16 %v3435_v12, %v3434_v61 }
 0x9da   : > { %5324 = vrcp.f32 %v3401_v55  ;;  %v3447_v7 = vpack.c.bf16 %v3433_v50, %v3432_v3 }
 0x9db   : > { %5326 = vrcp.f32 %v3395_v18  ;;  %v5323_v18 = vpop.eup %5322 }
 0x9dc   : > { %5328 = vrcp.f32 %v3399_v35  ;;  %v3437_v56 = vmul.f32 %v5323_v18, %v6861_v40 }
 0x9dd   : > { %v3529_v39 = vpop.permute.xlu0 %3528  ;;  %v3531_v8 = vpop.permute.xlu1 %3530  ;;  %5330 = vrcp.f32 %v3405_v44 }
 0x9de   : > { %4872 = vmatprep.subr.bf16.mxu0 %v3529_v39  ;;  %5332 = vrcp.f32 %v3403_v1 }
 0x9df   : > { %4873 = vmatpush3.bf16.msra.mxu0 %v3529_v39  ;;  %5334 = vrcp.f32 %v3407_v28 }
 0x9e0   : > { %4874 = vmatprep.subr.bf16.mxu0 %v3531_v8 }
 0x9e3   : > { %4875 = vmatpush3.bf16.msra.mxu0 %v3531_v8 }
 0x9e4   : > { %v5325_v35 = vpop.eup %5324 }
 0x9e5   : > { %v5327_v47 = vpop.eup %5326  ;;  %v3439_v45 = vmul.f32 %v5325_v35, %v6876_v60 }
 0x9e6   : > { %4877 = vmatmul.mubr.bf16.vlgmr.msra.gmra.mrb[48].mxu0 %v3447_v7  ;;  %v5329_v59 = vpop.eup %5328  ;;  %v3436_v49 = vmul.f32 %v5327_v47, %v6848_v58  ;;  %v7225_v7 = vld [vmem:[#allocation9_spill] sm:$0xff]  ;;  %v2687_v47 = vpop.permute.xlu1 %2686 }
 0x9e7   : > { %4880 = vmatprep.mubr.bf16.mxu0 %v3448_v53  ;;  %v3438_v14 = vmul.f32 %v5329_v59, %v6866_v9  ;;  %v5331_v44 = vpop.eup %5330  ;;  %v7227_v53 = vld [vmem:[#allocation8_spill] sm:$0xff]  ;;  %v2735_v59 = vadd.f32 %v6672_v33, %v2687_v47  ;;  %v2756_v33 = vadd.f32 %v6686_v54, %v2687_v47  ;;  %v2783_v54 = vadd.f32 %v6696_v62, %v2687_v47 }
 0x9e8   : > { %v3449_v22 = vpack.c.bf16 %v3437_v56, %v3436_v49  ;;  %v5333_v37 = vpop.eup %5332  ;;  %v3441_v1 = vmul.f32 %v5331_v44, %v6870_v10  ;;  %v2732_v56 = vadd.f32 %v6668_v29, %v2687_v47  ;;  %v2740_v49 = vadd.f32 %v6678_v15, %v2687_v47 }
 0x9e9   : > { %v3450_v55 = vpack.c.bf16 %v3439_v45, %v3438_v14  ;;  %v3440_v43 = vmul.f32 %v5333_v37, %v6864_v13  ;;  %v5335_v9 = vpop.eup %5334  ;;  %v2743_v45 = vadd.f32 %v6682_v19, %v2687_v47  ;;  %v2759_v29 = vadd.f32 %v6690_v51, %v2687_v47 }
 0x9ea   : > { %v3442_v13 = vmul.f32 %v5335_v9, %v6878_v26  ;;  %v2767_v15 = vadd.f32 %v6688_v46, %v2687_v47  ;;  %v2764_v19 = vadd.f32 %v6684_v6, %v2687_v47  ;;  %v2780_v6 = vadd.f32 %v6692_v42, %v2687_v47  ;;  %v6980_v46 = vpop.permute.xlu1 %3540 }
 0x9eb   : > { %v3451_v39 = vpack.c.bf16 %v3441_v1, %v3440_v43 }
 0x9ee   : > { %4881 = vmatmul.mubr.bf16.gmra.mrb[52].mxu0 %v3449_v22 }
 0x9ef   : > { %4884 = vmatprep.mubr.bf16.mxu0 %v3450_v55 }
 0x9f6   : > { %4885 = vmatmul.mubr.bf16.gmra.mrb[56].mxu0 %v3451_v39 }
 0xa0e   : > { %v3409_v40 = vpop.xlane.xlu0 %3408 }
 0xa0f   : > { %5336 = vrcp.f32 %v3409_v40 }
 0xa10   : > { %5338 = vrcp.f32 %v3411_v17 }
 0xa12   : > { %v3413_v60 = vpop.xlane.xlu0 %3412 }
 0xa13   : > { %5340 = vrcp.f32 %v3413_v60 }
 0xa16   : > { %v1833_v58 = vpop.permute.xlu0 %1832 }
 0xa17   : > { %v1873_v21 = vadd.f32 %v6324_v38, %v1833_v58  ;;  %v1870_v5 = vadd.f32 %v6320_v25, %v1833_v58  ;;  %v1881_v17 = vadd.f32 %v6322_v11, %v1833_v58  ;;  %v1878_v50 = vadd.f32 %v6318_v36, %v1833_v58 }
 0xa18   : > { %v1889_v26 = vadd.f32 %v6336_v20, %v1833_v58  ;;  %v1897_v36 = vadd.f32 %v6334_v16, %v1833_v58  ;;  %v1894_v11 = vadd.f32 %v6330_v57, %v1833_v58  ;;  %v1902_v20 = vadd.f32 %v6340_v23, %v1833_v58  ;;  %v7224_v57 = vld [vmem:[#allocation11_spill] sm:$0xff]  ;;  %v7226_v23 = vld [vmem:[#allocation10_spill] sm:$0xff] }
 0xa19   : > { %v5337_v8 = vpop.eup %5336  ;;  %1950 = vrot.lane.b32.xlu0 %v1873_v21, %s5456_s15  ;;  %1948 = vrot.lane.b32.xlu1 %v1870_v5, %s5456_s15  ;;  %v1921_v16 = vadd.f32 %v7224_v57, %v1833_v58  ;;  %v1918_v18 = vadd.f32 %v7225_v7, %v1833_v58  ;;  %v1926_v35 = vadd.f32 %v7227_v53, %v1833_v58 }
 0xa1a   : > { %v3443_v10 = vmul.f32 %v5337_v8, %v6893_v32  ;;  %v5339_v28 = vpop.eup %5338  ;;  %v1886_v32 = vadd.f32 %v6332_v30, %v1833_v58  ;;  %v1913_v30 = vadd.f32 %v6342_v27, %v1833_v58  ;;  %v2724_v27 = vadd.f32 %v6670_v63, %v2687_v47 }
 0xa1b   : > { %v3444_v25 = vmul.f32 %v5339_v28, %v6872_v0  ;;  %v1905_v0 = vadd.f32 %v6344_v2, %v1833_v58  ;;  %v1929_v2 = vadd.f32 %v7226_v23, %v1833_v58  ;;  %v2751_v63 = vadd.f32 %v6680_v34, %v2687_v47 }
 0xa1c   : > { %v3452_v61 = vpack.c.bf16 %v3443_v10, %v3442_v13  ;;  %v2772_v34 = vadd.f32 %v6694_v52, %v2687_v47 }
 0xa1d   : > { %v5341_v12 = vpop.eup %5340  ;;  %1954 = vrot.lane.b32.xlu0 %v1881_v17, %s5456_s15  ;;  %1952 = vrot.lane.b32.xlu1 %v1878_v50, %s5456_s15 }
 0xa1e   : > { %4888 = vmatprep.mubr.bf16.mxu0 %v3452_v61  ;;  %v3445_v38 = vmul.f32 %v5341_v12, %v6896_v48  ;;  %v1910_v48 = vadd.f32 %v6338_v24, %v1833_v58  ;;  %v2727_v24 = vadd.f32 %v6674_v31, %v2687_v47  ;;  %v2748_v31 = vadd.f32 %v6676_v41, %v2687_v47 }
 0xa1f   : > { %v2775_v41 = vadd.f32 %v6698_v4, %v2687_v47 }
 0xa20   : > { %v3453_v3 = vpack.c.bf16 %v3445_v38, %v3444_v25 }
 0xa21   : > { %1958 = vrot.lane.b32.xlu0 %v1889_v26, %s5456_s15  ;;  %1956 = vrot.lane.b32.xlu1 %v1886_v32, %s5456_s15 }
 0xa22   : > { %4889 = vmatmul.mubr.bf16.gmra.mrb[60].mxu0 %v3453_v3 }
 0xa25   : > { %1962 = vrot.lane.b32.xlu0 %v1897_v36, %s5456_s15  ;;  %1960 = vrot.lane.b32.xlu1 %v1894_v11, %s5456_s15 }
 0xa29   : > { %1966 = vrot.lane.b32.xlu0 %v1905_v0, %s5456_s15  ;;  %1964 = vrot.lane.b32.xlu1 %v1902_v20, %s5456_s15 }
 0xa2d   : > { %1970 = vrot.lane.b32.xlu0 %v1913_v30, %s5456_s15  ;;  %1968 = vrot.lane.b32.xlu1 %v1910_v48, %s5456_s15 }
 0xa31   : > { %1974 = vrot.lane.b32.xlu0 %v1921_v16, %s5456_s15  ;;  %1972 = vrot.lane.b32.xlu1 %v1918_v18, %s5456_s15 }
 0xa35   : > { %1978 = vrot.lane.b32.xlu0 %v1929_v2, %s5456_s15  ;;  %1976 = vrot.lane.b32.xlu1 %v1926_v35, %s5456_s15 }
 0xa39   : > { %2804 = vrot.lane.b32.xlu0 %v2727_v24, %s7223_s17  ;;  %2802 = vrot.lane.b32.xlu1 %v2724_v27, %s7223_s17 }
 0xa3d   : > { %2808 = vrot.lane.b32.xlu0 %v2735_v59, %s7223_s17  ;;  %2806 = vrot.lane.b32.xlu1 %v2732_v56, %s7223_s17 }
 0xa41   : > { %2812 = vrot.lane.b32.xlu0 %v2743_v45, %s7223_s17  ;;  %2810 = vrot.lane.b32.xlu1 %v2740_v49, %s7223_s17 }
 0xa45   : > { %2816 = vrot.lane.b32.xlu0 %v2751_v63, %s7223_s17  ;;  %2814 = vrot.lane.b32.xlu1 %v2748_v31, %s7223_s17 }
 0xa49   : > { %2820 = vrot.lane.b32.xlu0 %v2759_v29, %s7223_s17  ;;  %2818 = vrot.lane.b32.xlu1 %v2756_v33, %s7223_s17 }
 0xa4d   : > { %2824 = vrot.lane.b32.xlu0 %v2767_v15, %s7223_s17  ;;  %2822 = vrot.lane.b32.xlu1 %v2764_v19, %s7223_s17 }
 0xa51   : > { %2828 = vrot.lane.b32.xlu0 %v2775_v41, %s7223_s17  ;;  %2826 = vrot.lane.b32.xlu1 %v2772_v34, %s7223_s17 }
 0xa55   : > { %2832 = vrot.lane.b32.xlu0 %v2783_v54, %s7223_s17  ;;  %2830 = vrot.lane.b32.xlu1 %v2780_v6, %s7223_s17 }
 0xa8b   : > { %v1951_v51 = vpop.permute.xlu0 %1950  ;;  %v1949_v52 = vpop.permute.xlu1 %1948 }
 0xa8c   : > { %1998 = vst.msk [vmem:[%s5986_s21 + $0x8] sm:$0xff] %vm1996_vm1, %v1951_v51  ;;  %1997 = vst.msk [vmem:[%s5986_s21] sm:$0xff] %vm1996_vm1, %v1949_v52 }
 0xa8f   : > { %v1955_v62 = vpop.permute.xlu0 %1954  ;;  %v1953_v42 = vpop.permute.xlu1 %1952 }
 0xa90   : > { %2000 = vst.msk [vmem:[%s5986_s21 + $0x18] sm:$0xff] %vm1996_vm1, %v1955_v62  ;;  %1999 = vst.msk [vmem:[%s5986_s21 + $0x10] sm:$0xff] %vm1996_vm1, %v1953_v42 }
 0xa93   : > { %v1959_v4 = vpop.permute.xlu0 %1958  ;;  %v1957_v14 = vpop.permute.xlu1 %1956 }
 0xa94   : > { %2002 = vst.msk [vmem:[%s5986_s21 + $0x28] sm:$0xff] %vm1996_vm1, %v1959_v4  ;;  %2001 = vst.msk [vmem:[%s5986_s21 + $0x20] sm:$0xff] %vm1996_vm1, %v1957_v14 }
 0xa97   : > { %v1963_v22 = vpop.permute.xlu0 %1962  ;;  %v1961_v44 = vpop.permute.xlu1 %1960 }
 0xa98   : > { %2004 = vst.msk [vmem:[%s5986_s21 + $0x38] sm:$0xff] %vm1996_vm1, %v1963_v22  ;;  %2003 = vst.msk [vmem:[%s5986_s21 + $0x30] sm:$0xff] %vm1996_vm1, %v1961_v44 }
 0xa9b   : > { %v1967_v55 = vpop.permute.xlu0 %1966  ;;  %v1965_v37 = vpop.permute.xlu1 %1964 }
 0xa9c   : > { %2006 = vst.msk [vmem:[%s5986_s21 + $0x48] sm:$0xff] %vm1996_vm1, %v1967_v55  ;;  %2005 = vst.msk [vmem:[%s5986_s21 + $0x40] sm:$0xff] %vm1996_vm1, %v1965_v37 }
 0xa9f   : > { %v1971_v1 = vpop.permute.xlu0 %1970  ;;  %v1969_v43 = vpop.permute.xlu1 %1968 }
 0xaa0   : > { %2008 = vst.msk [vmem:[%s5986_s21 + $0x58] sm:$0xff] %vm1996_vm1, %v1971_v1  ;;  %2007 = vst.msk [vmem:[%s5986_s21 + $0x50] sm:$0xff] %vm1996_vm1, %v1969_v43 }
 0xaa3   : > { %v1975_v39 = vpop.permute.xlu0 %1974  ;;  %v1973_v40 = vpop.permute.xlu1 %1972 }
 0xaa4   : > { %2010 = vst.msk [vmem:[%s5986_s21 + $0x68] sm:$0xff] %vm1996_vm1, %v1975_v39  ;;  %2009 = vst.msk [vmem:[%s5986_s21 + $0x60] sm:$0xff] %vm1996_vm1, %v1973_v40 }
 0xaa7   : > { %v1979_v60 = vpop.permute.xlu0 %1978  ;;  %v1977_v58 = vpop.permute.xlu1 %1976 }
 0xaa8   : > { %2012 = vst.msk [vmem:[%s5986_s21 + $0x78] sm:$0xff] %vm1996_vm1, %v1979_v60  ;;  %2011 = vst.msk [vmem:[%s5986_s21 + $0x70] sm:$0xff] %vm1996_vm1, %v1977_v58 }
 0xaab   : > { %v2805_v9 = vpop.permute.xlu0 %2804  ;;  %v2803_v21 = vpop.permute.xlu1 %2802 }
 0xaac   : > { %2852 = vst.msk [vmem:[%s5986_s21 + $0x8] sm:$0xff] %vm2850_vm2, %v2805_v9  ;;  %2851 = vst.msk [vmem:[%s5986_s21] sm:$0xff] %vm2850_vm2, %v2803_v21 }
 0xaaf   : > { %v2809_v5 = vpop.permute.xlu0 %2808  ;;  %v2807_v8 = vpop.permute.xlu1 %2806 }
 0xab0   : > { %2854 = vst.msk [vmem:[%s5986_s21 + $0x18] sm:$0xff] %vm2850_vm2, %v2809_v5  ;;  %2853 = vst.msk [vmem:[%s5986_s21 + $0x10] sm:$0xff] %vm2850_vm2, %v2807_v8 }
 0xab3   : > { %v2813_v13 = vpop.permute.xlu0 %2812  ;;  %v2811_v10 = vpop.permute.xlu1 %2810 }
 0xab4   : > { %2856 = vst.msk [vmem:[%s5986_s21 + $0x28] sm:$0xff] %vm2850_vm2, %v2813_v13  ;;  %2855 = vst.msk [vmem:[%s5986_s21 + $0x20] sm:$0xff] %vm2850_vm2, %v2811_v10 }
 0xab7   : > { %v2817_v28 = vpop.permute.xlu0 %2816  ;;  %v2815_v17 = vpop.permute.xlu1 %2814 }
 0xab8   : > { %2858 = vst.msk [vmem:[%s5986_s21 + $0x38] sm:$0xff] %vm2850_vm2, %v2817_v28  ;;  %2857 = vst.msk [vmem:[%s5986_s21 + $0x30] sm:$0xff] %vm2850_vm2, %v2815_v17 }
 0xab9   : > { %v4878_v50 = vpop.f32.mrb[48].mxu0 }
 0xaba   : > { %v3586_v61 = vadd.f32 %v4878_v50, %v6980_v46  ;;  %v3577_v12 = vpop.f32.mrb[49].mxu0 }
 0xabb   : > { %v4879_v25 = vpop.f32.mrb[50].mxu0  ;;  %v2821_v38 = vpop.permute.xlu0 %2820  ;;  %v3578_v36 = vadd.f32 %v3577_v12, %v6980_v46 }
 0xabc   : > { %v3589_v26 = vadd.f32 %v4879_v25, %v6980_v46  ;;  %2860 = vst.msk [vmem:[%s5986_s21 + $0x48] sm:$0xff] %vm2850_vm2, %v2821_v38  ;;  %v2819_v32 = vpop.permute.xlu1 %2818  ;;  %v3580_v3 = vpop.f32.mrb[51].mxu0  ;;  %3660 = vrot.lane.b32.xlu1 %v3586_v61, %s7218_s0 }
 0xabd   : > { %2859 = vst.msk [vmem:[%s5986_s21 + $0x40] sm:$0xff] %vm2850_vm2, %v2819_v32  ;;  %v3581_v0 = vadd.f32 %v3580_v3, %v6980_v46 }
 0xabe   : > { %3662 = vrot.lane.b32.xlu0 %v3589_v26, %s7218_s0 }
 0xabf   : > { %v2825_v11 = vpop.permute.xlu0 %2824 }
 0xac0   : > { %2862 = vst.msk [vmem:[%s5986_s21 + $0x58] sm:$0xff] %vm2850_vm2, %v2825_v11  ;;  %v2823_v20 = vpop.permute.xlu1 %2822  ;;  %3656 = vrot.lane.b32.xlu1 %v3578_v36, %s7218_s0 }
 0xac1   : > { %2861 = vst.msk [vmem:[%s5986_s21 + $0x50] sm:$0xff] %vm2850_vm2, %v2823_v20  ;;  %v4882_v30 = vpop.f32.mrb[52].mxu0 }
 0xac2   : > { %v3602_v48 = vadd.f32 %v4882_v30, %v6980_v46  ;;  %v3593_v57 = vpop.f32.mrb[53].mxu0  ;;  %3658 = vrot.lane.b32.xlu0 %v3581_v0, %s7218_s0 }
 0xac3   : > { %v4883_v16 = vpop.f32.mrb[54].mxu0  ;;  %v2829_v7 = vpop.permute.xlu0 %2828  ;;  %v3594_v53 = vadd.f32 %v3593_v57, %v6980_v46 }
 0xac4   : > { %v3605_v18 = vadd.f32 %v4883_v16, %v6980_v46  ;;  %2864 = vst.msk [vmem:[%s5986_s21 + $0x68] sm:$0xff] %vm2850_vm2, %v2829_v7  ;;  %v2827_v23 = vpop.permute.xlu1 %2826  ;;  %v3596_v2 = vpop.f32.mrb[55].mxu0  ;;  %3668 = vrot.lane.b32.xlu1 %v3602_v48, %s7218_s0 }
 0xac5   : > { %2863 = vst.msk [vmem:[%s5986_s21 + $0x60] sm:$0xff] %vm2850_vm2, %v2827_v23  ;;  %v3597_v47 = vadd.f32 %v3596_v2, %v6980_v46 }
 0xac6   : > { %3670 = vrot.lane.b32.xlu0 %v3605_v18, %s7218_s0 }
 0xac7   : > { %v2833_v35 = vpop.permute.xlu0 %2832 }
 0xac8   : > { %2866 = vst.msk [vmem:[%s5986_s21 + $0x78] sm:$0xff] %vm2850_vm2, %v2833_v35  ;;  %v2831_v24 = vpop.permute.xlu1 %2830  ;;  %3664 = vrot.lane.b32.xlu1 %v3594_v53, %s7218_s0 }
 0xac9   : > { %2865 = vst.msk [vmem:[%s5986_s21 + $0x70] sm:$0xff] %vm2850_vm2, %v2831_v24  ;;  %v4886_v27 = vpop.f32.mrb[56].mxu0 }
 0xaca   : > { %v3618_v59 = vadd.f32 %v4886_v27, %v6980_v46  ;;  %v3609_v56 = vpop.f32.mrb[57].mxu0  ;;  %3666 = vrot.lane.b32.xlu0 %v3597_v47, %s7218_s0 }
 0xacb   : > { %v4887_v45 = vpop.f32.mrb[58].mxu0  ;;  %v3610_v31 = vadd.f32 %v3609_v56, %v6980_v46 }
 0xacc   : > { %v3621_v49 = vadd.f32 %v4887_v45, %v6980_v46  ;;  %v3612_v63 = vpop.f32.mrb[59].mxu0  ;;  %3676 = vrot.lane.b32.xlu1 %v3618_v59, %s7218_s0 }
 0xacd   : > { %v3613_v29 = vadd.f32 %v3612_v63, %v6980_v46 }
 0xace   : > { %3678 = vrot.lane.b32.xlu0 %v3621_v49, %s7218_s0 }
 0xad0   : > { %3672 = vrot.lane.b32.xlu1 %v3610_v31, %s7218_s0 }
 0xad2   : > { %3674 = vrot.lane.b32.xlu0 %v3613_v29, %s7218_s0 }
 0xaf5   : > { %v4890_v33 = vpop.f32.mrb[60].mxu0 }
 0xaf6   : > { %5355 = shalt.err (!%p5352_p5)
}
 0xaf7   : > { %s5356_s1 = scalar_lea.hbm %s7074_s19, 4096  ;;  %s5360_s23 = scalar_lea.hbm %s7206_s6, 8192 }
 0xaf8   : > { %p5357_p6 = scmp.ne.s32.totalorder %s7074_s19, %s5356_s1  ;;  %p5361_p10 = scmp.lt.u32.totalorder %s7074_s19, %s7206_s6 }
 0xaf9   : > { %p5362_p11 = scmp.lt.u32.totalorder %s5360_s23, %s5356_s1  ;;  %p5364_p13 = scmp.lt.u32.totalorder %s5356_s1, %s7074_s19 }
 0xafa   : > { %p5358_p7 = pnand %p5357_p6, %p5542_p4 }
 0xafb   : > { %p5363_p12 = por %p5362_p11, %p5361_p10 }
 0xafc   : > { %p5359_p9 = pneg %p5358_p7 }
 0xafd   : > { %p5365_p0 = por %p5364_p13, %p5363_p12 }
 0xaff   : > { %p5366_p1 = pnand %p5365_p0, %p5359_p9 }
 0xb01   : > { %5369 = shalt.err (!%p5366_p1)
}
 0xb02   : > { %s5458_s12 = smov 4   ;;  %v3625_v15 = vpop.f32.mrb[61].mxu0  ;;  %v3634_v6 = vadd.f32 %v4890_v33, %v6980_v46  ;;  %vm3704_vm3 = vcmask 1048320   ;;  %s5459_s1 = smov [#allocation4]  }
 0xb03   : > { %4924 = dma.vmem_to_hbm [thread:$0]  (%p5542_p4), %s7077_s22, 4096, %s7074_s19, %s3722_s20, %s7223_s17, %s7223_s17, %s5458_s12   ;;  %v3626_v19 = vadd.f32 %v3625_v15, %v6980_v46  ;;  %v4891_v41 = vpop.f32.mrb[62].mxu0 }
 0xb04   : > { %v3628_v34 = vpop.f32.mrb[63].mxu0  ;;  %v3637_v51 = vadd.f32 %v4891_v41, %v6980_v46  ;;  %s3760_s17 = sshll.u32 %s5986_s21, 4  ;;  %s5374_s10 = sshll.u32 %s5459_s1, 4  ;;  %s7148_s17 = int_to_ptr.vmem [resolvable:$true] %s3760_s17  ;;  %s5375_s10 = int_to_ptr.vmem [resolvable:$false] %s5374_s10 }
 0xb05   : > { %v3629_v54 = vadd.f32 %v3628_v34, %v6980_v46  ;;  %3680 = vrot.lane.b32.xlu1 %v3626_v19, %s7218_s0  ;;  %s5370_s8 = scalar_lea.vmem %s7148_s17, 2048  ;;  %s5376_s15 = scalar_lea.vmem %s5375_s10, 4096 }
 0xb06   : > { %p5371_p2 = scmp.ne.s32.totalorder %s7148_s17, %s5370_s8  ;;  %p5377_p6 = scmp.lt.s32.totalorder %s7148_s17, %s5375_s10 }
 0xb07   : > { %3682 = vrot.lane.b32.xlu0 %v3629_v54, %s7218_s0  ;;  %p5378_p7 = scmp.lt.s32.totalorder %s5376_s15, %s5370_s8 }
 0xb08   : > { %p5372_p3 = pnand %p5371_p2, %p5542_p4 }
 0xb09   : > { %3684 = vrot.lane.b32.xlu1 %v3634_v6, %s7218_s0  ;;  %p5379_p9 = por %p5378_p7, %p5377_p6 }
 0xb0a   : > { %p5373_p5 = pneg %p5372_p3 }
 0xb0b   : > { %3686 = vrot.lane.b32.xlu0 %v3637_v51, %s7218_s0  ;;  %s4316_s0 = sshll.u32 %s5444_s27, 11  ;;  %s3727_s27 = scalar_lea.sflag [#allocation5], %s5640_s16 }
 0xb0c   : > { %s7146_s20 = scalar_lea.hbm %s7207_s7, %s4316_s0  ;;  %p5380_p10 = pnand %p5379_p9, %p5373_p5 }
 0xb2e   : > { %v3661_v52 = vpop.permute.xlu1 %3660 }
 0xb2f   : > { %3707 = vst.msk [vmem:[%s5986_s21 + $0x10] sm:$0xff] %vm3704_vm3, %v3661_v52 }
 0xb30   : > { %v3663_v62 = vpop.permute.xlu0 %3662 }
 0xb31   : > { %3708 = vst.msk [vmem:[%s5986_s21 + $0x18] sm:$0xff] %vm3704_vm3, %v3663_v62 }
 0xb32   : > { %v3657_v42 = vpop.permute.xlu1 %3656 }
 0xb33   : > { %3705 = vst.msk [vmem:[%s5986_s21] sm:$0xff] %vm3704_vm3, %v3657_v42 }
 0xb34   : > { %v3659_v46 = vpop.permute.xlu0 %3658 }
 0xb35   : > { %3706 = vst.msk [vmem:[%s5986_s21 + $0x8] sm:$0xff] %vm3704_vm3, %v3659_v46 }
 0xb36   : > { %v3669_v4 = vpop.permute.xlu1 %3668 }
 0xb37   : > { %3711 = vst.msk [vmem:[%s5986_s21 + $0x30] sm:$0xff] %vm3704_vm3, %v3669_v4 }
 0xb38   : > { %v3671_v14 = vpop.permute.xlu0 %3670 }
 0xb39   : > { %3712 = vst.msk [vmem:[%s5986_s21 + $0x38] sm:$0xff] %vm3704_vm3, %v3671_v14 }
 0xb3a   : > { %v3665_v22 = vpop.permute.xlu1 %3664 }
 0xb3b   : > { %3709 = vst.msk [vmem:[%s5986_s21 + $0x20] sm:$0xff] %vm3704_vm3, %v3665_v22 }
 0xb3c   : > { %v3667_v44 = vpop.permute.xlu0 %3666 }
 0xb3d   : > { %3710 = vst.msk [vmem:[%s5986_s21 + $0x28] sm:$0xff] %vm3704_vm3, %v3667_v44 }
 0xb3e   : > { %v3677_v55 = vpop.permute.xlu1 %3676 }
 0xb3f   : > { %3715 = vst.msk [vmem:[%s5986_s21 + $0x50] sm:$0xff] %vm3704_vm3, %v3677_v55 }
 0xb40   : > { %v3679_v37 = vpop.permute.xlu0 %3678 }
 0xb41   : > { %3716 = vst.msk [vmem:[%s5986_s21 + $0x58] sm:$0xff] %vm3704_vm3, %v3679_v37 }
 0xb42   : > { %v3673_v1 = vpop.permute.xlu1 %3672 }
 0xb43   : > { %3713 = vst.msk [vmem:[%s5986_s21 + $0x40] sm:$0xff] %vm3704_vm3, %v3673_v1 }
 0xb44   : > { %v3675_v43 = vpop.permute.xlu0 %3674 }
 0xb45   : > { %3714 = vst.msk [vmem:[%s5986_s21 + $0x48] sm:$0xff] %vm3704_vm3, %v3675_v43 }
 0xb77   : > { %v3681_v39 = vpop.permute.xlu1 %3680 }
 0xb78   : > { %3717 = vst.msk [vmem:[%s5986_s21 + $0x60] sm:$0xff] %vm3704_vm3, %v3681_v39 }
 0xb79   : > { %v3683_v40 = vpop.permute.xlu0 %3682 }
 0xb7a   : > { %3718 = vst.msk [vmem:[%s5986_s21 + $0x68] sm:$0xff] %vm3704_vm3, %v3683_v40 }
 0xb7b   : > { %v3685_v60 = vpop.permute.xlu1 %3684 }
 0xb7c   : > { %3719 = vst.msk [vmem:[%s5986_s21 + $0x70] sm:$0xff] %vm3704_vm3, %v3685_v60 }
 0xb7d   : > { %v3687_v58 = vpop.permute.xlu0 %3686 }
 0xb7e   : > { %3720 = vst.msk [vmem:[%s5986_s21 + $0x78] sm:$0xff] %vm3704_vm3, %v3687_v58 }
 0xb7f   : > { %5383 = shalt.err (!%p5380_p10)
}
 0xb80   : > { %s5384_s21 = scalar_lea.hbm %s7146_s20, 2048  ;;  %s5388_s30 = scalar_lea.hbm %s7207_s7, 4096 }
 0xb81   : > { %p5385_p11 = scmp.ne.s32.totalorder %s7146_s20, %s5384_s21  ;;  %p5389_p0 = scmp.lt.u32.totalorder %s7146_s20, %s7207_s7 }
 0xb82   : > { %p5390_p1 = scmp.lt.u32.totalorder %s5388_s30, %s5384_s21  ;;  %p5392_p3 = scmp.lt.u32.totalorder %s5384_s21, %s7146_s20 }
 0xb83   : > { %p5386_p12 = pnand %p5385_p11, %p5542_p4 }
 0xb84   : > { %p5391_p2 = por %p5390_p1, %p5389_p0 }
 0xb85   : > { %p5387_p13 = pneg %p5386_p12 }
 0xb86   : > { %p5393_p5 = por %p5392_p3, %p5391_p2 }
 0xb88   : > { %p5394_p6 = pnand %p5393_p5, %p5387_p13 }
 0xb8a   : > { %5397 = shalt.err (!%p5394_p6)
}
 0xb8b   : > { %s5460_s19 = smov 128   ;;  %s5461_s22 = smov 8  }
 0xb8c   : > { %4925 = dma.vmem_to_hbm [thread:$0]  (%p5542_p4), %s7148_s17, 2048, %s7146_s20, %s3727_s27, %s5460_s19, %s5460_s19, %s5461_s22  }
 0xb8d PF: > { %p4935_p7 = scmp.ge.s32.totalorder %s5452_s29, 2  ;;  %s3775_s8 = sand.u32 1, %s5432_s24  }
 0xb8e   : > { %s3776_s1 = scalar_lea.sflag [#allocation3], %s3775_s8 }
 0xb8f   : > { %p4929_p9 = pnand %p4935_p7, %p5549_p8 }
 0xb91   : > { %5423 = dma.done.wait (!%p4929_p9), %s3776_s1, 4096  }
 0xb92   : > { %5425 = vsyncadd (!%p4929_p9), %s3776_s1, 4294963200  ;;  %s3785_s10 = scalar_lea.sflag [#allocation5], %s3775_s8 }
 0xb93   : > { %5427 = dma.done.wait (!%p4929_p9), %s3785_s10, 2048  }
 0xb94   : > { %5429 = vsyncadd (!%p4929_p9), %s3785_s10, 4294965248  ;;  %s24_s29 = sadd.s32 1, %s5452_s29   ;;  %s7228_s24 = smov %s5436_s25 }
 0xb95   : > { %p21_p10 = scmp.ge.s32.totalorder %s24_s29, 4   ;;  %s7229_s25 = smov %s5440_s26 }
 0xb96   : > { %s7230_s26 = smov %s5555_s14  ;;  %s7231_s27 = smov %s5448_s28 }
 0xb97   : > { %s7232_s28 = smov %s7234_s9  ;;  %23 = sbr.rel (!%p21_p10) target bundleno = 9 (0x9), region = 114 }
 0xb9e   :  { %3790 = vsyncpa [#allocation3], 1 }
 0xb9f   :  { %3792 = vsyncpa [#allocation3 + $0x1], 1 }
 0xba0   :  { %3793 = vsyncpa [#allocation5], 1 }
 0xba1   :  { %3795 = vsyncpa [#allocation5 + $0x1], 1 }

</bundles_post_ra>
